<compile_context>
chip_gen: v6e
topology: v6e:2x2x1
jax: 0.10.0
libtpu: 0.0.40
codegen_flags: <defaults>
</compile_context>

<pallas_src>
import functools

import jax
import jax.numpy as jnp
from jax import lax
from jax.experimental import pallas as pl
from jax.experimental.pallas import tpu as pltpu


BN_EPS = 1e-5

# (name, use_batchnorm, use_relu, manual_weight_dma) in forward order.
# batch_fc1..batch_fc4 exist in the PyTorch __init__ but are NOT used in
# forward(), so they are intentionally omitted. manual_weight_dma marks the
# late, large weights whose HBM->VMEM copy is issued inside the kernel body
# and overlapped with early-layer compute.
_LAYERS = (
    ("fc1",  False, True,  False),
    ("fc2",  False, True,  False),
    ("fc3",  False, True,  False),
    ("fc4",  False, True,  True),
    ("fc5",  True,  True,  False),
    ("fcs",  True,  False, False),   # latent output s = batch_fcs(fcs(x))
    ("fc6",  True,  True,  False),
    ("fc7",  True,  True,  False),
    ("fc8",  True,  True,  True),
    ("fc9",  True,  True,  True),
    ("fc10", True,  True,  False),
    ("fc11", False, True,  True),    # final reconstruction, ReLU
)


def _pad128(n):
    return ((n + 127) // 128) * 128


def _vec_layout(params):
    """Static (shape-derived) layout of the packed (1, VTOT) f32 vector that
    carries every small per-feature vector: non-BN biases and BN gamma/beta.
    Each segment starts at a 128-lane-aligned offset. BN-layer biases are
    intentionally omitted (cancelled by BN's mean subtraction)."""
    off = 0
    layout = {}
    for name, use_bn, _, _ in _LAYERS:
        n = int(params[name]["w"].shape[1])
        if use_bn:
            g_off, off = off, off + _pad128(n)
            be_off, off = off, off + _pad128(n)
            layout[name] = (-1, g_off, be_off, n)
        else:
            b_off, off = off, off + _pad128(n)
            layout[name] = (b_off, -1, -1, n)
    return layout, off


def pack_small_vectors(params):
    """One-time packing of biases / gammas / betas into a single f32 row."""
    layout, total = _vec_layout(params)
    vec = jnp.zeros((1, total), jnp.float32)
    for name, use_bn, _, _ in _LAYERS:
        b_off, g_off, be_off, n = layout[name]
        p = params[name]
        if use_bn:
            vec = vec.at[:, g_off:g_off + n].set(p["gamma"])
            vec = vec.at[:, be_off:be_off + n].set(p["beta"])
        else:
            vec = vec.at[:, b_off:b_off + n].set(p["b"])
    return vec


# ---------------------------------------------------------------------------
# Fused kernel: the entire network in one body.
# refs = [x, packed_vec, w_fc1..w_fc11, s_out, recon_out,
#         wbuf_0..wbuf_{n_manual-1}, dma_sem]
# ---------------------------------------------------------------------------
def _vae_kernel(*refs, layer_cfgs, n_manual):
    n_layers = len(layer_cfgs)
    x_ref = refs[0]
    vec_ref = refs[1]
    w_refs = refs[2:2 + n_layers]
    s_ref = refs[2 + n_layers]
    o_ref = refs[3 + n_layers]
    scratch = refs[4 + n_layers:]
    wbufs = scratch[:n_manual]
    sem = scratch[n_manual] if n_manual else None

    # Kick off the manual DMAs for the late/large weights immediately so their
    # HBM->VMEM transfers overlap with the early-layer compute.
    copies = {}
    for li, cfg in enumerate(layer_cfgs):
        slot = cfg[0]
        if slot >= 0:
            cp = pltpu.make_async_copy(w_refs[li], wbufs[slot], sem.at[slot])
            cp.start()
            copies[li] = cp

    y = x_ref[...]                       # (B, input_dim) f32 activations

    for li, cfg in enumerate(layer_cfgs):
        slot, use_bn, use_relu, is_latent, b_off, g_off, be_off, n = cfg

        if slot >= 0:
            copies[li].wait()            # block only right before first use
            w = wbufs[slot][...]
        else:
            w = w_refs[li][...]

        # Linear: bf16 x bf16 MXU matmul, f32 accumulation.
        z = jnp.dot(y.astype(jnp.bfloat16), w,
                    preferred_element_type=jnp.float32)

        if use_bn:
            # Bias omitted: BN's batch-mean subtraction cancels it exactly.
            # BatchNorm1d, training mode (batch stats, biased variance),
            # one-pass statistics, folded into a single scale/shift FMA.
            mean = jnp.mean(z, axis=0, keepdims=True)            # (1, N)
            meansq = jnp.mean(z * z, axis=0, keepdims=True)      # (1, N)
            var = meansq - mean * mean
            g = vec_ref[:, g_off:g_off + n]
            be = vec_ref[:, be_off:be_off + n]
            scale = g * lax.rsqrt(var + BN_EPS)
            shift = be - mean * scale
            z = z * scale + shift
        else:
            z = z + vec_ref[:, b_off:b_off + n]                  # (B,N)+(1,N)

        if use_relu:
            z = jnp.maximum(z, 0.0)
        if is_latent:
            s_ref[...] = z.astype(s_ref.dtype)
        y = z

    o_ref[...] = y.astype(o_ref.dtype)


def myvae_forward(params, packed_vec, x):
    """Fully fused forward (single pallas_call). Returns (s, reconstruction)."""
    B, input_dim = x.shape
    latent_dim = int(params["fcs"]["w"].shape[1])
    layout, vec_total = _vec_layout(params)
    assert packed_vec.shape == (1, vec_total)

    inputs = [x, packed_vec]
    in_specs = [pl.BlockSpec(x.shape, lambda i: (0, 0)),
                pl.BlockSpec(packed_vec.shape, lambda i: (0, 0))]

    cfgs = []
    scratch_shapes = []
    n_manual = 0
    for name, use_bn, use_relu, manual in _LAYERS:
        w = params[name]["w"]
        inputs.append(w)
        if manual:
            # Raw HBM ref; copied in-kernel (overlapped with early compute).
            in_specs.append(pl.BlockSpec(memory_space=pl.ANY))
            scratch_shapes.append(pltpu.VMEM(w.shape, w.dtype))
            slot = n_manual
            n_manual += 1
        else:
            in_specs.append(pl.BlockSpec(w.shape, lambda i: (0, 0)))
            slot = -1
        b_off, g_off, be_off, n = layout[name]
        cfgs.append((slot, use_bn, use_relu, name == "fcs",
                     b_off, g_off, be_off, n))
    if n_manual:
        scratch_shapes.append(pltpu.SemaphoreType.DMA((n_manual,)))

    kernel = functools.partial(_vae_kernel, layer_cfgs=tuple(cfgs),
                               n_manual=n_manual)

    out_shapes = (jax.ShapeDtypeStruct((B, latent_dim), jnp.float32),
                  jax.ShapeDtypeStruct((B, input_dim), jnp.float32))
    out_specs = [pl.BlockSpec((B, latent_dim), lambda i: (0, 0)),
                 pl.BlockSpec((B, input_dim), lambda i: (0, 0))]

    return pl.pallas_call(
        kernel,
        out_shape=out_shapes,
        grid_spec=pltpu.PrefetchScalarGridSpec(
            num_scalar_prefetch=0,
            grid=(1,),
            in_specs=in_specs,
            out_specs=out_specs,
            scratch_shapes=scratch_shapes),
        compiler_params=pltpu.CompilerParams(
            dimension_semantics=("arbitrary",)),
    )(*inputs)


# ---------------------------------------------------------------------------
# Parameter construction (mirrors nn.Linear / nn.BatchNorm1d shapes; BN
# gamma=1, beta=0 as in PyTorch default init). Weights stored as (in, out),
# i.e. the transpose of PyTorch's (out, in), in bfloat16. Biases are kept for
# every Linear (as in PyTorch) so the reference can prove the BN bias
# cancellation; the kernel only consumes the non-BN biases.
# ---------------------------------------------------------------------------
def make_linear_params(key, in_features, out_features):
    kw, kb = jax.random.split(key)
    bound = 1.0 / jnp.sqrt(jnp.float32(in_features))
    w = jax.random.uniform(kw, (in_features, out_features),
                           jnp.float32, -bound, bound)
    b = jax.random.uniform(kb, (1, out_features), jnp.float32, -bound, bound)
    return w.astype(jnp.bfloat16), b


def make_bn_params(num_features):
    return (jnp.ones((1, num_features), jnp.float32),
            jnp.zeros((1, num_features), jnp.float32))


def init_myvae_params(key, latent_dim, input_dim, n_dim):
    dims = {
        "fc1": (input_dim, input_dim // 5),
        "fc2": (input_dim // 5, input_dim // 5),
        "fc3": (input_dim // 5, n_dim),
        "fc4": (n_dim, n_dim),
        "fc5": (n_dim, n_dim // 5),
        "fcs": (n_dim // 5, latent_dim),
        "fc6": (latent_dim, n_dim // 5),
        "fc7": (n_dim // 5, n_dim),
        "fc8": (n_dim, n_dim),
        "fc9": (n_dim, input_dim // 5),
        "fc10": (input_dim // 5, input_dim // 5),
        "fc11": (input_dim // 5, input_dim),
    }
    use_bn = {name: bn for name, bn, _, _ in _LAYERS}
    params = {}
    keys = jax.random.split(key, len(dims))
    for k, (name, (din, dout)) in zip(keys, dims.items()):
        w, b = make_linear_params(k, din, dout)
        entry = dict(w=w, b=b)
        if use_bn[name]:
            g, be = make_bn_params(dout)
            entry.update(gamma=g, beta=be)
        params[name] = entry
    return params


# ---------------------------------------------------------------------------
# Pure-JAX reference: faithful PyTorch semantics (Linear bias kept for every
# layer, two-pass BN variance), same bf16-weight / f32-accumulate precision
# contract. Agreement with the kernel also validates the bias-cancellation and
# one-pass-variance rewrites.
# ---------------------------------------------------------------------------
def myvae_forward_ref(params, x):
    y = x
    s = None
    for name, use_bn, use_relu, _ in _LAYERS:
        p = params[name]
        z = jnp.dot(y.astype(jnp.bfloat16), p["w"],
                    preferred_element_type=jnp.float32) + p["b"]
        if use_bn:
            mean = jnp.mean(z, axis=0, keepdims=True)
            var = jnp.mean(jnp.square(z - mean), axis=0, keepdims=True)
            z = p["gamma"] * (z - mean) * lax.rsqrt(var + BN_EPS) + p["beta"]
        if use_relu:
            z = jnp.maximum(z, 0.0)
        if name == "fcs":
            s = z
        y = z
    return s, y


if __name__ == "__main__":
    # Small, forward-consistent shapes (input_dim and n_dim divisible by 5).
    # At B=8 the kernel is latency-bound; throughput scales with B up to
    # ~128 (v5e) / ~256 (v6e/v7x) rows in the same single block.
    batch = 8
    input_dim = 640   # input_dim // 5 = 128
    n_dim = 320       # n_dim // 5 = 64
    latent_dim = 32

    key = jax.random.PRNGKey(0)
    kp, kx = jax.random.split(key)
    params = init_myvae_params(kp, latent_dim, input_dim, n_dim)
    packed_vec = pack_small_vectors(params)   # packed once, one DMA per call
    x = jax.random.normal(kx, (batch, input_dim), jnp.float32)

    fwd = jax.jit(myvae_forward)
    s, recon = fwd(params, packed_vec, x)
    jax.block_until_ready((s, recon))

    s_ref, recon_ref = myvae_forward_ref(params, x)
    assert s.shape == (batch, latent_dim) and recon.shape == (batch, input_dim)
    assert jnp.allclose(s, s_ref, atol=5e-3, rtol=5e-3)
    assert jnp.allclose(recon, recon_ref, atol=5e-3, rtol=5e-3)

    print("KERNEL_OK")
</pallas_src>

<mosaic_0001>
module attributes {stable_mosaic.version = 11 : i64} {
  func.func @_vae_kernel(%arg0: i32, %arg1: memref<8x640xf32, #tpu.memory_space<vmem>>, %arg2: memref<1x4480xf32, #tpu.memory_space<vmem>>, %arg3: memref<640x128xbf16, #tpu.memory_space<vmem>>, %arg4: memref<128x128xbf16, #tpu.memory_space<vmem>>, %arg5: memref<128x320xbf16, #tpu.memory_space<vmem>>, %arg6: memref<320x320xbf16, #tpu.memory_space<any>>, %arg7: memref<320x64xbf16, #tpu.memory_space<vmem>>, %arg8: memref<64x32xbf16, #tpu.memory_space<vmem>>, %arg9: memref<32x64xbf16, #tpu.memory_space<vmem>>, %arg10: memref<64x320xbf16, #tpu.memory_space<vmem>>, %arg11: memref<320x320xbf16, #tpu.memory_space<any>>, %arg12: memref<320x128xbf16, #tpu.memory_space<any>>, %arg13: memref<128x128xbf16, #tpu.memory_space<vmem>>, %arg14: memref<128x640xbf16, #tpu.memory_space<any>>, %arg15: memref<8x32xf32, #tpu.memory_space<vmem>>, %arg16: memref<8x640xf32, #tpu.memory_space<vmem>>, %arg17: memref<320x320xbf16, #tpu.memory_space<vmem>>, %arg18: memref<320x320xbf16, #tpu.memory_space<vmem>>, %arg19: memref<320x128xbf16, #tpu.memory_space<vmem>>, %arg20: memref<128x640xbf16, #tpu.memory_space<vmem>>, %arg21: memref<4x!tpu.dma_semaphore, #tpu.memory_space<semaphore_mem>>) attributes {dimension_semantics = [#tpu.dimension_semantics<arbitrary>], iteration_bounds = array<i64: 1>, scalar_prefetch = 0 : i64, scratch_operands = 5 : i64, tpu.core_type = #tpu.core_type<tc>, window_params = [{pipeline_mode = #tpu.pipeline_mode<synchronous>, transform_indices = @transform_0, window_bounds = array<i64: 8, 640>}, {pipeline_mode = #tpu.pipeline_mode<synchronous>, transform_indices = @transform_1, window_bounds = array<i64: 1, 4480>}, {pipeline_mode = #tpu.pipeline_mode<synchronous>, transform_indices = @transform_2, window_bounds = array<i64: 640, 128>}, {pipeline_mode = #tpu.pipeline_mode<synchronous>, transform_indices = @transform_3, window_bounds = array<i64: 128, 128>}, {pipeline_mode = #tpu.pipeline_mode<synchronous>, transform_indices = @transform_4, window_bounds = array<i64: 128, 320>}, {}, {pipeline_mode = #tpu.pipeline_mode<synchronous>, transform_indices = @transform_6, window_bounds = array<i64: 320, 64>}, {pipeline_mode = #tpu.pipeline_mode<synchronous>, transform_indices = @transform_7, window_bounds = array<i64: 64, 32>}, {pipeline_mode = #tpu.pipeline_mode<synchronous>, transform_indices = @transform_8, window_bounds = array<i64: 32, 64>}, {pipeline_mode = #tpu.pipeline_mode<synchronous>, transform_indices = @transform_9, window_bounds = array<i64: 64, 320>}, {}, {}, {pipeline_mode = #tpu.pipeline_mode<synchronous>, transform_indices = @transform_12, window_bounds = array<i64: 128, 128>}, {}, {pipeline_mode = #tpu.pipeline_mode<synchronous>, transform_indices = @transform_14, window_bounds = array<i64: 8, 32>}, {pipeline_mode = #tpu.pipeline_mode<synchronous>, transform_indices = @transform_15, window_bounds = array<i64: 8, 640>}]} {
    %c0_i32 = arith.constant 0 : i32
    %0 = tpu.memref_slice %arg21[%c0_i32] : memref<4x!tpu.dma_semaphore, #tpu.memory_space<semaphore_mem>> -> memref<1x!tpu.dma_semaphore, #tpu.memory_space<semaphore_mem>>
    %1 = tpu.memref_squeeze %0 : memref<1x!tpu.dma_semaphore, #tpu.memory_space<semaphore_mem>> -> memref<!tpu.dma_semaphore, #tpu.memory_space<semaphore_mem>>
    tpu.enqueue_dma source(%arg6 : memref<320x320xbf16, #tpu.memory_space<any>>) target(%arg17 : memref<320x320xbf16, #tpu.memory_space<vmem>>) target_semaphore(%1 : memref<!tpu.dma_semaphore, #tpu.memory_space<semaphore_mem>>)
    %c1_i32 = arith.constant 1 : i32
    %2 = tpu.memref_slice %arg21[%c1_i32] : memref<4x!tpu.dma_semaphore, #tpu.memory_space<semaphore_mem>> -> memref<1x!tpu.dma_semaphore, #tpu.memory_space<semaphore_mem>>
    %3 = tpu.memref_squeeze %2 : memref<1x!tpu.dma_semaphore, #tpu.memory_space<semaphore_mem>> -> memref<!tpu.dma_semaphore, #tpu.memory_space<semaphore_mem>>
    tpu.enqueue_dma source(%arg11 : memref<320x320xbf16, #tpu.memory_space<any>>) target(%arg18 : memref<320x320xbf16, #tpu.memory_space<vmem>>) target_semaphore(%3 : memref<!tpu.dma_semaphore, #tpu.memory_space<semaphore_mem>>)
    %c2_i32 = arith.constant 2 : i32
    %4 = tpu.memref_slice %arg21[%c2_i32] : memref<4x!tpu.dma_semaphore, #tpu.memory_space<semaphore_mem>> -> memref<1x!tpu.dma_semaphore, #tpu.memory_space<semaphore_mem>>
    %5 = tpu.memref_squeeze %4 : memref<1x!tpu.dma_semaphore, #tpu.memory_space<semaphore_mem>> -> memref<!tpu.dma_semaphore, #tpu.memory_space<semaphore_mem>>
    tpu.enqueue_dma source(%arg12 : memref<320x128xbf16, #tpu.memory_space<any>>) target(%arg19 : memref<320x128xbf16, #tpu.memory_space<vmem>>) target_semaphore(%5 : memref<!tpu.dma_semaphore, #tpu.memory_space<semaphore_mem>>)
    %c3_i32 = arith.constant 3 : i32
    %6 = tpu.memref_slice %arg21[%c3_i32] : memref<4x!tpu.dma_semaphore, #tpu.memory_space<semaphore_mem>> -> memref<1x!tpu.dma_semaphore, #tpu.memory_space<semaphore_mem>>
    %7 = tpu.memref_squeeze %6 : memref<1x!tpu.dma_semaphore, #tpu.memory_space<semaphore_mem>> -> memref<!tpu.dma_semaphore, #tpu.memory_space<semaphore_mem>>
    tpu.enqueue_dma source(%arg14 : memref<128x640xbf16, #tpu.memory_space<any>>) target(%arg20 : memref<128x640xbf16, #tpu.memory_space<vmem>>) target_semaphore(%7 : memref<!tpu.dma_semaphore, #tpu.memory_space<semaphore_mem>>)
    %c0 = arith.constant 0 : index
    %c0_0 = arith.constant 0 : index
    %8 = vector.load %arg1[%c0, %c0_0] : memref<8x640xf32, #tpu.memory_space<vmem>>, vector<8x640xf32>
    %c0_1 = arith.constant 0 : index
    %c0_2 = arith.constant 0 : index
    %9 = vector.load %arg3[%c0_1, %c0_2] : memref<640x128xbf16, #tpu.memory_space<vmem>>, vector<640x128xbf16>
    %10 = arith.truncf %8 : vector<8x640xf32> to vector<8x640xbf16>
    %cst = arith.constant dense<0.000000e+00> : vector<8x128xf32>
    %11 = tpu.matmul %10, %9, %cst {dimension_numbers = #tpu.dot_dimension_numbers<[1], [0], [0], [1], [0, 0, 1, 1], [], []>} : vector<8x640xbf16>, vector<640x128xbf16>, vector<8x128xf32> -> vector<8x128xf32>
    %c0_3 = arith.constant 0 : index
    %c0_4 = arith.constant 0 : index
    %12 = vector.load %arg2[%c0_3, %c0_4] : memref<1x4480xf32, #tpu.memory_space<vmem>>, vector<1x128xf32>
    %13 = vector.broadcast %12 : vector<1x128xf32> to vector<8x128xf32>
    %14 = arith.addf %11, %13 : vector<8x128xf32>
    %cst_5 = arith.constant 0.000000e+00 : f32
    %15 = vector.broadcast %cst_5 : f32 to vector<8x128xf32>
    %16 = arith.maximumf %14, %15 : vector<8x128xf32>
    %c0_6 = arith.constant 0 : index
    %c0_7 = arith.constant 0 : index
    %17 = vector.load %arg4[%c0_6, %c0_7] : memref<128x128xbf16, #tpu.memory_space<vmem>>, vector<128x128xbf16>
    %18 = arith.truncf %16 : vector<8x128xf32> to vector<8x128xbf16>
    %cst_8 = arith.constant dense<0.000000e+00> : vector<8x128xf32>
    %19 = tpu.matmul %18, %17, %cst_8 {dimension_numbers = #tpu.dot_dimension_numbers<[1], [0], [0], [1], [0, 0, 1, 1], [], []>} : vector<8x128xbf16>, vector<128x128xbf16>, vector<8x128xf32> -> vector<8x128xf32>
    %c0_9 = arith.constant 0 : index
    %c128 = arith.constant 128 : index
    %20 = vector.load %arg2[%c0_9, %c128] : memref<1x4480xf32, #tpu.memory_space<vmem>>, vector<1x128xf32>
    %21 = vector.broadcast %20 : vector<1x128xf32> to vector<8x128xf32>
    %22 = arith.addf %19, %21 : vector<8x128xf32>
    %cst_10 = arith.constant 0.000000e+00 : f32
    %23 = vector.broadcast %cst_10 : f32 to vector<8x128xf32>
    %24 = arith.maximumf %22, %23 : vector<8x128xf32>
    %c0_11 = arith.constant 0 : index
    %c0_12 = arith.constant 0 : index
    %25 = vector.load %arg5[%c0_11, %c0_12] : memref<128x320xbf16, #tpu.memory_space<vmem>>, vector<128x320xbf16>
    %26 = arith.truncf %24 : vector<8x128xf32> to vector<8x128xbf16>
    %cst_13 = arith.constant dense<0.000000e+00> : vector<8x320xf32>
    %27 = tpu.matmul %26, %25, %cst_13 {dimension_numbers = #tpu.dot_dimension_numbers<[1], [0], [0], [1], [0, 0, 1, 1], [], []>} : vector<8x128xbf16>, vector<128x320xbf16>, vector<8x320xf32> -> vector<8x320xf32>
    %c0_14 = arith.constant 0 : index
    %c256 = arith.constant 256 : index
    %28 = vector.load %arg2[%c0_14, %c256] : memref<1x4480xf32, #tpu.memory_space<vmem>>, vector<1x320xf32>
    %29 = vector.broadcast %28 : vector<1x320xf32> to vector<8x320xf32>
    %30 = arith.addf %27, %29 : vector<8x320xf32>
    %cst_15 = arith.constant 0.000000e+00 : f32
    %31 = vector.broadcast %cst_15 : f32 to vector<8x320xf32>
    %32 = arith.maximumf %30, %31 : vector<8x320xf32>
    %c0_i32_16 = arith.constant 0 : i32
    %33 = tpu.memref_slice %arg21[%c0_i32_16] : memref<4x!tpu.dma_semaphore, #tpu.memory_space<semaphore_mem>> -> memref<1x!tpu.dma_semaphore, #tpu.memory_space<semaphore_mem>>
    %34 = tpu.memref_squeeze %33 : memref<1x!tpu.dma_semaphore, #tpu.memory_space<semaphore_mem>> -> memref<!tpu.dma_semaphore, #tpu.memory_space<semaphore_mem>>
    tpu.wait_dma2 semaphore(%34 : memref<!tpu.dma_semaphore, #tpu.memory_space<semaphore_mem>>) src(%arg6 : memref<320x320xbf16, #tpu.memory_space<any>>) dst(%arg17 : memref<320x320xbf16, #tpu.memory_space<vmem>>)
    %c0_17 = arith.constant 0 : index
    %c0_18 = arith.constant 0 : index
    %35 = vector.load %arg17[%c0_17, %c0_18] : memref<320x320xbf16, #tpu.memory_space<vmem>>, vector<320x320xbf16>
    %36 = arith.truncf %32 : vector<8x320xf32> to vector<8x320xbf16>
    %cst_19 = arith.constant dense<0.000000e+00> : vector<8x320xf32>
    %37 = tpu.matmul %36, %35, %cst_19 {dimension_numbers = #tpu.dot_dimension_numbers<[1], [0], [0], [1], [0, 0, 1, 1], [], []>} : vector<8x320xbf16>, vector<320x320xbf16>, vector<8x320xf32> -> vector<8x320xf32>
    %c0_20 = arith.constant 0 : index
    %c640 = arith.constant 640 : index
    %38 = vector.load %arg2[%c0_20, %c640] : memref<1x4480xf32, #tpu.memory_space<vmem>>, vector<1x320xf32>
    %39 = vector.broadcast %38 : vector<1x320xf32> to vector<8x320xf32>
    %40 = arith.addf %37, %39 : vector<8x320xf32>
    %cst_21 = arith.constant 0.000000e+00 : f32
    %41 = vector.broadcast %cst_21 : f32 to vector<8x320xf32>
    %42 = arith.maximumf %40, %41 : vector<8x320xf32>
    %c0_22 = arith.constant 0 : index
    %c0_23 = arith.constant 0 : index
    %43 = vector.load %arg7[%c0_22, %c0_23] : memref<320x64xbf16, #tpu.memory_space<vmem>>, vector<320x64xbf16>
    %44 = arith.truncf %42 : vector<8x320xf32> to vector<8x320xbf16>
    %cst_24 = arith.constant dense<0.000000e+00> : vector<8x64xf32>
    %45 = tpu.matmul %44, %43, %cst_24 {dimension_numbers = #tpu.dot_dimension_numbers<[1], [0], [0], [1], [0, 0, 1, 1], [], []>} : vector<8x320xbf16>, vector<320x64xbf16>, vector<8x64xf32> -> vector<8x64xf32>
    %cst_25 = arith.constant dense<0.000000e+00> : vector<64xf32>
    %46 = vector.multi_reduction <add>, %45, %cst_25 [0] : vector<8x64xf32> to vector<64xf32>
    %47 = vector.shape_cast %46 : vector<64xf32> to vector<1x64xf32>
    %cst_26 = arith.constant 8.000000e+00 : f32
    %48 = vector.broadcast %cst_26 : f32 to vector<1x64xf32>
    %49 = arith.divf %47, %48 : vector<1x64xf32>
    %50 = arith.mulf %45, %45 : vector<8x64xf32>
    %cst_27 = arith.constant dense<0.000000e+00> : vector<64xf32>
    %51 = vector.multi_reduction <add>, %50, %cst_27 [0] : vector<8x64xf32> to vector<64xf32>
    %52 = vector.shape_cast %51 : vector<64xf32> to vector<1x64xf32>
    %cst_28 = arith.constant 8.000000e+00 : f32
    %53 = vector.broadcast %cst_28 : f32 to vector<1x64xf32>
    %54 = arith.divf %52, %53 : vector<1x64xf32>
    %55 = arith.mulf %49, %49 : vector<1x64xf32>
    %56 = arith.subf %54, %55 : vector<1x64xf32>
    %c0_29 = arith.constant 0 : index
    %c1024 = arith.constant 1024 : index
    %57 = vector.load %arg2[%c0_29, %c1024] : memref<1x4480xf32, #tpu.memory_space<vmem>>, vector<1x64xf32>
    %c0_30 = arith.constant 0 : index
    %c1152 = arith.constant 1152 : index
    %58 = vector.load %arg2[%c0_30, %c1152] : memref<1x4480xf32, #tpu.memory_space<vmem>>, vector<1x64xf32>
    %cst_31 = arith.constant 9.99999974E-6 : f32
    %59 = vector.broadcast %cst_31 : f32 to vector<1x64xf32>
    %60 = arith.addf %56, %59 : vector<1x64xf32>
    %61 = math.rsqrt %60 : vector<1x64xf32>
    %62 = arith.mulf %57, %61 : vector<1x64xf32>
    %63 = arith.mulf %49, %62 : vector<1x64xf32>
    %64 = arith.subf %58, %63 : vector<1x64xf32>
    %65 = vector.broadcast %62 : vector<1x64xf32> to vector<8x64xf32>
    %66 = arith.mulf %45, %65 : vector<8x64xf32>
    %67 = vector.broadcast %64 : vector<1x64xf32> to vector<8x64xf32>
    %68 = arith.addf %66, %67 : vector<8x64xf32>
    %cst_32 = arith.constant 0.000000e+00 : f32
    %69 = vector.broadcast %cst_32 : f32 to vector<8x64xf32>
    %70 = arith.maximumf %68, %69 : vector<8x64xf32>
    %c0_33 = arith.constant 0 : index
    %c0_34 = arith.constant 0 : index
    %71 = vector.load %arg8[%c0_33, %c0_34] : memref<64x32xbf16, #tpu.memory_space<vmem>>, vector<64x32xbf16>
    %72 = arith.truncf %70 : vector<8x64xf32> to vector<8x64xbf16>
    %cst_35 = arith.constant dense<0.000000e+00> : vector<8x32xf32>
    %73 = tpu.matmul %72, %71, %cst_35 {dimension_numbers = #tpu.dot_dimension_numbers<[1], [0], [0], [1], [0, 0, 1, 1], [], []>} : vector<8x64xbf16>, vector<64x32xbf16>, vector<8x32xf32> -> vector<8x32xf32>
    %cst_36 = arith.constant dense<0.000000e+00> : vector<32xf32>
    %74 = vector.multi_reduction <add>, %73, %cst_36 [0] : vector<8x32xf32> to vector<32xf32>
    %75 = vector.shape_cast %74 : vector<32xf32> to vector<1x32xf32>
    %cst_37 = arith.constant 8.000000e+00 : f32
    %76 = vector.broadcast %cst_37 : f32 to vector<1x32xf32>
    %77 = arith.divf %75, %76 : vector<1x32xf32>
    %78 = arith.mulf %73, %73 : vector<8x32xf32>
    %cst_38 = arith.constant dense<0.000000e+00> : vector<32xf32>
    %79 = vector.multi_reduction <add>, %78, %cst_38 [0] : vector<8x32xf32> to vector<32xf32>
    %80 = vector.shape_cast %79 : vector<32xf32> to vector<1x32xf32>
    %cst_39 = arith.constant 8.000000e+00 : f32
    %81 = vector.broadcast %cst_39 : f32 to vector<1x32xf32>
    %82 = arith.divf %80, %81 : vector<1x32xf32>
    %83 = arith.mulf %77, %77 : vector<1x32xf32>
    %84 = arith.subf %82, %83 : vector<1x32xf32>
    %c0_40 = arith.constant 0 : index
    %c1280 = arith.constant 1280 : index
    %85 = vector.load %arg2[%c0_40, %c1280] : memref<1x4480xf32, #tpu.memory_space<vmem>>, vector<1x32xf32>
    %c0_41 = arith.constant 0 : index
    %c1408 = arith.constant 1408 : index
    %86 = vector.load %arg2[%c0_41, %c1408] : memref<1x4480xf32, #tpu.memory_space<vmem>>, vector<1x32xf32>
    %cst_42 = arith.constant 9.99999974E-6 : f32
    %87 = vector.broadcast %cst_42 : f32 to vector<1x32xf32>
    %88 = arith.addf %84, %87 : vector<1x32xf32>
    %89 = math.rsqrt %88 : vector<1x32xf32>
    %90 = arith.mulf %85, %89 : vector<1x32xf32>
    %91 = arith.mulf %77, %90 : vector<1x32xf32>
    %92 = arith.subf %86, %91 : vector<1x32xf32>
    %93 = vector.broadcast %90 : vector<1x32xf32> to vector<8x32xf32>
    %94 = arith.mulf %73, %93 : vector<8x32xf32>
    %95 = vector.broadcast %92 : vector<1x32xf32> to vector<8x32xf32>
    %96 = arith.addf %94, %95 : vector<8x32xf32>
    %c0_43 = arith.constant 0 : index
    %c0_44 = arith.constant 0 : index
    %97 = vector.load %arg15[%c0_43, %c0_44] : memref<8x32xf32, #tpu.memory_space<vmem>>, vector<8x32xf32>
    tpu.vector_store %arg15[%c0_43, %c0_44], %96 {strides = array<i32>} : memref<8x32xf32, #tpu.memory_space<vmem>>, vector<8x32xf32>,
    %c0_45 = arith.constant 0 : index
    %c0_46 = arith.constant 0 : index
    %98 = vector.load %arg9[%c0_45, %c0_46] : memref<32x64xbf16, #tpu.memory_space<vmem>>, vector<32x64xbf16>
    %99 = arith.truncf %96 : vector<8x32xf32> to vector<8x32xbf16>
    %cst_47 = arith.constant dense<0.000000e+00> : vector<8x64xf32>
    %100 = tpu.matmul %99, %98, %cst_47 {dimension_numbers = #tpu.dot_dimension_numbers<[1], [0], [0], [1], [0, 0, 1, 1], [], []>} : vector<8x32xbf16>, vector<32x64xbf16>, vector<8x64xf32> -> vector<8x64xf32>
    %cst_48 = arith.constant dense<0.000000e+00> : vector<64xf32>
    %101 = vector.multi_reduction <add>, %100, %cst_48 [0] : vector<8x64xf32> to vector<64xf32>
    %102 = vector.shape_cast %101 : vector<64xf32> to vector<1x64xf32>
    %cst_49 = arith.constant 8.000000e+00 : f32
    %103 = vector.broadcast %cst_49 : f32 to vector<1x64xf32>
    %104 = arith.divf %102, %103 : vector<1x64xf32>
    %105 = arith.mulf %100, %100 : vector<8x64xf32>
    %cst_50 = arith.constant dense<0.000000e+00> : vector<64xf32>
    %106 = vector.multi_reduction <add>, %105, %cst_50 [0] : vector<8x64xf32> to vector<64xf32>
    %107 = vector.shape_cast %106 : vector<64xf32> to vector<1x64xf32>
    %cst_51 = arith.constant 8.000000e+00 : f32
    %108 = vector.broadcast %cst_51 : f32 to vector<1x64xf32>
    %109 = arith.divf %107, %108 : vector<1x64xf32>
    %110 = arith.mulf %104, %104 : vector<1x64xf32>
    %111 = arith.subf %109, %110 : vector<1x64xf32>
    %c0_52 = arith.constant 0 : index
    %c1536 = arith.constant 1536 : index
    %112 = vector.load %arg2[%c0_52, %c1536] : memref<1x4480xf32, #tpu.memory_space<vmem>>, vector<1x64xf32>
    %c0_53 = arith.constant 0 : index
    %c1664 = arith.constant 1664 : index
    %113 = vector.load %arg2[%c0_53, %c1664] : memref<1x4480xf32, #tpu.memory_space<vmem>>, vector<1x64xf32>
    %cst_54 = arith.constant 9.99999974E-6 : f32
    %114 = vector.broadcast %cst_54 : f32 to vector<1x64xf32>
    %115 = arith.addf %111, %114 : vector<1x64xf32>
    %116 = math.rsqrt %115 : vector<1x64xf32>
    %117 = arith.mulf %112, %116 : vector<1x64xf32>
    %118 = arith.mulf %104, %117 : vector<1x64xf32>
    %119 = arith.subf %113, %118 : vector<1x64xf32>
    %120 = vector.broadcast %117 : vector<1x64xf32> to vector<8x64xf32>
    %121 = arith.mulf %100, %120 : vector<8x64xf32>
    %122 = vector.broadcast %119 : vector<1x64xf32> to vector<8x64xf32>
    %123 = arith.addf %121, %122 : vector<8x64xf32>
    %cst_55 = arith.constant 0.000000e+00 : f32
    %124 = vector.broadcast %cst_55 : f32 to vector<8x64xf32>
    %125 = arith.maximumf %123, %124 : vector<8x64xf32>
    %c0_56 = arith.constant 0 : index
    %c0_57 = arith.constant 0 : index
    %126 = vector.load %arg10[%c0_56, %c0_57] : memref<64x320xbf16, #tpu.memory_space<vmem>>, vector<64x320xbf16>
    %127 = arith.truncf %125 : vector<8x64xf32> to vector<8x64xbf16>
    %cst_58 = arith.constant dense<0.000000e+00> : vector<8x320xf32>
    %128 = tpu.matmul %127, %126, %cst_58 {dimension_numbers = #tpu.dot_dimension_numbers<[1], [0], [0], [1], [0, 0, 1, 1], [], []>} : vector<8x64xbf16>, vector<64x320xbf16>, vector<8x320xf32> -> vector<8x320xf32>
    %cst_59 = arith.constant dense<0.000000e+00> : vector<320xf32>
    %129 = vector.multi_reduction <add>, %128, %cst_59 [0] : vector<8x320xf32> to vector<320xf32>
    %130 = vector.shape_cast %129 : vector<320xf32> to vector<1x320xf32>
    %cst_60 = arith.constant 8.000000e+00 : f32
    %131 = vector.broadcast %cst_60 : f32 to vector<1x320xf32>
    %132 = arith.divf %130, %131 : vector<1x320xf32>
    %133 = arith.mulf %128, %128 : vector<8x320xf32>
    %cst_61 = arith.constant dense<0.000000e+00> : vector<320xf32>
    %134 = vector.multi_reduction <add>, %133, %cst_61 [0] : vector<8x320xf32> to vector<320xf32>
    %135 = vector.shape_cast %134 : vector<320xf32> to vector<1x320xf32>
    %cst_62 = arith.constant 8.000000e+00 : f32
    %136 = vector.broadcast %cst_62 : f32 to vector<1x320xf32>
    %137 = arith.divf %135, %136 : vector<1x320xf32>
    %138 = arith.mulf %132, %132 : vector<1x320xf32>
    %139 = arith.subf %137, %138 : vector<1x320xf32>
    %c0_63 = arith.constant 0 : index
    %c1792 = arith.constant 1792 : index
    %140 = vector.load %arg2[%c0_63, %c1792] : memref<1x4480xf32, #tpu.memory_space<vmem>>, vector<1x320xf32>
    %c0_64 = arith.constant 0 : index
    %c2176 = arith.constant 2176 : index
    %141 = vector.load %arg2[%c0_64, %c2176] : memref<1x4480xf32, #tpu.memory_space<vmem>>, vector<1x320xf32>
    %cst_65 = arith.constant 9.99999974E-6 : f32
    %142 = vector.broadcast %cst_65 : f32 to vector<1x320xf32>
    %143 = arith.addf %139, %142 : vector<1x320xf32>
    %144 = math.rsqrt %143 : vector<1x320xf32>
    %145 = arith.mulf %140, %144 : vector<1x320xf32>
    %146 = arith.mulf %132, %145 : vector<1x320xf32>
    %147 = arith.subf %141, %146 : vector<1x320xf32>
    %148 = vector.broadcast %145 : vector<1x320xf32> to vector<8x320xf32>
    %149 = arith.mulf %128, %148 : vector<8x320xf32>
    %150 = vector.broadcast %147 : vector<1x320xf32> to vector<8x320xf32>
    %151 = arith.addf %149, %150 : vector<8x320xf32>
    %cst_66 = arith.constant 0.000000e+00 : f32
    %152 = vector.broadcast %cst_66 : f32 to vector<8x320xf32>
    %153 = arith.maximumf %151, %152 : vector<8x320xf32>
    %c1_i32_67 = arith.constant 1 : i32
    %154 = tpu.memref_slice %arg21[%c1_i32_67] : memref<4x!tpu.dma_semaphore, #tpu.memory_space<semaphore_mem>> -> memref<1x!tpu.dma_semaphore, #tpu.memory_space<semaphore_mem>>
    %155 = tpu.memref_squeeze %154 : memref<1x!tpu.dma_semaphore, #tpu.memory_space<semaphore_mem>> -> memref<!tpu.dma_semaphore, #tpu.memory_space<semaphore_mem>>
    tpu.wait_dma2 semaphore(%155 : memref<!tpu.dma_semaphore, #tpu.memory_space<semaphore_mem>>) src(%arg11 : memref<320x320xbf16, #tpu.memory_space<any>>) dst(%arg18 : memref<320x320xbf16, #tpu.memory_space<vmem>>)
    %c0_68 = arith.constant 0 : index
    %c0_69 = arith.constant 0 : index
    %156 = vector.load %arg18[%c0_68, %c0_69] : memref<320x320xbf16, #tpu.memory_space<vmem>>, vector<320x320xbf16>
    %157 = arith.truncf %153 : vector<8x320xf32> to vector<8x320xbf16>
    %cst_70 = arith.constant dense<0.000000e+00> : vector<8x320xf32>
    %158 = tpu.matmul %157, %156, %cst_70 {dimension_numbers = #tpu.dot_dimension_numbers<[1], [0], [0], [1], [0, 0, 1, 1], [], []>} : vector<8x320xbf16>, vector<320x320xbf16>, vector<8x320xf32> -> vector<8x320xf32>
    %cst_71 = arith.constant dense<0.000000e+00> : vector<320xf32>
    %159 = vector.multi_reduction <add>, %158, %cst_71 [0] : vector<8x320xf32> to vector<320xf32>
    %160 = vector.shape_cast %159 : vector<320xf32> to vector<1x320xf32>
    %cst_72 = arith.constant 8.000000e+00 : f32
    %161 = vector.broadcast %cst_72 : f32 to vector<1x320xf32>
    %162 = arith.divf %160, %161 : vector<1x320xf32>
    %163 = arith.mulf %158, %158 : vector<8x320xf32>
    %cst_73 = arith.constant dense<0.000000e+00> : vector<320xf32>
    %164 = vector.multi_reduction <add>, %163, %cst_73 [0] : vector<8x320xf32> to vector<320xf32>
    %165 = vector.shape_cast %164 : vector<320xf32> to vector<1x320xf32>
    %cst_74 = arith.constant 8.000000e+00 : f32
    %166 = vector.broadcast %cst_74 : f32 to vector<1x320xf32>
    %167 = arith.divf %165, %166 : vector<1x320xf32>
    %168 = arith.mulf %162, %162 : vector<1x320xf32>
    %169 = arith.subf %167, %168 : vector<1x320xf32>
    %c0_75 = arith.constant 0 : index
    %c2560 = arith.constant 2560 : index
    %170 = vector.load %arg2[%c0_75, %c2560] : memref<1x4480xf32, #tpu.memory_space<vmem>>, vector<1x320xf32>
    %c0_76 = arith.constant 0 : index
    %c2944 = arith.constant 2944 : index
    %171 = vector.load %arg2[%c0_76, %c2944] : memref<1x4480xf32, #tpu.memory_space<vmem>>, vector<1x320xf32>
    %cst_77 = arith.constant 9.99999974E-6 : f32
    %172 = vector.broadcast %cst_77 : f32 to vector<1x320xf32>
    %173 = arith.addf %169, %172 : vector<1x320xf32>
    %174 = math.rsqrt %173 : vector<1x320xf32>
    %175 = arith.mulf %170, %174 : vector<1x320xf32>
    %176 = arith.mulf %162, %175 : vector<1x320xf32>
    %177 = arith.subf %171, %176 : vector<1x320xf32>
    %178 = vector.broadcast %175 : vector<1x320xf32> to vector<8x320xf32>
    %179 = arith.mulf %158, %178 : vector<8x320xf32>
    %180 = vector.broadcast %177 : vector<1x320xf32> to vector<8x320xf32>
    %181 = arith.addf %179, %180 : vector<8x320xf32>
    %cst_78 = arith.constant 0.000000e+00 : f32
    %182 = vector.broadcast %cst_78 : f32 to vector<8x320xf32>
    %183 = arith.maximumf %181, %182 : vector<8x320xf32>
    %c2_i32_79 = arith.constant 2 : i32
    %184 = tpu.memref_slice %arg21[%c2_i32_79] : memref<4x!tpu.dma_semaphore, #tpu.memory_space<semaphore_mem>> -> memref<1x!tpu.dma_semaphore, #tpu.memory_space<semaphore_mem>>
    %185 = tpu.memref_squeeze %184 : memref<1x!tpu.dma_semaphore, #tpu.memory_space<semaphore_mem>> -> memref<!tpu.dma_semaphore, #tpu.memory_space<semaphore_mem>>
    tpu.wait_dma2 semaphore(%185 : memref<!tpu.dma_semaphore, #tpu.memory_space<semaphore_mem>>) src(%arg12 : memref<320x128xbf16, #tpu.memory_space<any>>) dst(%arg19 : memref<320x128xbf16, #tpu.memory_space<vmem>>)
    %c0_80 = arith.constant 0 : index
    %c0_81 = arith.constant 0 : index
    %186 = vector.load %arg19[%c0_80, %c0_81] : memref<320x128xbf16, #tpu.memory_space<vmem>>, vector<320x128xbf16>
    %187 = arith.truncf %183 : vector<8x320xf32> to vector<8x320xbf16>
    %cst_82 = arith.constant dense<0.000000e+00> : vector<8x128xf32>
    %188 = tpu.matmul %187, %186, %cst_82 {dimension_numbers = #tpu.dot_dimension_numbers<[1], [0], [0], [1], [0, 0, 1, 1], [], []>} : vector<8x320xbf16>, vector<320x128xbf16>, vector<8x128xf32> -> vector<8x128xf32>
    %cst_83 = arith.constant dense<0.000000e+00> : vector<128xf32>
    %189 = vector.multi_reduction <add>, %188, %cst_83 [0] : vector<8x128xf32> to vector<128xf32>
    %190 = vector.shape_cast %189 : vector<128xf32> to vector<1x128xf32>
    %cst_84 = arith.constant 8.000000e+00 : f32
    %191 = vector.broadcast %cst_84 : f32 to vector<1x128xf32>
    %192 = arith.divf %190, %191 : vector<1x128xf32>
    %193 = arith.mulf %188, %188 : vector<8x128xf32>
    %cst_85 = arith.constant dense<0.000000e+00> : vector<128xf32>
    %194 = vector.multi_reduction <add>, %193, %cst_85 [0] : vector<8x128xf32> to vector<128xf32>
    %195 = vector.shape_cast %194 : vector<128xf32> to vector<1x128xf32>
    %cst_86 = arith.constant 8.000000e+00 : f32
    %196 = vector.broadcast %cst_86 : f32 to vector<1x128xf32>
    %197 = arith.divf %195, %196 : vector<1x128xf32>
    %198 = arith.mulf %192, %192 : vector<1x128xf32>
    %199 = arith.subf %197, %198 : vector<1x128xf32>
    %c0_87 = arith.constant 0 : index
    %c3328 = arith.constant 3328 : index
    %200 = vector.load %arg2[%c0_87, %c3328] : memref<1x4480xf32, #tpu.memory_space<vmem>>, vector<1x128xf32>
    %c0_88 = arith.constant 0 : index
    %c3456 = arith.constant 3456 : index
    %201 = vector.load %arg2[%c0_88, %c3456] : memref<1x4480xf32, #tpu.memory_space<vmem>>, vector<1x128xf32>
    %cst_89 = arith.constant 9.99999974E-6 : f32
    %202 = vector.broadcast %cst_89 : f32 to vector<1x128xf32>
    %203 = arith.addf %199, %202 : vector<1x128xf32>
    %204 = math.rsqrt %203 : vector<1x128xf32>
    %205 = arith.mulf %200, %204 : vector<1x128xf32>
    %206 = arith.mulf %192, %205 : vector<1x128xf32>
    %207 = arith.subf %201, %206 : vector<1x128xf32>
    %208 = vector.broadcast %205 : vector<1x128xf32> to vector<8x128xf32>
    %209 = arith.mulf %188, %208 : vector<8x128xf32>
    %210 = vector.broadcast %207 : vector<1x128xf32> to vector<8x128xf32>
    %211 = arith.addf %209, %210 : vector<8x128xf32>
    %cst_90 = arith.constant 0.000000e+00 : f32
    %212 = vector.broadcast %cst_90 : f32 to vector<8x128xf32>
    %213 = arith.maximumf %211, %212 : vector<8x128xf32>
    %c0_91 = arith.constant 0 : index
    %c0_92 = arith.constant 0 : index
    %214 = vector.load %arg13[%c0_91, %c0_92] : memref<128x128xbf16, #tpu.memory_space<vmem>>, vector<128x128xbf16>
    %215 = arith.truncf %213 : vector<8x128xf32> to vector<8x128xbf16>
    %cst_93 = arith.constant dense<0.000000e+00> : vector<8x128xf32>
    %216 = tpu.matmul %215, %214, %cst_93 {dimension_numbers = #tpu.dot_dimension_numbers<[1], [0], [0], [1], [0, 0, 1, 1], [], []>} : vector<8x128xbf16>, vector<128x128xbf16>, vector<8x128xf32> -> vector<8x128xf32>
    %cst_94 = arith.constant dense<0.000000e+00> : vector<128xf32>
    %217 = vector.multi_reduction <add>, %216, %cst_94 [0] : vector<8x128xf32> to vector<128xf32>
    %218 = vector.shape_cast %217 : vector<128xf32> to vector<1x128xf32>
    %cst_95 = arith.constant 8.000000e+00 : f32
    %219 = vector.broadcast %cst_95 : f32 to vector<1x128xf32>
    %220 = arith.divf %218, %219 : vector<1x128xf32>
    %221 = arith.mulf %216, %216 : vector<8x128xf32>
    %cst_96 = arith.constant dense<0.000000e+00> : vector<128xf32>
    %222 = vector.multi_reduction <add>, %221, %cst_96 [0] : vector<8x128xf32> to vector<128xf32>
    %223 = vector.shape_cast %222 : vector<128xf32> to vector<1x128xf32>
    %cst_97 = arith.constant 8.000000e+00 : f32
    %224 = vector.broadcast %cst_97 : f32 to vector<1x128xf32>
    %225 = arith.divf %223, %224 : vector<1x128xf32>
    %226 = arith.mulf %220, %220 : vector<1x128xf32>
    %227 = arith.subf %225, %226 : vector<1x128xf32>
    %c0_98 = arith.constant 0 : index
    %c3584 = arith.constant 3584 : index
    %228 = vector.load %arg2[%c0_98, %c3584] : memref<1x4480xf32, #tpu.memory_space<vmem>>, vector<1x128xf32>
    %c0_99 = arith.constant 0 : index
    %c3712 = arith.constant 3712 : index
    %229 = vector.load %arg2[%c0_99, %c3712] : memref<1x4480xf32, #tpu.memory_space<vmem>>, vector<1x128xf32>
    %cst_100 = arith.constant 9.99999974E-6 : f32
    %230 = vector.broadcast %cst_100 : f32 to vector<1x128xf32>
    %231 = arith.addf %227, %230 : vector<1x128xf32>
    %232 = math.rsqrt %231 : vector<1x128xf32>
    %233 = arith.mulf %228, %232 : vector<1x128xf32>
    %234 = arith.mulf %220, %233 : vector<1x128xf32>
    %235 = arith.subf %229, %234 : vector<1x128xf32>
    %236 = vector.broadcast %233 : vector<1x128xf32> to vector<8x128xf32>
    %237 = arith.mulf %216, %236 : vector<8x128xf32>
    %238 = vector.broadcast %235 : vector<1x128xf32> to vector<8x128xf32>
    %239 = arith.addf %237, %238 : vector<8x128xf32>
    %cst_101 = arith.constant 0.000000e+00 : f32
    %240 = vector.broadcast %cst_101 : f32 to vector<8x128xf32>
    %241 = arith.maximumf %239, %240 : vector<8x128xf32>
    %c3_i32_102 = arith.constant 3 : i32
    %242 = tpu.memref_slice %arg21[%c3_i32_102] : memref<4x!tpu.dma_semaphore, #tpu.memory_space<semaphore_mem>> -> memref<1x!tpu.dma_semaphore, #tpu.memory_space<semaphore_mem>>
    %243 = tpu.memref_squeeze %242 : memref<1x!tpu.dma_semaphore, #tpu.memory_space<semaphore_mem>> -> memref<!tpu.dma_semaphore, #tpu.memory_space<semaphore_mem>>
    tpu.wait_dma2 semaphore(%243 : memref<!tpu.dma_semaphore, #tpu.memory_space<semaphore_mem>>) src(%arg14 : memref<128x640xbf16, #tpu.memory_space<any>>) dst(%arg20 : memref<128x640xbf16, #tpu.memory_space<vmem>>)
    %c0_103 = arith.constant 0 : index
    %c0_104 = arith.constant 0 : index
    %244 = vector.load %arg20[%c0_103, %c0_104] : memref<128x640xbf16, #tpu.memory_space<vmem>>, vector<128x640xbf16>
    %245 = arith.truncf %241 : vector<8x128xf32> to vector<8x128xbf16>
    %cst_105 = arith.constant dense<0.000000e+00> : vector<8x640xf32>
    %246 = tpu.matmul %245, %244, %cst_105 {dimension_numbers = #tpu.dot_dimension_numbers<[1], [0], [0], [1], [0, 0, 1, 1], [], []>} : vector<8x128xbf16>, vector<128x640xbf16>, vector<8x640xf32> -> vector<8x640xf32>
    %c0_106 = arith.constant 0 : index
    %c3840 = arith.constant 3840 : index
    %247 = vector.load %arg2[%c0_106, %c3840] : memref<1x4480xf32, #tpu.memory_space<vmem>>, vector<1x640xf32>
    %248 = vector.broadcast %247 : vector<1x640xf32> to vector<8x640xf32>
    %249 = arith.addf %246, %248 : vector<8x640xf32>
    %cst_107 = arith.constant 0.000000e+00 : f32
    %250 = vector.broadcast %cst_107 : f32 to vector<8x640xf32>
    %251 = arith.maximumf %249, %250 : vector<8x640xf32>
    %c0_108 = arith.constant 0 : index
    %c0_109 = arith.constant 0 : index
    %252 = vector.load %arg16[%c0_108, %c0_109] : memref<8x640xf32, #tpu.memory_space<vmem>>, vector<8x640xf32>
    tpu.vector_store %arg16[%c0_108, %c0_109], %251 {strides = array<i32>} : memref<8x640xf32, #tpu.memory_space<vmem>>, vector<8x640xf32>,
    return
  }
  func.func @transform_0(%arg0: i32) -> (i32, i32) {
    %c0_i32 = arith.constant 0 : i32
    %c0_i32_0 = arith.constant 0 : i32
    %c0_i32_1 = arith.constant 0 : i32
    return %c0_i32, %c0_i32_0 : i32, i32
  }
  func.func @transform_1(%arg0: i32) -> (i32, i32) {
    %c0_i32 = arith.constant 0 : i32
    %c0_i32_0 = arith.constant 0 : i32
    %c0_i32_1 = arith.constant 0 : i32
    return %c0_i32, %c0_i32_0 : i32, i32
  }
  func.func @transform_2(%arg0: i32) -> (i32, i32) {
    %c0_i32 = arith.constant 0 : i32
    %c0_i32_0 = arith.constant 0 : i32
    %c0_i32_1 = arith.constant 0 : i32
    return %c0_i32, %c0_i32_0 : i32, i32
  }
  func.func @transform_3(%arg0: i32) -> (i32, i32) {
    %c0_i32 = arith.constant 0 : i32
    %c0_i32_0 = arith.constant 0 : i32
    %c0_i32_1 = arith.constant 0 : i32
    return %c0_i32, %c0_i32_0 : i32, i32
  }
  func.func @transform_4(%arg0: i32) -> (i32, i32) {
    %c0_i32 = arith.constant 0 : i32
    %c0_i32_0 = arith.constant 0 : i32
    %c0_i32_1 = arith.constant 0 : i32
    return %c0_i32, %c0_i32_0 : i32, i32
  }
  func.func @transform_6(%arg0: i32) -> (i32, i32) {
    %c0_i32 = arith.constant 0 : i32
    %c0_i32_0 = arith.constant 0 : i32
    %c0_i32_1 = arith.constant 0 : i32
    return %c0_i32, %c0_i32_0 : i32, i32
  }
  func.func @transform_7(%arg0: i32) -> (i32, i32) {
    %c0_i32 = arith.constant 0 : i32
    %c0_i32_0 = arith.constant 0 : i32
    %c0_i32_1 = arith.constant 0 : i32
    return %c0_i32, %c0_i32_0 : i32, i32
  }
  func.func @transform_8(%arg0: i32) -> (i32, i32) {
    %c0_i32 = arith.constant 0 : i32
    %c0_i32_0 = arith.constant 0 : i32
    %c0_i32_1 = arith.constant 0 : i32
    return %c0_i32, %c0_i32_0 : i32, i32
  }
  func.func @transform_9(%arg0: i32) -> (i32, i32) {
    %c0_i32 = arith.constant 0 : i32
    %c0_i32_0 = arith.constant 0 : i32
    %c0_i32_1 = arith.constant 0 : i32
    return %c0_i32, %c0_i32_0 : i32, i32
  }
  func.func @transform_12(%arg0: i32) -> (i32, i32) {
    %c0_i32 = arith.constant 0 : i32
    %c0_i32_0 = arith.constant 0 : i32
    %c0_i32_1 = arith.constant 0 : i32
    return %c0_i32, %c0_i32_0 : i32, i32
  }
  func.func @transform_14(%arg0: i32) -> (i32, i32) {
    %c0_i32 = arith.constant 0 : i32
    %c0_i32_0 = arith.constant 0 : i32
    %c0_i32_1 = arith.constant 0 : i32
    return %c0_i32, %c0_i32_0 : i32, i32
  }
  func.func @transform_15(%arg0: i32) -> (i32, i32) {
    %c0_i32 = arith.constant 0 : i32
    %c0_i32_0 = arith.constant 0 : i32
    %c0_i32_1 = arith.constant 0 : i32
    return %c0_i32, %c0_i32_0 : i32, i32
  }
}

</mosaic_0001>

<bundles_post_ra>
// kernel: myvae_forward.1
= control target key start
LH: loop header
LB: loop body
LE: loop exit
PB: predicated region body
PF: predicated region fallthrough
CT: control target
= control target key end

     0   :  { %21 = vsyncpa [#allocation8], 0  ;;  %s6455_s0 = inlined_call_operand.hbm [shape: f32[8,640], index: 0, kind: input, shape index: {}]   ;;  %s6456_s1 = inlined_call_operand.vmem [shape: f32[1,4480], index: 1, kind: input, shape index: {}]   ;;  %s6457_s2 = inlined_call_operand.hbm [shape: bf16[640,128], index: 2, kind: input, shape index: {}]   ;;  %s6458_s3 = inlined_call_operand.hbm [shape: bf16[128,128], index: 3, kind: input, shape index: {}]   ;;  %s6459_s4 = inlined_call_operand.vmem [shape: bf16[128,320], index: 4, kind: input, shape index: {}]   ;;  %s6460_s5 = inlined_call_operand.vmem [shape: bf16[320,320], index: 5, kind: input, shape index: {}]   ;;  %s6461_s6 = inlined_call_operand.vmem [shape: bf16[320,64], index: 6, kind: input, shape index: {}]   ;;  %s6462_s7 = inlined_call_operand.vmem [shape: bf16[64,32], index: 7, kind: input, shape index: {}]   ;;  %s6463_s8 = inlined_call_operand.hbm [shape: bf16[32,64], index: 8, kind: input, shape index: {}]   ;;  %s6464_s9 = inlined_call_operand.hbm [shape: bf16[64,320], index: 9, kind: input, shape index: {}]   ;;  %s6465_s10 = inlined_call_operand.hbm [shape: bf16[320,320], index: 10, kind: input, shape index: {}]   ;;  %s6466_s11 = inlined_call_operand.vmem [shape: bf16[320,128], index: 11, kind: input, shape index: {}]   ;;  %s6467_s12 = inlined_call_operand.hbm [shape: bf16[128,128], index: 12, kind: input, shape index: {}]   ;;  %s6468_s13 = inlined_call_operand.hbm [shape: bf16[128,640], index: 13, kind: input, shape index: {}]   ;;  %s6469_s14 = inlined_call_operand.hbm [shape: f32[8,32], index: 14, kind: output, shape index: {0}]   ;;  %s6470_s15 = inlined_call_operand.hbm [shape: f32[8,640], index: 15, kind: output, shape index: {1}]  }
   0x1   :  { %22 = vsyncpa [#allocation11], 0 }
   0x2   :  { %23 = vsyncpa [#allocation14], 0 }
   0x3   :  { %24 = vsyncpa [#allocation17], 0 }
   0x4   :  { %25 = vsyncpa [#allocation9], 0 }
   0x5   :  { %26 = vsyncpa [#allocation20], 0  ;;  %s5638_s18 = smov [#allocation10]  }
   0x6   :  { %s44_s19 = sshll.u32 %s5638_s18, 4  ;;  %s45_s19 = int_to_ptr.vmem [resolvable:$true] %s44_s19 }
   0x7   :  { %s5426_s20 = scalar_lea.vmem %s45_s19, 5120  ;;  %p5431_p1 = scmp.lt.s32.totalorder %s45_s19, %s45_s19 }
   0x8   :  { %p5427_p0 = scmp.ne.s32.totalorder %s45_s19, %s5426_s20  ;;  %p5432_p2 = scmp.lt.s32.totalorder %s5426_s20, %s5426_s20 }
   0xa   :  { %p5433_p3 = por %p5432_p2, %p5431_p1 }
   0xc   :  { %p5434_p4 = pnand %p5433_p3, %p5427_p0 }
   0xe   :  { %5437 = shalt.err (!%p5434_p4)
}
   0xf   :  { %s5639_s21 = smov 64   ;;  %s5640_s22 = smov 4  }
  0x10   :  { %50 = dma.hbm_to_vmem [thread:$0]  %s6457_s2, 5120, %s45_s19, [#allocation11], %s5639_s21, %s5639_s21, %s5640_s22  }
  0x11   :  { %s5641_s25 = smov [#allocation13]   ;;  %s5642_s27 = smov [#allocation7]  }
  0x12   :  { %s74_s26 = sshll.u32 %s5641_s25, 4  ;;  %s33_s28 = sshll.u32 %s5642_s27, 4  ;;  %s75_s26 = int_to_ptr.vmem [resolvable:$true] %s74_s26  ;;  %s34_s28 = int_to_ptr.vmem [resolvable:$true] %s33_s28 }
  0x13   :  { %s5446_s29 = scalar_lea.vmem %s75_s26, 256  ;;  %p5451_p6 = scmp.lt.s32.totalorder %s75_s26, %s75_s26 }
  0x14   :  { %p5447_p5 = scmp.ne.s32.totalorder %s75_s26, %s5446_s29  ;;  %p5452_p7 = scmp.lt.s32.totalorder %s5446_s29, %s5446_s29 }
  0x16   :  { %p5453_p8 = por %p5452_p7, %p5451_p6 }
  0x18   :  { %p5454_p9 = pnand %p5453_p8, %p5447_p5 }
  0x1a   :  { %5457 = shalt.err (!%p5454_p9)
}
  0x1b   :  { %80 = dma.hbm_to_vmem [thread:$0]  %s6463_s8, 256, %s75_s26, [#allocation14], %s5639_s21, %s5639_s21, %s5640_s22  }
  0x1c   :  { %s5466_s2 = scalar_lea.vmem %s34_s28, 640  ;;  %p5471_p11 = scmp.lt.s32.totalorder %s34_s28, %s34_s28 }
  0x1d   :  { %p5467_p10 = scmp.ne.s32.totalorder %s34_s28, %s5466_s2  ;;  %p5472_p12 = scmp.lt.s32.totalorder %s5466_s2, %s5466_s2 }
  0x1f   :  { %p5473_p13 = por %p5472_p12, %p5471_p11 }
  0x21   :  { %p5474_p0 = pnand %p5473_p13, %p5467_p10 }
  0x23   :  { %5477 = shalt.err (!%p5474_p0)
}
  0x24   :  { %36 = dma.hbm_to_vmem [thread:$0]  %s6455_s0, 640, %s34_s28, [#allocation8]  }
  0x25   :  { %s5643_s19 = smov [#allocation12]   ;;  %s5644_s23 = smov [#allocation15]  }
  0x26   :  { %s56_s20 = sshll.u32 %s5643_s19, 4  ;;  %s86_s24 = sshll.u32 %s5644_s23, 4  ;;  %s57_s20 = int_to_ptr.vmem [resolvable:$true] %s56_s20  ;;  %s87_s24 = int_to_ptr.vmem [resolvable:$true] %s86_s24 }
  0x27   :  { %s5486_s25 = scalar_lea.vmem %s57_s20, 1024  ;;  %p5491_p2 = scmp.lt.s32.totalorder %s57_s20, %s57_s20 }
  0x28   :  { %p5487_p1 = scmp.ne.s32.totalorder %s57_s20, %s5486_s25  ;;  %p5492_p3 = scmp.lt.s32.totalorder %s5486_s25, %s5486_s25 }
  0x2a   :  { %p5493_p4 = por %p5492_p3, %p5491_p2 }
  0x2c   :  { %p5494_p5 = pnand %p5493_p4, %p5487_p1 }
  0x2e   :  { %5497 = shalt.err (!%p5494_p5)
}
  0x2f   :  { %62 = dma.hbm_to_vmem [thread:$0]  %s6458_s3, 1024, %s57_s20, [#allocation11], %s5639_s21, %s5639_s21, %s5640_s22  }
  0x30   :  { %s5506_s0 = scalar_lea.vmem %s87_s24, 1536  ;;  %p5511_p7 = scmp.lt.s32.totalorder %s87_s24, %s87_s24 }
  0x31   :  { %p5507_p6 = scmp.ne.s32.totalorder %s87_s24, %s5506_s0  ;;  %p5512_p8 = scmp.lt.s32.totalorder %s5506_s0, %s5506_s0 }
  0x33   :  { %p5513_p9 = por %p5512_p8, %p5511_p7 }
  0x35   :  { %p5514_p10 = pnand %p5513_p9, %p5507_p6 }
  0x37   :  { %5517 = shalt.err (!%p5514_p10)
}
  0x38   :  { %s5645_s27 = smov 192   ;;  %s5646_s28 = smov 12  }
  0x39   :  { %92 = dma.hbm_to_vmem [thread:$0]  %s6464_s9, 1536, %s87_s24, [#allocation14], %s5645_s27, %s5645_s27, %s5646_s28  }
  0x3a   :  { %s5647_s16 = smov [#allocation16]  }
  0x3b   :  { %s98_s2 = sshll.u32 %s5647_s16, 4  ;;  %s99_s2 = int_to_ptr.vmem [resolvable:$true] %s98_s2 }
  0x3c   :  { %s5526_s17 = scalar_lea.vmem %s99_s2, 1024  ;;  %p5531_p12 = scmp.lt.s32.totalorder %s99_s2, %s99_s2 }
  0x3d   :  { %p5527_p11 = scmp.ne.s32.totalorder %s99_s2, %s5526_s17  ;;  %p5532_p13 = scmp.lt.s32.totalorder %s5526_s17, %s5526_s17 }
  0x3f   :  { %p5533_p0 = por %p5532_p13, %p5531_p12 }
  0x41   :  { %p5534_p1 = pnand %p5533_p0, %p5527_p11 }
  0x43   :  { %5537 = shalt.err (!%p5534_p1)
}
  0x44   :  { %104 = dma.hbm_to_vmem [thread:$0]  %s6467_s12, 1024, %s99_s2, [#allocation17], %s5639_s21, %s5639_s21, %s5640_s22  }
  0x45   :  { %5618 = dma.done.wait [#allocation8], 640  }
  0x46   :  { %5619 = vsyncadd [#allocation8], 4294966656 }
  0x47   :  { %5620 = dma.done.wait [#allocation11], 6144  }
  0x48   :  { %5621 = vsyncadd [#allocation11], 4294961152 }
  0x49   :  { %5622 = dma.done.wait [#allocation14], 1792  }
  0x4a   :  { %5623 = vsyncadd [#allocation14], 4294965504 }
  0x4b   :  { %5624 = dma.done.wait [#allocation17], 1024  }
  0x4c   :  { %5625 = vsyncadd [#allocation17], 4294966272  ;;  %v157_v0 = vld [vmem:[%s6460_s5] sm:$0xff]  ;;  %v159_v1 = vld [vmem:[%s6460_s5 + $0x8] sm:$0xff] }
  0x4d   :  { %v161_v2 = vld [vmem:[%s6460_s5 + $0x10] sm:$0xff]  ;;  %158 = vst [vmem:[#allocation2] sm:$0xff] %v157_v0  ;;  %160 = vst [vmem:[#allocation2 + $0x8] sm:$0xff] %v159_v1  ;;  %v163_v3 = vld [vmem:[%s6460_s5 + $0x18] sm:$0xff] }
  0x4e   :  { %162 = vst [vmem:[#allocation2 + $0x10] sm:$0xff] %v161_v2  ;;  %v165_v4 = vld [vmem:[%s6460_s5 + $0x20] sm:$0xff]  ;;  %v167_v5 = vld [vmem:[%s6460_s5 + $0x28] sm:$0xff]  ;;  %164 = vst [vmem:[#allocation2 + $0x18] sm:$0xff] %v163_v3 }
  0x4f   :  { %166 = vst [vmem:[#allocation2 + $0x20] sm:$0xff] %v165_v4  ;;  %168 = vst [vmem:[#allocation2 + $0x28] sm:$0xff] %v167_v5  ;;  %v169_v6 = vld [vmem:[%s6460_s5 + $0x30] sm:$0xff]  ;;  %v171_v7 = vld [vmem:[%s6460_s5 + $0x38] sm:$0xff] }
  0x50   :  { %v173_v8 = vld [vmem:[%s6460_s5 + $0x40] sm:$0xff]  ;;  %170 = vst [vmem:[#allocation2 + $0x30] sm:$0xff] %v169_v6  ;;  %172 = vst [vmem:[#allocation2 + $0x38] sm:$0xff] %v171_v7  ;;  %v175_v9 = vld [vmem:[%s6460_s5 + $0x48] sm:$0xff] }
  0x51   :  { %174 = vst [vmem:[#allocation2 + $0x40] sm:$0xff] %v173_v8  ;;  %v177_v10 = vld [vmem:[%s6460_s5 + $0x50] sm:$0xff]  ;;  %v179_v11 = vld [vmem:[%s6460_s5 + $0x58] sm:$0xff]  ;;  %176 = vst [vmem:[#allocation2 + $0x48] sm:$0xff] %v175_v9 }
  0x52   :  { %178 = vst [vmem:[#allocation2 + $0x50] sm:$0xff] %v177_v10  ;;  %180 = vst [vmem:[#allocation2 + $0x58] sm:$0xff] %v179_v11  ;;  %v181_v12 = vld [vmem:[%s6460_s5 + $0x60] sm:$0xff]  ;;  %v183_v13 = vld [vmem:[%s6460_s5 + $0x68] sm:$0xff] }
  0x53   :  { %v185_v14 = vld [vmem:[%s6460_s5 + $0x70] sm:$0xff]  ;;  %182 = vst [vmem:[#allocation2 + $0x60] sm:$0xff] %v181_v12  ;;  %184 = vst [vmem:[#allocation2 + $0x68] sm:$0xff] %v183_v13  ;;  %v187_v15 = vld [vmem:[%s6460_s5 + $0x78] sm:$0xff] }
  0x54   :  { %186 = vst [vmem:[#allocation2 + $0x70] sm:$0xff] %v185_v14  ;;  %v189_v16 = vld [vmem:[%s6460_s5 + $0x80] sm:$0xff]  ;;  %v191_v17 = vld [vmem:[%s6460_s5 + $0x88] sm:$0xff]  ;;  %188 = vst [vmem:[#allocation2 + $0x78] sm:$0xff] %v187_v15 }
  0x55   :  { %190 = vst [vmem:[#allocation2 + $0x80] sm:$0xff] %v189_v16  ;;  %192 = vst [vmem:[#allocation2 + $0x88] sm:$0xff] %v191_v17  ;;  %v193_v18 = vld [vmem:[%s6460_s5 + $0x90] sm:$0xff]  ;;  %v195_v19 = vld [vmem:[%s6460_s5 + $0x98] sm:$0xff] }
  0x56   :  { %v197_v20 = vld [vmem:[%s6460_s5 + $0xa0] sm:$0xff]  ;;  %194 = vst [vmem:[#allocation2 + $0x90] sm:$0xff] %v193_v18  ;;  %196 = vst [vmem:[#allocation2 + $0x98] sm:$0xff] %v195_v19  ;;  %v199_v21 = vld [vmem:[%s6460_s5 + $0xa8] sm:$0xff] }
  0x57   :  { %198 = vst [vmem:[#allocation2 + $0xa0] sm:$0xff] %v197_v20  ;;  %v201_v22 = vld [vmem:[%s6460_s5 + $0xb0] sm:$0xff]  ;;  %v203_v23 = vld [vmem:[%s6460_s5 + $0xb8] sm:$0xff]  ;;  %200 = vst [vmem:[#allocation2 + $0xa8] sm:$0xff] %v199_v21 }
  0x58   :  { %202 = vst [vmem:[#allocation2 + $0xb0] sm:$0xff] %v201_v22  ;;  %204 = vst [vmem:[#allocation2 + $0xb8] sm:$0xff] %v203_v23  ;;  %v205_v24 = vld [vmem:[%s6460_s5 + $0xc0] sm:$0xff]  ;;  %v207_v25 = vld [vmem:[%s6460_s5 + $0xc8] sm:$0xff] }
  0x59   :  { %v209_v26 = vld [vmem:[%s6460_s5 + $0xd0] sm:$0xff]  ;;  %206 = vst [vmem:[#allocation2 + $0xc0] sm:$0xff] %v205_v24  ;;  %208 = vst [vmem:[#allocation2 + $0xc8] sm:$0xff] %v207_v25  ;;  %v211_v27 = vld [vmem:[%s6460_s5 + $0xd8] sm:$0xff] }
  0x5a   :  { %210 = vst [vmem:[#allocation2 + $0xd0] sm:$0xff] %v209_v26  ;;  %v213_v28 = vld [vmem:[%s6460_s5 + $0xe0] sm:$0xff]  ;;  %v215_v29 = vld [vmem:[%s6460_s5 + $0xe8] sm:$0xff]  ;;  %212 = vst [vmem:[#allocation2 + $0xd8] sm:$0xff] %v211_v27 }
  0x5b   :  { %214 = vst [vmem:[#allocation2 + $0xe0] sm:$0xff] %v213_v28  ;;  %216 = vst [vmem:[#allocation2 + $0xe8] sm:$0xff] %v215_v29  ;;  %v217_v30 = vld [vmem:[%s6460_s5 + $0xf0] sm:$0xff]  ;;  %v219_v31 = vld [vmem:[%s6460_s5 + $0xf8] sm:$0xff] }
  0x5c   :  { %v221_v32 = vld [vmem:[%s6460_s5 + $0x100] sm:$0xff]  ;;  %218 = vst [vmem:[#allocation2 + $0xf0] sm:$0xff] %v217_v30  ;;  %220 = vst [vmem:[#allocation2 + $0xf8] sm:$0xff] %v219_v31  ;;  %v223_v33 = vld [vmem:[%s6460_s5 + $0x108] sm:$0xff] }
  0x5d   :  { %222 = vst [vmem:[#allocation2 + $0x100] sm:$0xff] %v221_v32  ;;  %v225_v34 = vld [vmem:[%s6460_s5 + $0x110] sm:$0xff]  ;;  %v227_v35 = vld [vmem:[%s6460_s5 + $0x118] sm:$0xff]  ;;  %224 = vst [vmem:[#allocation2 + $0x108] sm:$0xff] %v223_v33 }
  0x5e   :  { %226 = vst [vmem:[#allocation2 + $0x110] sm:$0xff] %v225_v34  ;;  %228 = vst [vmem:[#allocation2 + $0x118] sm:$0xff] %v227_v35  ;;  %v229_v36 = vld [vmem:[%s6460_s5 + $0x120] sm:$0xff]  ;;  %v231_v37 = vld [vmem:[%s6460_s5 + $0x128] sm:$0xff] }
  0x5f   :  { %v233_v38 = vld [vmem:[%s6460_s5 + $0x130] sm:$0xff]  ;;  %230 = vst [vmem:[#allocation2 + $0x120] sm:$0xff] %v229_v36  ;;  %232 = vst [vmem:[#allocation2 + $0x128] sm:$0xff] %v231_v37  ;;  %v235_v39 = vld [vmem:[%s6460_s5 + $0x138] sm:$0xff] }
  0x60   :  { %234 = vst [vmem:[#allocation2 + $0x130] sm:$0xff] %v233_v38  ;;  %v237_v40 = vld [vmem:[%s6460_s5 + $0x140] sm:$0xff]  ;;  %v239_v41 = vld [vmem:[%s6460_s5 + $0x148] sm:$0xff]  ;;  %236 = vst [vmem:[#allocation2 + $0x138] sm:$0xff] %v235_v39 }
  0x61   :  { %238 = vst [vmem:[#allocation2 + $0x140] sm:$0xff] %v237_v40  ;;  %240 = vst [vmem:[#allocation2 + $0x148] sm:$0xff] %v239_v41  ;;  %v241_v42 = vld [vmem:[%s6460_s5 + $0x150] sm:$0xff]  ;;  %v243_v43 = vld [vmem:[%s6460_s5 + $0x158] sm:$0xff] }
  0x62   :  { %v245_v44 = vld [vmem:[%s6460_s5 + $0x160] sm:$0xff]  ;;  %242 = vst [vmem:[#allocation2 + $0x150] sm:$0xff] %v241_v42  ;;  %244 = vst [vmem:[#allocation2 + $0x158] sm:$0xff] %v243_v43  ;;  %v247_v45 = vld [vmem:[%s6460_s5 + $0x168] sm:$0xff] }
  0x63   :  { %246 = vst [vmem:[#allocation2 + $0x160] sm:$0xff] %v245_v44  ;;  %v249_v46 = vld [vmem:[%s6460_s5 + $0x170] sm:$0xff]  ;;  %v251_v47 = vld [vmem:[%s6460_s5 + $0x178] sm:$0xff]  ;;  %248 = vst [vmem:[#allocation2 + $0x168] sm:$0xff] %v247_v45 }
  0x64   :  { %250 = vst [vmem:[#allocation2 + $0x170] sm:$0xff] %v249_v46  ;;  %252 = vst [vmem:[#allocation2 + $0x178] sm:$0xff] %v251_v47  ;;  %v253_v48 = vld [vmem:[%s6460_s5 + $0x180] sm:$0xff]  ;;  %v255_v49 = vld [vmem:[%s6460_s5 + $0x188] sm:$0xff] }
  0x65   :  { %v257_v50 = vld [vmem:[%s6460_s5 + $0x190] sm:$0xff]  ;;  %254 = vst [vmem:[#allocation2 + $0x180] sm:$0xff] %v253_v48  ;;  %256 = vst [vmem:[#allocation2 + $0x188] sm:$0xff] %v255_v49  ;;  %v259_v51 = vld [vmem:[%s6460_s5 + $0x198] sm:$0xff] }
  0x66   :  { %258 = vst [vmem:[#allocation2 + $0x190] sm:$0xff] %v257_v50  ;;  %v261_v52 = vld [vmem:[%s6460_s5 + $0x1a0] sm:$0xff]  ;;  %v263_v53 = vld [vmem:[%s6460_s5 + $0x1a8] sm:$0xff]  ;;  %260 = vst [vmem:[#allocation2 + $0x198] sm:$0xff] %v259_v51 }
  0x67   :  { %262 = vst [vmem:[#allocation2 + $0x1a0] sm:$0xff] %v261_v52  ;;  %264 = vst [vmem:[#allocation2 + $0x1a8] sm:$0xff] %v263_v53  ;;  %v265_v54 = vld [vmem:[%s6460_s5 + $0x1b0] sm:$0xff]  ;;  %v267_v55 = vld [vmem:[%s6460_s5 + $0x1b8] sm:$0xff] }
  0x68   :  { %v269_v56 = vld [vmem:[%s6460_s5 + $0x1c0] sm:$0xff]  ;;  %266 = vst [vmem:[#allocation2 + $0x1b0] sm:$0xff] %v265_v54  ;;  %268 = vst [vmem:[#allocation2 + $0x1b8] sm:$0xff] %v267_v55  ;;  %v271_v57 = vld [vmem:[%s6460_s5 + $0x1c8] sm:$0xff] }
  0x69   :  { %270 = vst [vmem:[#allocation2 + $0x1c0] sm:$0xff] %v269_v56  ;;  %v273_v58 = vld [vmem:[%s6460_s5 + $0x1d0] sm:$0xff]  ;;  %v275_v59 = vld [vmem:[%s6460_s5 + $0x1d8] sm:$0xff]  ;;  %272 = vst [vmem:[#allocation2 + $0x1c8] sm:$0xff] %v271_v57 }
  0x6a   :  { %274 = vst [vmem:[#allocation2 + $0x1d0] sm:$0xff] %v273_v58  ;;  %276 = vst [vmem:[#allocation2 + $0x1d8] sm:$0xff] %v275_v59 }
  0x6b   :  { %284 = vsyncadd [#allocation6], 7680  ;;  %v331_v60 = vld [vmem:[%s6466_s11] sm:$0xff]  ;;  %v333_v61 = vld [vmem:[%s6466_s11 + $0x8] sm:$0xff]  ;;  %s5648_s3 = smov [#allocation3]  }
  0x6c   :  { %s293_s18 = sshll.u32 %s5648_s3, 4  ;;  %332 = vst [vmem:[#allocation4] sm:$0xff] %v331_v60  ;;  %334 = vst [vmem:[#allocation4 + $0x8] sm:$0xff] %v333_v61  ;;  %v335_v62 = vld [vmem:[%s6466_s11 + $0x10] sm:$0xff]  ;;  %v337_v63 = vld [vmem:[%s6466_s11 + $0x18] sm:$0xff]  ;;  %s294_s18 = int_to_ptr.vmem [resolvable:$true] %s293_s18 }
  0x6d   :  { %v339_v0 = vld [vmem:[%s6466_s11 + $0x20] sm:$0xff]  ;;  %336 = vst [vmem:[#allocation4 + $0x10] sm:$0xff] %v335_v62  ;;  %338 = vst [vmem:[#allocation4 + $0x18] sm:$0xff] %v337_v63  ;;  %v341_v1 = vld [vmem:[%s6466_s11 + $0x28] sm:$0xff]  ;;  %s5546_s0 = scalar_lea.vmem %s294_s18, 7680  ;;  %p5551_p3 = scmp.lt.s32.totalorder %s294_s18, %s294_s18 }
  0x6e   :  { %340 = vst [vmem:[#allocation4 + $0x20] sm:$0xff] %v339_v0  ;;  %v343_v2 = vld [vmem:[%s6466_s11 + $0x30] sm:$0xff]  ;;  %v345_v3 = vld [vmem:[%s6466_s11 + $0x38] sm:$0xff]  ;;  %p5547_p2 = scmp.ne.s32.totalorder %s294_s18, %s5546_s0  ;;  %p5552_p4 = scmp.lt.s32.totalorder %s5546_s0, %s5546_s0 }
  0x70   :  { %p5553_p5 = por %p5552_p4, %p5551_p3 }
  0x72   :  { %p5554_p6 = pnand %p5553_p5, %p5547_p2 }
  0x74   :  { %5557 = shalt.err (!%p5554_p6)  }
  0x75   :  { %296 = dma.hbm_to_vmem [thread:$0]  %s6465_s10, 7680, %s294_s18, [#allocation6 + $0x1]  ;;  %342 = vst [vmem:[#allocation4 + $0x28] sm:$0xff] %v341_v1  ;;  %344 = vst [vmem:[#allocation4 + $0x30] sm:$0xff] %v343_v2  ;;  %v347_v4 = vld [vmem:[%s6466_s11 + $0x40] sm:$0xff]  ;;  %v349_v5 = vld [vmem:[%s6466_s11 + $0x48] sm:$0xff] }
  0x76   :  { %346 = vst [vmem:[#allocation4 + $0x38] sm:$0xff] %v345_v3  ;;  %v351_v6 = vld [vmem:[%s6466_s11 + $0x50] sm:$0xff]  ;;  %348 = vst [vmem:[#allocation4 + $0x40] sm:$0xff] %v347_v4  ;;  %v353_v7 = vld [vmem:[%s6466_s11 + $0x58] sm:$0xff]  ;;  %v5649_v51 = vmov 0.0   ;;  %vm5650_vm0 = vmmov 0  }
  0x77   :  { %350 = vst [vmem:[#allocation4 + $0x48] sm:$0xff] %v349_v5  ;;  %352 = vst [vmem:[#allocation4 + $0x50] sm:$0xff] %v351_v6  ;;  %v355_v8 = vld [vmem:[%s6466_s11 + $0x60] sm:$0xff]  ;;  %v357_v9 = vld [vmem:[%s6466_s11 + $0x68] sm:$0xff] }
  0x78   :  { %354 = vst [vmem:[#allocation4 + $0x58] sm:$0xff] %v353_v7  ;;  %356 = vst [vmem:[#allocation4 + $0x60] sm:$0xff] %v355_v8  ;;  %v359_v10 = vld [vmem:[%s6466_s11 + $0x70] sm:$0xff]  ;;  %v361_v11 = vld [vmem:[%s6466_s11 + $0x78] sm:$0xff] }
  0x79   :  { %358 = vst [vmem:[#allocation4 + $0x68] sm:$0xff] %v357_v9  ;;  %v363_v12 = vld [vmem:[%s6466_s11 + $0x80] sm:$0xff]  ;;  %360 = vst [vmem:[#allocation4 + $0x70] sm:$0xff] %v359_v10  ;;  %v365_v13 = vld [vmem:[%s6466_s11 + $0x88] sm:$0xff] }
  0x7a   :  { %362 = vst [vmem:[#allocation4 + $0x78] sm:$0xff] %v361_v11  ;;  %364 = vst [vmem:[#allocation4 + $0x80] sm:$0xff] %v363_v12  ;;  %v367_v14 = vld [vmem:[%s6466_s11 + $0x90] sm:$0xff]  ;;  %v369_v15 = vld [vmem:[%s6466_s11 + $0x98] sm:$0xff] }
  0x7b   :  { %366 = vst [vmem:[#allocation4 + $0x88] sm:$0xff] %v365_v13  ;;  %368 = vst [vmem:[#allocation4 + $0x90] sm:$0xff] %v367_v14  ;;  %v5030_v16 = vld [vmem:[#allocation10 + $0x78] sm:$0xff]   ;;  %v5034_v20 = vld [vmem:[#allocation10 + $0x70] sm:$0xff]  }
  0x7c   :  { %370 = vst [vmem:[#allocation4 + $0x98] sm:$0xff] %v369_v15  ;;  %v5031_v17 = vld [vmem:[#allocation10 + $0x38] sm:$0xff]   ;;  %4622 = vmatprep.subr.bf16.mxu0 %v5030_v16  ;;  %v5035_v21 = vld [vmem:[#allocation10 + $0x30] sm:$0xff]   ;;  %v5038_v24 = vld [vmem:[#allocation10 + $0x68] sm:$0xff]  }
  0x7d   :  { %v5032_v18 = vld [vmem:[#allocation10 + $0xf8] sm:$0xff]   ;;  %4623 = vmatpush3.bf16.msra.mxu0 %v5031_v17  ;;  %v5036_v22 = vld [vmem:[#allocation10 + $0xf0] sm:$0xff]   ;;  %v5039_v25 = vld [vmem:[#allocation10 + $0x28] sm:$0xff]  }
  0x7e   :  { %v5033_v19 = vld [vmem:[#allocation10 + $0xb8] sm:$0xff]   ;;  %4644 = vmatprep.subr.bf16.mxu1 %v5032_v18  ;;  %4624 = vmatprep.subr.bf16.mxu0 %v5034_v20  ;;  %v5037_v23 = vld [vmem:[#allocation10 + $0xb0] sm:$0xff]   ;;  %v5040_v26 = vld [vmem:[#allocation10 + $0xe8] sm:$0xff]  }
  0x7f   :  { %4645 = vmatpush3.bf16.msra.mxu1 %v5033_v19  ;;  %v5041_v27 = vld [vmem:[#allocation10 + $0xa8] sm:$0xff]   ;;  %v5042_v28 = vld [vmem:[#allocation10 + $0x60] sm:$0xff]   ;;  %v5046_v32 = vld [vmem:[#allocation10 + $0x58] sm:$0xff]  }
  0x80   :  { %4646 = vmatprep.subr.bf16.mxu1 %v5036_v22  ;;  %v5043_v29 = vld [vmem:[#allocation10 + $0x20] sm:$0xff]   ;;  %v5047_v33 = vld [vmem:[#allocation10 + $0x18] sm:$0xff]   ;;  %v5050_v36 = vld [vmem:[#allocation10 + $0x50] sm:$0xff]  }
  0x81   :  { %4625 = vmatpush3.bf16.msra.mxu0 %v5035_v21  ;;  %v5044_v30 = vld [vmem:[#allocation10 + $0xe0] sm:$0xff]   ;;  %v5048_v34 = vld [vmem:[#allocation10 + $0xd8] sm:$0xff]   ;;  %v5051_v37 = vld [vmem:[#allocation10 + $0x10] sm:$0xff]  }
  0x82   :  { %4626 = vmatprep.subr.bf16.mxu0 %v5038_v24  ;;  %v5045_v31 = vld [vmem:[#allocation10 + $0xa0] sm:$0xff]   ;;  %v5049_v35 = vld [vmem:[#allocation10 + $0x98] sm:$0xff]   ;;  %v5052_v38 = vld [vmem:[#allocation10 + $0xd0] sm:$0xff]  }
  0x83   :  { %4647 = vmatpush3.bf16.msra.mxu1 %v5037_v23  ;;  %v5053_v39 = vld [vmem:[#allocation10 + $0x90] sm:$0xff]   ;;  %v5054_v40 = vld [vmem:[#allocation10 + $0x48] sm:$0xff]   ;;  %v5058_v44 = vld [vmem:[#allocation10 + $0x40] sm:$0xff]  }
  0x84   :  { %4648 = vmatprep.subr.bf16.mxu1 %v5040_v26  ;;  %v5055_v41 = vld [vmem:[#allocation10 + $0x8] sm:$0xff]   ;;  %v5059_v45 = vld [vmem:[#allocation10] sm:$0xff]   ;;  %v391_v50 = vld [vmem:[#allocation7] sm:$0xff] }
  0x85   :  { %4627 = vmatpush3.bf16.msra.mxu0 %v5039_v25  ;;  %v5056_v42 = vld [vmem:[#allocation10 + $0xc8] sm:$0xff]   ;;  %v5060_v46 = vld [vmem:[#allocation10 + $0xc0] sm:$0xff]   ;;  %v394_v52 = vld [vmem:[#allocation7 + $0x18] sm:$0xff]  ;;  %v476_v53 = vpack.c.bf16 %v391_v50, %v391_v50 }
  0x86   :  { %4628 = vmatprep.subr.bf16.mxu0 %v5042_v28  ;;  %v5057_v43 = vld [vmem:[#allocation10 + $0x88] sm:$0xff]   ;;  %v392_v47 = vld [vmem:[#allocation7 + $0x8] sm:$0xff]  ;;  %v479_v54 = vpack.c.bf16 %v394_v52, %v394_v52  ;;  %v5062_v55 = vld [vmem:[#allocation10 + $0x138] sm:$0xff]  }
  0x87   :  { %4649 = vmatpush3.bf16.msra.mxu1 %v5041_v27  ;;  %v477_v48 = vpack.c.bf16 %v392_v47, %v392_v47  ;;  %v5061_v49 = vld [vmem:[#allocation10 + $0x80] sm:$0xff]   ;;  %v393_v56 = vld [vmem:[#allocation7 + $0x10] sm:$0xff]  ;;  %v5063_v58 = vld [vmem:[#allocation10 + $0x130] sm:$0xff]  }
  0x88   :  { %4650 = vmatprep.subr.bf16.mxu1 %v5044_v30  ;;  %800 = vmatprep.mubr.bf16.mxu1 %v479_v54  ;;  %v478_v57 = vpack.c.bf16 %v393_v56, %v393_v56  ;;  %v5064_v59 = vld [vmem:[#allocation10 + $0x128] sm:$0xff]   ;;  %v5065_v60 = vld [vmem:[#allocation10 + $0x120] sm:$0xff]   ;;  %v5066_v61 = vld [vmem:[#allocation10 + $0x118] sm:$0xff]  }
  0x89   :  { %4629 = vmatpush3.bf16.msra.mxu0 %v5043_v29  ;;  %760 = vmatprep.mubr.bf16.mxu0 %v477_v48  ;;  %v5067_v62 = vld [vmem:[#allocation10 + $0x110] sm:$0xff]   ;;  %v5068_v63 = vld [vmem:[#allocation10 + $0x108] sm:$0xff]  }
  0x8a   :  { %4630 = vmatprep.subr.bf16.mxu0 %v5046_v32 }
  0x8b   :  { %4651 = vmatpush3.bf16.msra.mxu1 %v5045_v31 }
  0x8c   :  { %4652 = vmatprep.subr.bf16.mxu1 %v5048_v34 }
  0x8d   :  { %4631 = vmatpush3.bf16.msra.mxu0 %v5047_v33 }
  0x8e   :  { %4632 = vmatprep.subr.bf16.mxu0 %v5050_v36 }
  0x8f   :  { %4653 = vmatpush3.bf16.msra.mxu1 %v5049_v35 }
  0x90   :  { %4654 = vmatprep.subr.bf16.mxu1 %v5052_v38 }
  0x91   :  { %4633 = vmatpush3.bf16.msra.mxu0 %v5051_v37 }
  0x92   :  { %4634 = vmatprep.subr.bf16.mxu0 %v5054_v40 }
  0x93   :  { %4655 = vmatpush3.bf16.msra.mxu1 %v5053_v39 }
  0x94   :  { %4656 = vmatprep.subr.bf16.mxu1 %v5056_v42 }
  0x95   :  { %4635 = vmatpush3.bf16.msra.mxu0 %v5055_v41 }
  0x96   :  { %4636 = vmatprep.subr.bf16.mxu0 %v5058_v44 }
  0x97   :  { %4657 = vmatpush3.bf16.msra.mxu1 %v5057_v43 }
  0x98   :  { %4658 = vmatprep.subr.bf16.mxu1 %v5060_v46 }
  0x99   :  { %4637 = vmatpush3.bf16.msra.mxu0 %v5059_v45 }
  0x9a   :  { %4832 = vmatprep.subr.bf16.mxu0 %v5649_v51 }
  0x9b   :  { %4659 = vmatpush3.bf16.msra.mxu1 %v5061_v49 }
  0x9c   :  { %761 = vmatmul.mubr.bf16.vlgmr.msra.gmra.mxu0 %v476_v53  ;;  %4852 = vmatprep.subr.bf16.mxu1 %v5649_v51 }
  0x9d   :  { %4833 = vmatpush3.bf16.msra.mxu0 %v5062_v55  ;;  %4848 = vmatprep.mubr.msk.bf16.mxu0 %vm5650_vm0, %v5649_v51 }
  0x9e   :  { %801 = vmatmul.mubr.bf16.vlgmr.msra.gmra.mxu1 %v478_v57  ;;  %4834 = vmatprep.subr.bf16.mxu0 %v5649_v51 }
  0x9f   :  { %4868 = vmatprep.mubr.msk.bf16.mxu1 %vm5650_vm0, %v5649_v51 }
  0xa1   :  { %4835 = vmatpush3.bf16.msra.mxu0 %v5063_v58 }
  0xa2   :  { %4836 = vmatprep.subr.bf16.mxu0 %v5649_v51 }
  0xa5   :  { %4837 = vmatpush3.bf16.msra.mxu0 %v5064_v59 }
  0xa6   :  { %4838 = vmatprep.subr.bf16.mxu0 %v5649_v51 }
  0xa9   :  { %4839 = vmatpush3.bf16.msra.mxu0 %v5065_v60 }
  0xaa   :  { %4840 = vmatprep.subr.bf16.mxu0 %v5649_v51 }
  0xad   :  { %4841 = vmatpush3.bf16.msra.mxu0 %v5066_v61 }
  0xae   :  { %4842 = vmatprep.subr.bf16.mxu0 %v5649_v51 }
  0xb1   :  { %4843 = vmatpush3.bf16.msra.mxu0 %v5067_v62 }
  0xb2   :  { %4844 = vmatprep.subr.bf16.mxu0 %v5649_v51 }
  0xb3   :  { %378 = vsyncadd [#allocation6 + $0x2], 2560  ;;  %v5069_v0 = vld [vmem:[#allocation10 + $0x100] sm:$0xff]   ;;  %v395_v1 = vld [vmem:[#allocation7 + $0x20] sm:$0xff]  ;;  %v5651_v56 = vmov 0  }
  0xb4   :  { %v480_v2 = vpack.c.bf16 %v395_v1, %v395_v1  ;;  %v5070_v3 = vld [vmem:[#allocation12 + $0x38] sm:$0xff]   ;;  %v5071_v4 = vld [vmem:[#allocation12 + $0x30] sm:$0xff]   ;;  %v5072_v5 = vld [vmem:[#allocation12 + $0x28] sm:$0xff]  }
  0xb5   :  { %4845 = vmatpush3.bf16.msra.mxu0 %v5068_v63  ;;  %4853 = vmatpush3.bf16.msra.mxu1 %v5070_v3  ;;  %v5073_v6 = vld [vmem:[#allocation12 + $0x20] sm:$0xff]   ;;  %v5074_v7 = vld [vmem:[#allocation12 + $0x18] sm:$0xff]   ;;  %v5075_v8 = vld [vmem:[#allocation12 + $0x10] sm:$0xff]  }
  0xb6   :  { %4846 = vmatprep.subr.bf16.mxu0 %v5649_v51  ;;  %4854 = vmatprep.subr.bf16.mxu1 %v5649_v51  ;;  %v5076_v9 = vld [vmem:[#allocation12 + $0x8] sm:$0xff]   ;;  %v5077_v10 = vld [vmem:[#allocation12] sm:$0xff]   ;;  %v5086_v16 = vld [vmem:[%s6459_s4 + $0x78] ss:$12 sps:$4 sm:$0xff]  }
  0xb7   :  { %v5078_v11 = vld [vmem:[%s6459_s4 + $0xa8] ss:$12 sps:$4 sm:$0xff]   ;;  %v5080_v12 = vld [vmem:[%s6459_s4 + $0xac] ss:$12 sps:$4 sm:$0xff]   ;;  %v5082_v14 = vld [vmem:[%s6459_s4 + $0x90] ss:$12 sps:$4 sm:$0xff]  }
  0xb8   :  { %v5084_v13 = vld [vmem:[%s6459_s4 + $0x94] ss:$12 sps:$4 sm:$0xff]   ;;  %v5088_v15 = vld [vmem:[%s6459_s4 + $0x7c] ss:$12 sps:$4 sm:$0xff]   ;;  %v5092_v17 = vld [vmem:[%s6459_s4 + $0x64] ss:$12 sps:$4 sm:$0xff]  }
  0xb9   :  { %4847 = vmatpush3.bf16.msra.mxu0 %v5069_v0  ;;  %4855 = vmatpush3.bf16.msra.mxu1 %v5071_v4  ;;  %v5090_v18 = vld [vmem:[%s6459_s4 + $0x60] ss:$12 sps:$4 sm:$0xff]   ;;  %v5094_v20 = vld [vmem:[%s6459_s4 + $0x48] ss:$12 sps:$4 sm:$0xff]   ;;  %v5098_v22 = vld [vmem:[%s6459_s4 + $0x30] ss:$12 sps:$4 sm:$0xff]  }
  0xba   :  { %4856 = vmatprep.subr.bf16.mxu1 %v5649_v51  ;;  %1140 = vmatprep.subr.bf16.mxu0 %v5080_v12  ;;  %v5096_v19 = vld [vmem:[%s6459_s4 + $0x4c] ss:$12 sps:$4 sm:$0xff]   ;;  %v5100_v21 = vld [vmem:[%s6459_s4 + $0x34] ss:$12 sps:$4 sm:$0xff]   ;;  %v5104_v23 = vld [vmem:[%s6459_s4 + $0x1c] ss:$12 sps:$4 sm:$0xff]  }
  0xbb   :  { %v5102_v24 = vld [vmem:[%s6459_s4 + $0x18] ss:$12 sps:$4 sm:$0xff]   ;;  %v4308_v34 = vld [vmem:[%s6456_s1] ss:$0 sm:$0xff]  ;;  %v5081_v43 = vld [vmem:[%s6459_s4 + $0xb0] ss:$12 sps:$4 sm:$0xff]  }
  0xbc   :  { %4849 = vmatmul.mubr.bf16.vlgmr.msra.gmra.mxu0 %v480_v2  ;;  %v5085_v46 = vld [vmem:[%s6459_s4 + $0x98] ss:$12 sps:$4 sm:$0xff]   ;;  %v5089_v47 = vld [vmem:[%s6459_s4 + $0x80] ss:$12 sps:$4 sm:$0xff]   ;;  %v5093_v48 = vld [vmem:[%s6459_s4 + $0x68] ss:$12 sps:$4 sm:$0xff]  }
  0xbd   :  { %4857 = vmatpush3.bf16.msra.mxu1 %v5072_v5  ;;  %1141 = vmatpush1.bf16.msra.mxu0 %v5078_v11  ;;  %v5097_v49 = vld [vmem:[%s6459_s4 + $0x50] ss:$12 sps:$4 sm:$0xff]   ;;  %v5101_v50 = vld [vmem:[%s6459_s4 + $0x38] ss:$12 sps:$4 sm:$0xff]   ;;  %v5105_v52 = vld [vmem:[%s6459_s4 + $0x20] ss:$12 sps:$4 sm:$0xff]  }
  0xbe   :  { %4858 = vmatprep.subr.bf16.mxu1 %v5649_v51  ;;  %1142 = vmatprep.subr.bf16.mxu0 %v5084_v13  ;;  %v5108_v53 = vld [vmem:[%s6459_s4 + $0x4] ss:$12 sps:$4 sm:$0xff]   ;;  %v5106_v54 = vld [vmem:[%s6459_s4] ss:$12 sps:$4 sm:$0xff]   ;;  %v5109_v55 = vld [vmem:[%s6459_s4 + $0x8] ss:$12 sps:$4 sm:$0xff]  }
  0xbf   :  { %1172 = vmatprep.mubr.bf16.mxu0 %v5651_v56  ;;  %v4349_v57 = vld [vmem:[%s6456_s1 + $0x1] ss:$0 sm:$0xff]  ;;  %s5652_s4 = smov [#allocation5]  }
  0xc0   :  { %s387_s17 = sshll.u32 %s5652_s4, 4  ;;  %s388_s17 = int_to_ptr.vmem [resolvable:$true] %s387_s17 }
  0xc1   :  { %4859 = vmatpush3.bf16.msra.mxu1 %v5073_v6  ;;  %1143 = vmatpush1.bf16.msra.mxu0 %v5082_v14  ;;  %s5566_s3 = scalar_lea.vmem %s388_s17, 5120  ;;  %p5571_p8 = scmp.lt.s32.totalorder %s388_s17, %s388_s17 }
  0xc2   :  { %4860 = vmatprep.subr.bf16.mxu1 %v5649_v51  ;;  %1144 = vmatprep.subr.bf16.mxu0 %v5088_v15  ;;  %p5567_p7 = scmp.ne.s32.totalorder %s388_s17, %s5566_s3  ;;  %p5572_p9 = scmp.lt.s32.totalorder %s5566_s3, %s5566_s3 }
  0xc4   :  { %p5573_p10 = por %p5572_p9, %p5571_p8 }
  0xc5   :  { %4861 = vmatpush3.bf16.msra.mxu1 %v5074_v7  ;;  %1145 = vmatpush1.bf16.msra.mxu0 %v5086_v16 }
  0xc6   :  { %4862 = vmatprep.subr.bf16.mxu1 %v5649_v51  ;;  %1146 = vmatprep.subr.bf16.mxu0 %v5092_v17  ;;  %p5574_p11 = pnand %p5573_p10, %p5567_p7 }
  0xc9   :  { %4863 = vmatpush3.bf16.msra.mxu1 %v5075_v8  ;;  %1147 = vmatpush1.bf16.msra.mxu0 %v5090_v18 }
  0xca   :  { %4864 = vmatprep.subr.bf16.mxu1 %v5649_v51  ;;  %1148 = vmatprep.subr.bf16.mxu0 %v5096_v19 }
  0xcd   :  { %4865 = vmatpush3.bf16.msra.mxu1 %v5076_v9  ;;  %1149 = vmatpush1.bf16.msra.mxu0 %v5094_v20 }
  0xce   :  { %4866 = vmatprep.subr.bf16.mxu1 %v5649_v51  ;;  %1150 = vmatprep.subr.bf16.mxu0 %v5100_v21 }
  0xd1   :  { %4867 = vmatpush3.bf16.msra.mxu1 %v5077_v10  ;;  %1151 = vmatpush1.bf16.msra.mxu0 %v5098_v22 }
  0xd2   :  { %4872 = vmatprep.subr.bf16.mxu1 %v5649_v51  ;;  %1152 = vmatprep.subr.bf16.mxu0 %v5104_v23 }
  0xd5   :  { %1153 = vmatpush1.bf16.msra.mxu0 %v5102_v24 }
  0xd6   :  { %1154 = vmatprep.subr.bf16.mxu0 %v5108_v53 }
  0xd9   :  { %1155 = vmatpush1.bf16.msra.mxu0 %v5106_v54 }
 0x15c   :  { %v4638_v25 = vpop.f32.mrf.mxu0 }
 0x15e   :  { %v4639_v26 = vpop.f32.mrf.mxu0  ;;  %v4660_v27 = vpop.f32.mrf.mxu1 }
 0x15f   :  { %v4640_v33 = vadd.f32 %v4639_v26, %v4638_v25 }
 0x160   :  { %v4641_v28 = vpop.f32.mrf.mxu0  ;;  %v4661_v29 = vpop.f32.mrf.mxu1 }
 0x161   :  { %v763_v35 = vadd.f32 %v4640_v33, %v4308_v34  ;;  %v4662_v36 = vadd.f32 %v4661_v29, %v4660_v27 }
 0x162   :  { %v4642_v30 = vpop.f32.mrf.mxu0  ;;  %v4663_v31 = vpop.f32.mrf.mxu1 }
 0x163   :  { %v803_v37 = vadd.f32 %v4662_v36, %v763_v35 }
 0x164   :  { %v4664_v32 = vpop.f32.mrf.mxu1 }
 0x17c   :  { %v842_v38 = vpop.f32.mrf.mxu0 }
 0x17d   :  { %v843_v39 = vadd.f32 %v842_v38, %v803_v37 }
 0x17e   :  { %v4850_v40 = vpop.f32.mrf.mxu0 }
 0x17f   :  { %v848_v41 = vmax.f32 %v843_v39, 0.0 }
 0x180   :  { %v845_v42 = vpop.f32.mrf.mxu0 }
 0x181   :  { %v865_v44 = vpack.c.bf16 %v848_v41, %v848_v41 }
 0x182   :  { %v4851_v45 = vpop.f32.mrf.mxu0 }
 0x183   :  { %4869 = vmatmul.mubr.bf16.vlgmr.msra.gmra.mxu1 %v865_v44 }
 0x184   :  { %4873 = vmatpush3.bf16.msra.mxu1 %v5081_v43  ;;  %4888 = vmatprep.mubr.msk.bf16.mxu1 %vm5650_vm0, %v5649_v51 }
 0x185   :  { %4874 = vmatprep.subr.bf16.mxu1 %v5649_v51 }
 0x188   :  { %4875 = vmatpush3.bf16.msra.mxu1 %v5085_v46 }
 0x189   :  { %4876 = vmatprep.subr.bf16.mxu1 %v5649_v51 }
 0x18c   :  { %4877 = vmatpush3.bf16.msra.mxu1 %v5089_v47 }
 0x18d   :  { %4878 = vmatprep.subr.bf16.mxu1 %v5649_v51 }
 0x190   :  { %4879 = vmatpush3.bf16.msra.mxu1 %v5093_v48 }
 0x191   :  { %4880 = vmatprep.subr.bf16.mxu1 %v5649_v51 }
 0x194   :  { %4881 = vmatpush3.bf16.msra.mxu1 %v5097_v49 }
 0x195   :  { %4882 = vmatprep.subr.bf16.mxu1 %v5649_v51 }
 0x198   :  { %4883 = vmatpush3.bf16.msra.mxu1 %v5101_v50 }
 0x199   :  { %4884 = vmatprep.subr.bf16.mxu1 %v5649_v51 }
 0x19c   :  { %4885 = vmatpush3.bf16.msra.mxu1 %v5105_v52 }
 0x19d   :  { %4886 = vmatprep.subr.bf16.mxu1 %v5649_v51 }
 0x1a0   :  { %4887 = vmatpush3.bf16.msra.mxu1 %v5109_v55 }
 0x243   :  { %v955_v58 = vpop.f32.mrf.mxu1 }
 0x244   :  { %v956_v59 = vadd.f32 %v4349_v57, %v955_v58 }
 0x245   :  { %v4870_v60 = vpop.f32.mrf.mxu1 }
 0x246   :  { %v961_v61 = vmax.f32 %v956_v59, 0.0 }
 0x247   :  { %v958_v62 = vpop.f32.mrf.mxu1 }
 0x248   :  { %v994_v63 = vpack.c.bf16 %v961_v61, %v961_v61 }
 0x249   :  { %v4871_v0 = vpop.f32.mrf.mxu1 }
 0x24a   :  { %1173 = vmatmul.mubr.bf16.vlgmr.msra.gmra.mxu0 %v994_v63  ;;  %4889 = vmatmul.mubr.bf16.vlgmr.msra.gmra.mxu1 %v994_v63 }
 0x24b   :  { %5577 = shalt.err (!%p5574_p11)  }
 0x24c   :  { %390 = dma.hbm_to_vmem [thread:$0]  %s6468_s13, 5120, %s388_s17, [#allocation6 + $0x3]  ;;  %v997_v1 = vlaneseq  ;;  %v995_v5 = vld [vmem:[%s6456_s1 + $0x2] sm:$0x7] }
 0x24e   :  { %v6121_v2 = vshrl.u32 %v997_v1, 7 }
 0x250   :  { %v6124_v3 = vsub.s32 0, %v6121_v2  ;;  %v6127_v4 = vsub.s32 2, %v6121_v2  ;;  %v6133_v6 = vsub.s32 1, %v6121_v2 }
 0x252   :  { %v1000_v7 = vrot.slane %v995_v5, %v6124_v3  ;;  %v1008_v8 = vrot.slane %v995_v5, %v6127_v4  ;;  %v1004_v9 = vrot.slane %v995_v5, %v6133_v6 }
 0x30a   :  { %v1174_v10 = vpop.f32.mrf.mxu0  ;;  %v1215_v11 = vpop.f32.mrf.mxu1 }
 0x30b   :  { %v6138_v12 = vadd.f32 %v1174_v10, %v1000_v7  ;;  %v1216_v13 = vadd.f32 %v1215_v11, %v1008_v8 }
 0x30c   :  { %v1176_v14 = vpop.f32.mrf.mxu0  ;;  %v4890_v15 = vpop.f32.mrf.mxu1 }
 0x30d   :  { %v1221_v16 = vmax.f32 %v6138_v12, 0.0  ;;  %v1223_v17 = vmax.f32 %v1216_v13, 0.0  ;;  %v1177_v18 = vadd.f32 %v1176_v14, %v1004_v9 }
 0x30e   :  { %v1178_v19 = vpop.f32.mrf.mxu0  ;;  %v1218_v20 = vpop.f32.mrf.mxu1 }
 0x30f   :  { %v1222_v21 = vmax.f32 %v1177_v18, 0.0 }
 0x310   :  { %v1179_v22 = vpop.f32.mrf.mxu0  ;;  %v4891_v23 = vpop.f32.mrf.mxu1 }
 0x311   :  { %5626 = dma.done.wait [#allocation6], 7680 }
 0x312   :  { %5627 = vsyncadd [#allocation6], 4294959616  ;;  %1725 = vmatprep.mubr.bf16.mxu1 %v5651_v56  ;;  %v1309_v24 = vpack.c.bf16 %v1222_v21, %v1222_v21  ;;  %v5110_v25 = vld [vmem:[#allocation2 + $0xac] ss:$12 sps:$4 sm:$0xff]   ;;  %v5114_v27 = vld [vmem:[#allocation2 + $0xa8] ss:$12 sps:$4 sm:$0xff]   ;;  %v6142_v44 = vpack.c.bf16 %v1223_v17, %v1223_v17  ;;  %v1308_v21 = vpack.c.bf16 %v1221_v16, %v1221_v16 }
 0x313   :  { %v5112_v26 = vld [vmem:[#allocation2 + $0x1cc] ss:$12 sps:$4 sm:$0xff]   ;;  %1652 = vmatprep.subr.bf16.mxu0 %v5110_v25  ;;  %v5115_v28 = vld [vmem:[#allocation2 + $0x1c8] ss:$12 sps:$4 sm:$0xff]   ;;  %v5120_v31 = vld [vmem:[#allocation2 + $0x90] ss:$12 sps:$4 sm:$0xff]  }
 0x314   :  { %1684 = vmatprep.mubr.bf16.mxu0 %v1309_v24  ;;  %1701 = vmatprep.subr.bf16.mxu1 %v5112_v26  ;;  %v5116_v29 = vld [vmem:[#allocation2 + $0x94] ss:$12 sps:$4 sm:$0xff]   ;;  %v5121_v32 = vld [vmem:[#allocation2 + $0x1b0] ss:$12 sps:$4 sm:$0xff]   ;;  %v5126_v35 = vld [vmem:[#allocation2 + $0x78] ss:$12 sps:$4 sm:$0xff]  }
 0x315   :  { %1653 = vmatpush1.bf16.msra.mxu0 %v5114_v27  ;;  %1702 = vmatpush1.bf16.msra.mxu1 %v5115_v28  ;;  %v5118_v30 = vld [vmem:[#allocation2 + $0x1b4] ss:$12 sps:$4 sm:$0xff]   ;;  %v5122_v33 = vld [vmem:[#allocation2 + $0x7c] ss:$12 sps:$4 sm:$0xff]   ;;  %v5127_v36 = vld [vmem:[#allocation2 + $0x198] ss:$12 sps:$4 sm:$0xff]  }
 0x316   :  { %1654 = vmatprep.subr.bf16.mxu0 %v5116_v29  ;;  %1703 = vmatprep.subr.bf16.mxu1 %v5118_v30  ;;  %v5124_v34 = vld [vmem:[#allocation2 + $0x19c] ss:$12 sps:$4 sm:$0xff]   ;;  %v5128_v37 = vld [vmem:[#allocation2 + $0x64] ss:$12 sps:$4 sm:$0xff]   ;;  %v5132_v39 = vld [vmem:[#allocation2 + $0x60] ss:$12 sps:$4 sm:$0xff]  }
 0x317   :  { %v5130_v38 = vld [vmem:[#allocation2 + $0x184] ss:$12 sps:$4 sm:$0xff]   ;;  %v5133_v40 = vld [vmem:[#allocation2 + $0x180] ss:$12 sps:$4 sm:$0xff]   ;;  %v5137_v43 = vld [vmem:[#allocation2 + $0x48] ss:$12 sps:$4 sm:$0xff]  }
 0x318   :  { %v5134_v41 = vld [vmem:[#allocation2 + $0x4c] ss:$12 sps:$4 sm:$0xff]   ;;  %v5136_v42 = vld [vmem:[#allocation2 + $0x170] ss:$12 sps:$4 sm:$0xff]   ;;  %vm1648_vm1 = vcmask 523264   ;;  %vm2181_vm2 = vcmask 261120  }
 0x319   :  { %1655 = vmatpush1.bf16.msra.mxu0 %v5120_v31  ;;  %1704 = vmatpush1.bf16.msra.mxu1 %v5121_v32  ;;  %v5138_v45 = vld [vmem:[#allocation2 + $0xb0] ss:$12 sps:$4 sm:$0xff]   ;;  %v5139_v46 = vld [vmem:[#allocation2 + $0x34] ss:$12 sps:$4 sm:$0xff]   ;;  %v5141_v47 = vld [vmem:[#allocation2 + $0x158] ss:$12 sps:$4 sm:$0xff]  }
 0x31a   :  { %1656 = vmatprep.subr.bf16.mxu0 %v5122_v33  ;;  %1705 = vmatprep.subr.bf16.mxu1 %v5124_v34  ;;  %v5142_v48 = vld [vmem:[#allocation2 + $0x30] ss:$12 sps:$4 sm:$0xff]   ;;  %v5143_v49 = vld [vmem:[#allocation2 + $0x98] ss:$12 sps:$4 sm:$0xff]   ;;  %v5146_v52 = vld [vmem:[#allocation2 + $0x140] ss:$12 sps:$4 sm:$0xff]  }
 0x31b   :  { %v5144_v50 = vld [vmem:[#allocation2 + $0x1c] ss:$12 sps:$4 sm:$0xff]   ;;  %v5147_v53 = vld [vmem:[#allocation2 + $0x18] ss:$12 sps:$4 sm:$0xff]   ;;  %v5148_v54 = vld [vmem:[#allocation2 + $0x80] ss:$12 sps:$4 sm:$0xff]  }
 0x31c   :  { %v5149_v55 = vld [vmem:[#allocation2 + $0x4] ss:$12 sps:$4 sm:$0xff]   ;;  %v5151_v57 = vld [vmem:[#allocation2 + $0x128] ss:$12 sps:$4 sm:$0xff]   ;;  %v5152_v58 = vld [vmem:[#allocation2] ss:$12 sps:$4 sm:$0xff]  }
 0x31d   :  { %1657 = vmatpush1.bf16.msra.mxu0 %v5126_v35  ;;  %1706 = vmatpush1.bf16.msra.mxu1 %v5127_v36  ;;  %v5153_v59 = vld [vmem:[#allocation2 + $0x68] ss:$12 sps:$4 sm:$0xff]   ;;  %v5154_v60 = vld [vmem:[#allocation2 + $0x16c] ss:$12 sps:$4 sm:$0xff]   ;;  %v5156_v61 = vld [vmem:[#allocation2 + $0x110] ss:$12 sps:$4 sm:$0xff]  }
 0x31e   :  { %1658 = vmatprep.subr.bf16.mxu0 %v5128_v37  ;;  %1707 = vmatprep.subr.bf16.mxu1 %v5130_v38  ;;  %v5157_v62 = vld [vmem:[#allocation2 + $0x168] ss:$12 sps:$4 sm:$0xff]   ;;  %v5158_v63 = vld [vmem:[#allocation2 + $0x50] ss:$12 sps:$4 sm:$0xff]   ;;  %v5161_v1 = vld [vmem:[#allocation2 + $0xf8] ss:$12 sps:$4 sm:$0xff]  }
 0x31f   :  { %v5159_v0 = vld [vmem:[#allocation2 + $0x154] ss:$12 sps:$4 sm:$0xff]   ;;  %v5162_v5 = vld [vmem:[#allocation2 + $0x150] ss:$12 sps:$4 sm:$0xff]   ;;  %v5163_v7 = vld [vmem:[#allocation2 + $0x38] ss:$12 sps:$4 sm:$0xff]  }
 0x320   :  { %v5164_v8 = vld [vmem:[#allocation2 + $0x13c] ss:$12 sps:$4 sm:$0xff]   ;;  %v5166_v9 = vld [vmem:[#allocation2 + $0xe0] ss:$12 sps:$4 sm:$0xff]   ;;  %v5167_v10 = vld [vmem:[#allocation2 + $0x138] ss:$12 sps:$4 sm:$0xff]  }
 0x321   :  { %1659 = vmatpush1.bf16.msra.mxu0 %v5132_v39  ;;  %1708 = vmatpush1.bf16.msra.mxu1 %v5133_v40  ;;  %v5168_v11 = vld [vmem:[#allocation2 + $0x20] ss:$12 sps:$4 sm:$0xff]   ;;  %v5169_v13 = vld [vmem:[#allocation2 + $0x124] ss:$12 sps:$4 sm:$0xff]   ;;  %v5171_v14 = vld [vmem:[#allocation2 + $0xc8] ss:$12 sps:$4 sm:$0xff]  }
 0x322   :  { %1660 = vmatprep.subr.bf16.mxu0 %v5134_v41  ;;  %4693 = vmatprep.subr.bf16.mxu1 %v5136_v42  ;;  %v5172_v15 = vld [vmem:[#allocation2 + $0x120] ss:$12 sps:$4 sm:$0xff]   ;;  %v5173_v17 = vld [vmem:[#allocation2 + $0x8] ss:$12 sps:$4 sm:$0xff]   ;;  %v5177_v20 = vld [vmem:[#allocation2 + $0x1d0] ss:$12 sps:$4 sm:$0xff]  }
 0x323   :  { %v5174_v18 = vld [vmem:[#allocation2 + $0x10c] ss:$12 sps:$4 sm:$0xff]   ;;  %v5176_v19 = vld [vmem:[#allocation2 + $0x108] ss:$12 sps:$4 sm:$0xff]   ;;  %v5180_v23 = vld [vmem:[#allocation2 + $0xf0] ss:$12 sps:$4 sm:$0xff]  }
 0x324   :  { %4442 = vmatmul.mubr.msk.bf16.vlgmr.msra.gmra.mxu1 %vm1648_vm1, %v6142_v44  ;;  %v5178_v22 = vld [vmem:[#allocation2 + $0xf4] ss:$12 sps:$4 sm:$0xff]   ;;  %v5182_v25 = vld [vmem:[#allocation2 + $0xdc] ss:$12 sps:$4 sm:$0xff]   ;;  %v5184_v26 = vld [vmem:[#allocation2 + $0xd8] ss:$12 sps:$4 sm:$0xff]  }
 0x325   :  { %1661 = vmatpush1.bf16.msra.mxu0 %v5137_v43  ;;  %4694 = vmatpush3.bf16.msra.mxu1 %v5138_v45  ;;  %v5185_v27 = vld [vmem:[#allocation2 + $0x1a0] ss:$12 sps:$4 sm:$0xff]   ;;  %v5186_v12 = vld [vmem:[#allocation2 + $0xc4] ss:$12 sps:$4 sm:$0xff]   ;;  %v5189_v28 = vld [vmem:[#allocation2 + $0x188] ss:$12 sps:$4 sm:$0xff]  }
 0x326   :  { %1662 = vmatprep.subr.bf16.mxu0 %v5139_v46  ;;  %4695 = vmatprep.subr.bf16.mxu1 %v5141_v47  ;;  %v5188_v16 = vld [vmem:[#allocation2 + $0xc0] ss:$12 sps:$4 sm:$0xff]   ;;  %v5190_v29 = vld [vmem:[%s6461_s6 + $0x78] sm:$0xff]   ;;  %v5192_v31 = vld [vmem:[%s6461_s6 + $0x70] sm:$0xff]  }
 0x327   :  { %1766 = vmatprep.mubr.bf16.mxu1 %v1309_v24  ;;  %v5181_v24 = vld [vmem:[#allocation2 + $0x1b8] ss:$12 sps:$4 sm:$0xff]   ;;  %v5193_v32 = vld [vmem:[%s6461_s6 + $0x30] sm:$0xff]   ;;  %v5194_v33 = vld [vmem:[%s6461_s6 + $0x68] sm:$0xff]  }
 0x328   :  { %v5191_v30 = vld [vmem:[%s6461_s6 + $0x38] sm:$0xff]   ;;  %v5195_v34 = vld [vmem:[%s6461_s6 + $0x28] sm:$0xff]   ;;  %v5196_v35 = vld [vmem:[%s6461_s6 + $0x60] sm:$0xff]  }
 0x329   :  { %1663 = vmatpush1.bf16.msra.mxu0 %v5142_v48  ;;  %4696 = vmatpush3.bf16.msra.mxu1 %v5143_v49  ;;  %v5197_v36 = vld [vmem:[%s6461_s6 + $0x98] sm:$0xff]   ;;  %v5198_v37 = vld [vmem:[%s6461_s6 + $0x20] sm:$0xff]   ;;  %v5200_v39 = vld [vmem:[%s6461_s6 + $0x90] sm:$0xff]  }
 0x32a   :  { %1664 = vmatprep.subr.bf16.mxu0 %v5144_v50  ;;  %4697 = vmatprep.subr.bf16.mxu1 %v5146_v52  ;;  %v5199_v38 = vld [vmem:[%s6461_s6 + $0x58] sm:$0xff]   ;;  %v5202_v41 = vld [vmem:[%s6461_s6 + $0x50] sm:$0xff]   ;;  %v5203_v42 = vld [vmem:[%s6461_s6 + $0x88] sm:$0xff]  }
 0x32b   :  { %v5201_v40 = vld [vmem:[%s6461_s6 + $0x18] sm:$0xff]   ;;  %v5204_v43 = vld [vmem:[%s6461_s6 + $0x10] sm:$0xff]   ;;  %v5206_v45 = vld [vmem:[%s6461_s6 + $0x80] sm:$0xff]  }
 0x32c   :  { %v5207_v46 = vld [vmem:[%s6461_s6 + $0x8] sm:$0xff]   ;;  %v5208_v47 = vld [vmem:[%s6461_s6 + $0x40] sm:$0xff]  }
 0x32d   :  { %1665 = vmatpush1.bf16.msra.mxu0 %v5147_v53  ;;  %4698 = vmatpush3.bf16.msra.mxu1 %v5148_v54  ;;  %v5209_v48 = vld [vmem:[%s6461_s6] sm:$0xff]  }
 0x32e   :  { %1666 = vmatprep.subr.bf16.mxu0 %v5149_v55  ;;  %4699 = vmatprep.subr.bf16.mxu1 %v5151_v57 }
 0x331   :  { %1667 = vmatpush1.bf16.msra.mxu0 %v5152_v58  ;;  %4700 = vmatpush3.bf16.msra.mxu1 %v5153_v59  ;;  %v1311_v59 = vld [vmem:[%s6456_s1 + $0x5] sm:$0x7] }
 0x332   :  { %1668 = vmatprep.subr.bf16.mxu0 %v5154_v60  ;;  %4701 = vmatprep.subr.bf16.mxu1 %v5156_v61  ;;  %v1324_v61 = vrot.slane %v1311_v59, %v6127_v4 }
 0x335   :  { %1669 = vmatpush2.bf16.msra.mxu0 %v5157_v62  ;;  %4702 = vmatpush3.bf16.msra.mxu1 %v5158_v63  ;;  %v1316_v62 = vrot.slane %v1311_v59, %v6124_v3 }
 0x336   :  { %1670 = vmatprep.subr.bf16.mxu0 %v5159_v0  ;;  %4703 = vmatprep.subr.bf16.mxu1 %v5161_v1  ;;  %v1320_v0 = vrot.slane %v1311_v59, %v6133_v6 }
 0x339   :  { %1671 = vmatpush2.bf16.msra.mxu0 %v5162_v5  ;;  %4704 = vmatpush3.bf16.msra.mxu1 %v5163_v7 }
 0x33a   :  { %1672 = vmatprep.subr.bf16.mxu0 %v5164_v8  ;;  %4705 = vmatprep.subr.bf16.mxu1 %v5166_v9 }
 0x33d   :  { %1673 = vmatpush2.bf16.msra.mxu0 %v5167_v10  ;;  %4706 = vmatpush3.bf16.msra.mxu1 %v5168_v11 }
 0x33e   :  { %1674 = vmatprep.subr.bf16.mxu0 %v5169_v13  ;;  %4707 = vmatprep.subr.bf16.mxu1 %v5171_v14 }
 0x341   :  { %1675 = vmatpush2.bf16.msra.mxu0 %v5172_v15  ;;  %4708 = vmatpush3.bf16.msra.mxu1 %v5173_v17 }
 0x342   :  { %1676 = vmatprep.subr.bf16.mxu0 %v5174_v18  ;;  %4892 = vmatprep.subr.bf16.mxu1 %v5649_v51 }
 0x344   :  { %1767 = vmatmul.mubr.bf16.vlgmr.msra.gmra.mxu1 %v1308_v21 }
 0x345   :  { %1677 = vmatpush2.bf16.msra.mxu0 %v5176_v19  ;;  %4893 = vmatpush3.bf16.msra.mxu1 %v5177_v20 }
 0x346   :  { %1678 = vmatprep.subr.bf16.mxu0 %v5178_v22  ;;  %4894 = vmatprep.subr.bf16.mxu1 %v5649_v51 }
 0x347   :  { %4900 = vmatprep.mubr.msk.bf16.mxu1 %vm5650_vm0, %v5649_v51 }
 0x349   :  { %1679 = vmatpush2.bf16.msra.mxu0 %v5180_v23  ;;  %4895 = vmatpush3.bf16.msra.mxu1 %v5181_v24 }
 0x34a   :  { %1680 = vmatprep.subr.bf16.mxu0 %v5182_v25  ;;  %4896 = vmatprep.subr.bf16.mxu1 %v5649_v51 }
 0x34d   :  { %1681 = vmatpush2.bf16.msra.mxu0 %v5184_v26  ;;  %4897 = vmatpush3.bf16.msra.mxu1 %v5185_v27  ;;  %v5210_v26 = vld [vmem:[%s6462_s7 + $0x18] sm:$0xff]   ;;  %v5211_v27 = vld [vmem:[%s6462_s7 + $0x10] sm:$0xff]  }
 0x34e   :  { %1682 = vmatprep.subr.bf16.mxu0 %v5186_v12  ;;  %4898 = vmatprep.subr.bf16.mxu1 %v5649_v51  ;;  %v5212_v12 = vld [vmem:[%s6462_s7 + $0x8] sm:$0xff]  }
 0x351   :  { %1683 = vmatpush2.bf16.msra.mxu0 %v5188_v16  ;;  %4899 = vmatpush3.bf16.msra.mxu1 %v5189_v28  ;;  %v5213_v16 = vld [vmem:[%s6462_s7] sm:$0xff]  }
 0x352   :  { %4904 = vmatprep.subr.bf16.mxu1 %v5649_v51  ;;  %4720 = vmatprep.subr.bf16.mxu0 %v5190_v29 }
 0x354   :  { %1685 = vmatmul.mubr.bf16.vlgmr.msra.gmra.mxu0 %v1308_v21  ;;  %4901 = vmatmul.mubr.msk.bf16.vlgmr.msra.gmra.mxu1 %vm1648_vm1, %v6142_v44  ;;  %v5205_v44 = vld [vmem:[%s6461_s6 + $0x48] sm:$0xff]  }
 0x355   :  { %4912 = vmatprep.mubr.msk.bf16.mxu1 %vm5650_vm0, %v5649_v51  ;;  %4721 = vmatpush3.bf16.msra.mxu0 %v5191_v30 }
 0x356   :  { %4722 = vmatprep.subr.bf16.mxu0 %v5192_v31  ;;  %4905 = vmatpush3.bf16.msra.mxu1 %v5197_v36 }
 0x357   :  { %4906 = vmatprep.subr.bf16.mxu1 %v5649_v51 }
 0x359   :  { %4723 = vmatpush3.bf16.msra.mxu0 %v5193_v32 }
 0x35a   :  { %4724 = vmatprep.subr.bf16.mxu0 %v5194_v33  ;;  %4907 = vmatpush3.bf16.msra.mxu1 %v5200_v39 }
 0x35b   :  { %4908 = vmatprep.subr.bf16.mxu1 %v5649_v51 }
 0x35d   :  { %4725 = vmatpush3.bf16.msra.mxu0 %v5195_v34 }
 0x35e   :  { %4726 = vmatprep.subr.bf16.mxu0 %v5196_v35  ;;  %4909 = vmatpush3.bf16.msra.mxu1 %v5203_v42 }
 0x35f   :  { %4910 = vmatprep.subr.bf16.mxu1 %v5649_v51 }
 0x361   :  { %4727 = vmatpush3.bf16.msra.mxu0 %v5198_v37 }
 0x362   :  { %4728 = vmatprep.subr.bf16.mxu0 %v5199_v38  ;;  %4911 = vmatpush3.bf16.msra.mxu1 %v5206_v45 }
 0x363   :  { %4916 = vmatprep.subr.bf16.mxu1 %v5649_v51 }
 0x365   :  { %4729 = vmatpush3.bf16.msra.mxu0 %v5201_v40 }
 0x366   :  { %4730 = vmatprep.subr.bf16.mxu0 %v5202_v41 }
 0x369   :  { %4731 = vmatpush3.bf16.msra.mxu0 %v5204_v43 }
 0x36a   :  { %4732 = vmatprep.subr.bf16.mxu0 %v5205_v44 }
 0x36d   :  { %4733 = vmatpush3.bf16.msra.mxu0 %v5207_v46 }
 0x36e   :  { %4734 = vmatprep.subr.bf16.mxu0 %v5208_v47 }
 0x371   :  { %4735 = vmatpush3.bf16.msra.mxu0 %v5209_v48 }
 0x372   :  { %4928 = vmatprep.subr.bf16.mxu0 %v5649_v51 }
 0x3e4   :  { %v1727_v49 = vpop.f32.mrf.mxu1 }
 0x3e6   :  { %v1729_v50 = vpop.f32.mrf.mxu1 }
 0x3e8   :  { %v1731_v52 = vpop.f32.mrf.mxu1 }
 0x3ea   :  { %v1732_v53 = vpop.f32.mrf.mxu1 }
 0x404   :  { %v4709_v54 = vpop.f32.mrf.mxu1 }
 0x406   :  { %v4710_v55 = vpop.f32.mrf.mxu1 }
 0x407   :  { %v4711_v60 = vadd.f32 %v4710_v55, %v4709_v54 }
 0x408   :  { %v4712_v57 = vpop.f32.mrf.mxu1 }
 0x409   :  { %v1769_v63 = vadd.f32 %v4711_v60, %v1324_v61  ;;  %v2083_v60 = vld [vmem:[%s6456_s1 + $0x8] sm:$0x1] }
 0x40a   :  { %v4713_v58 = vpop.f32.mrf.mxu1 }
 0x414   :  { %v1686_v1 = vpop.f32.mrf.mxu0  ;;  %v1808_v5 = vpop.f32.mrf.mxu1 }
 0x415   :  { %v1687_v7 = vadd.f32 %v1686_v1, %v1316_v62  ;;  %v1809_v8 = vadd.f32 %v1808_v5, %v1769_v63  ;;  %v2084_v63 = vld [vmem:[%s6456_s1 + $0x9] sm:$0x1] }
 0x416   :  { %v1688_v9 = vpop.f32.mrf.mxu0  ;;  %v4902_v10 = vpop.f32.mrf.mxu1 }
 0x417   :  { %v1728_v11 = vadd.f32 %v1727_v49, %v1687_v7  ;;  %v1816_v13 = vmax.f32 %v1809_v8, 0.0  ;;  %v1689_v14 = vadd.f32 %v1688_v9, %v1320_v0 }
 0x418   :  { %v1690_v15 = vpop.f32.mrf.mxu0  ;;  %v1811_v17 = vpop.f32.mrf.mxu1 }
 0x419   :  { %v1859_v18 = vpack.c.bf16 %v1816_v13, %v1816_v13  ;;  %v1730_v19 = vadd.f32 %v1729_v50, %v1689_v14  ;;  %v1814_v20 = vmax.f32 %v1728_v11, 0.0  ;;  %v5214_v13 = vld [vmem:[#allocation13 + $0x8] sm:$0xff]   ;;  %v5215_v14 = vld [vmem:[#allocation13] sm:$0xff]  }
 0x41a   :  { %v1691_v21 = vpop.f32.mrf.mxu0  ;;  %v4903_v22 = vpop.f32.mrf.mxu1 }
 0x41b   :  { %v1815_v23 = vmax.f32 %v1730_v19, 0.0  ;;  %4913 = vmatmul.mubr.msk.bf16.vlgmr.msra.gmra.mxu1 %vm1648_vm1, %v1859_v18  ;;  %v1857_v25 = vpack.c.bf16 %v1814_v20, %v1814_v20 }
 0x41c   :  { %4924 = vmatprep.mubr.msk.bf16.mxu1 %vm5650_vm0, %v5649_v51  ;;  %4917 = vmatpush3.bf16.msra.mxu1 %v5210_v26 }
 0x41d   :  { %v1858_v24 = vpack.c.bf16 %v1815_v23, %v1815_v23  ;;  %4918 = vmatprep.subr.bf16.mxu1 %v5649_v51 }
 0x41f   :  { %2015 = vmatprep.mubr.bf16.mxu0 %v1858_v24 }
 0x420   :  { %2016 = vmatmul.mubr.bf16.vlgmr.msra.gmra.mxu0 %v1857_v25  ;;  %4919 = vmatpush3.bf16.msra.mxu1 %v5211_v27 }
 0x421   :  { %4932 = vmatprep.mubr.msk.bf16.mxu0 %vm5650_vm0, %v5649_v51  ;;  %4920 = vmatprep.subr.bf16.mxu1 %v5649_v51 }
 0x422   :  { %4929 = vmatpush3.bf16.msra.mxu0 %v5214_v13 }
 0x423   :  { %4930 = vmatprep.subr.bf16.mxu0 %v5649_v51 }
 0x424   :  { %4921 = vmatpush3.bf16.msra.mxu1 %v5212_v12 }
 0x425   :  { %4922 = vmatprep.subr.bf16.mxu1 %v5649_v51 }
 0x426   :  { %4931 = vmatpush3.bf16.msra.mxu0 %v5215_v14 }
 0x427   :  { %4936 = vmatprep.subr.bf16.mxu0 %v5649_v51 }
 0x428   :  { %4923 = vmatpush3.bf16.msra.mxu1 %v5213_v16 }
 0x4db   :  { %v2057_v28 = vpop.f32.mrf.mxu1 }
 0x4dd   :  { %v4914_v29 = vpop.f32.mrf.mxu1 }
 0x4df   :  { %v2060_v30 = vpop.f32.mrf.mxu1 }
 0x4e0   :  { %v4736_v31 = vpop.f32.mrf.mxu0 }
 0x4e1   :  { %v4915_v32 = vpop.f32.mrf.mxu1 }
 0x4e2   :  { %v4737_v33 = vpop.f32.mrf.mxu0 }
 0x4e3   :  { %v4738_v34 = vadd.f32 %v4737_v33, %v4736_v31 }
 0x4e4   :  { %v4739_v35 = vpop.f32.mrf.mxu0 }
 0x4e5   :  { %v2058_v36 = vadd.f32 %v4738_v34, %v2057_v28 }
 0x4e6   :  { %v4740_v37 = vpop.f32.mrf.mxu0 }
 0x4e7   :  { %v2063_v38 = vsel %vm1648_vm1, %v2058_v36, 0.0  ;;  %v2072_v39 = vmul.f32 %v2058_v36, %v2058_v36 }
 0x4e8   :  { %v2064_v40 = vrot.slane %v2063_v38, 4 }
 0x4e9   :  { %v2073_v41 = vsel %vm1648_vm1, %v2072_v39, 0.0 }
 0x4ea   :  { %v2065_v42 = vadd.f32 %v2064_v40, %v2063_v38  ;;  %v2074_v43 = vrot.slane %v2073_v41, 4  ;;  %v2201_v38 = vld [vmem:[%s6456_s1 + $0xa] sm:$0x1] }
 0x4ec   :  { %v2066_v44 = vrot.slane %v2065_v42, 2  ;;  %v2075_v45 = vadd.f32 %v2074_v43, %v2073_v41  ;;  %v2202_v41 = vld [vmem:[%s6456_s1 + $0xb] sm:$0x1] }
 0x4ee   :  { %v2067_v46 = vadd.f32 %v2066_v44, %v2065_v42  ;;  %v2076_v47 = vrot.slane %v2075_v45, 2 }
 0x4f0   :  { %v2068_v48 = vrot.slane %v2067_v46, 1  ;;  %v2077_v49 = vadd.f32 %v2076_v47, %v2075_v45 }
 0x4f2   :  { %v2069_v50 = vadd.f32 %v2068_v48, %v2067_v46  ;;  %v2078_v52 = vrot.slane %v2077_v49, 1 }
 0x4f4   :  { %v2071_v53 = vmul.f32 0.125, %v2069_v50  ;;  %v2079_v54 = vadd.f32 %v2078_v52, %v2077_v49  ;;  %v5218_v49 = vld [vmem:[#allocation15 + $0x4c] ss:$12 sps:$4 sm:$0xff]   ;;  %v5216_v50 = vld [vmem:[#allocation15 + $0x48] ss:$12 sps:$4 sm:$0xff]  }
 0x4f5   :  { %v5219_v52 = vld [vmem:[#allocation15 + $0x50] ss:$12 sps:$4 sm:$0xff]   ;;  %2416 = vmatprep.subr.bf16.mxu1 %v5218_v49 }
 0x4f6   :  { %v2080_v55 = vmul.f32 0.125, %v2079_v54  ;;  %v2081_v57 = vmul.f32 %v2071_v53, %v2071_v53  ;;  %v5220_v54 = vld [vmem:[#allocation15 + $0x30] ss:$12 sps:$4 sm:$0xff]  }
 0x4f8   :  { %v2082_v58 = vsub.f32 %v2080_v55, %v2081_v57  ;;  %v5223_v55 = vld [vmem:[#allocation15 + $0x38] ss:$12 sps:$4 sm:$0xff]   ;;  %v5226_v57 = vld [vmem:[#allocation15 + $0x1c] ss:$12 sps:$4 sm:$0xff]  }
 0x4fa   :  { %v2085_v59 = vadd.f32 1e-05, %v2082_v58  ;;  %v5224_v58 = vld [vmem:[#allocation15 + $0x18] ss:$12 sps:$4 sm:$0xff]  }
 0x4fc   :  { %5232 = vrsqrt.f32 %v2085_v59  ;;  %v5227_v59 = vld [vmem:[#allocation15 + $0x20] ss:$12 sps:$4 sm:$0xff]  }
 0x509   :  { %v5233_v61 = vpop.eup %5232 }
 0x50a   :  { %v2087_v62 = vmul.f32 %v5233_v61, %v2083_v60  ;;  %v5230_v60 = vld [vmem:[#allocation15 + $0x4] ss:$12 sps:$4 sm:$0xff]   ;;  %v5228_v61 = vld [vmem:[#allocation15] ss:$12 sps:$4 sm:$0xff]  }
 0x50c   :  { %v2088_v0 = vmul.f32 %v2087_v62, %v2071_v53  ;;  %v2094_v1 = vrot.slane %v2087_v62, %v6124_v3  ;;  %v5222_v53 = vld [vmem:[#allocation15 + $0x34] ss:$12 sps:$4 sm:$0xff]  }
 0x50d   :  { %v5231_v62 = vld [vmem:[#allocation15 + $0x8] ss:$12 sps:$4 sm:$0xff]  }
 0x50e   :  { %v2089_v5 = vsub.f32 %v2084_v63, %v2088_v0  ;;  %v2096_v7 = vmul.f32 %v2094_v1, %v2058_v36 }
 0x510   :  { %v2101_v8 = vrot.slane %v2089_v5, %v6124_v3 }
 0x512   :  { %v2103_v9 = vadd.f32 %v2101_v8, %v2096_v7 }
 0x514   :  { %v2104_v10 = vmax.f32 %v2103_v9, 0.0 }
 0x516   :  { %v2113_v11 = vpack.c.bf16 %v2104_v10, %v2104_v10 }
 0x518   :  { %4925 = vmatmul.mubr.msk.bf16.vlgmr.msra.gmra.mxu1 %vm1648_vm1, %v2113_v11 }
 0x519   :  { %2440 = vmatprep.mubr.bf16.mxu1 %v5651_v56  ;;  %2417 = vmatpush1.bf16.msra.mxu1 %v5216_v50 }
 0x51a   :  { %2418 = vmatprep.subr.bf16.mxu1 %v5222_v53 }
 0x51d   :  { %2419 = vmatpush1.bf16.msra.mxu1 %v5220_v54 }
 0x51e   :  { %2420 = vmatprep.subr.bf16.mxu1 %v5226_v57 }
 0x521   :  { %2421 = vmatpush1.bf16.msra.mxu1 %v5224_v58 }
 0x522   :  { %2422 = vmatprep.subr.bf16.mxu1 %v5230_v60 }
 0x525   :  { %2423 = vmatpush1.bf16.msra.mxu1 %v5228_v61 }
 0x5d8   :  { %v2175_v15 = vpop.f32.mrf.mxu1 }
 0x5d9   :  { %v2182_v17 = vsel %vm2181_vm2, %v2175_v15, 0.0  ;;  %v2190_v18 = vmul.f32 %v2175_v15, %v2175_v15 }
 0x5da   :  { %v2183_v19 = vrot.slane %v2182_v17, 4  ;;  %v4926_v20 = vpop.f32.mrf.mxu1 }
 0x5db   :  { %v2191_v21 = vsel %vm2181_vm2, %v2190_v18, 0.0 }
 0x5dc   :  { %v2184_v22 = vadd.f32 %v2183_v19, %v2182_v17  ;;  %v2192_v23 = vrot.slane %v2191_v21, 4  ;;  %v2178_v24 = vpop.f32.mrf.mxu1 }
 0x5de   :  { %v2185_v25 = vrot.slane %v2184_v22, 2  ;;  %v2193_v26 = vadd.f32 %v2192_v23, %v2191_v21  ;;  %v4927_v27 = vpop.f32.mrf.mxu1 }
 0x5e0   :  { %v2186_v12 = vadd.f32 %v2185_v25, %v2184_v22  ;;  %v2194_v16 = vrot.slane %v2193_v26, 2 }
 0x5e2   :  { %v2187_v28 = vrot.slane %v2186_v12, 1  ;;  %v2195_v29 = vadd.f32 %v2194_v16, %v2193_v26  ;;  %v2302_v16 = vld [vmem:[%s6456_s1 + $0xc] sm:$0x1] }
 0x5e4   :  { %v2188_v30 = vadd.f32 %v2187_v28, %v2186_v12  ;;  %v2196_v31 = vrot.slane %v2195_v29, 1 }
 0x5e6   :  { %v2189_v32 = vmul.f32 0.125, %v2188_v30  ;;  %v2197_v33 = vadd.f32 %v2196_v31, %v2195_v29  ;;  %v2303_v30 = vld [vmem:[%s6456_s1 + $0xd] sm:$0x1] }
 0x5e8   :  { %v2198_v34 = vmul.f32 0.125, %v2197_v33  ;;  %v2199_v35 = vmul.f32 %v2189_v32, %v2189_v32 }
 0x5ea   :  { %v2200_v36 = vsub.f32 %v2198_v34, %v2199_v35 }
 0x5ec   :  { %v2203_v37 = vadd.f32 1e-05, %v2200_v36 }
 0x5ee   :  { %5234 = vrsqrt.f32 %v2203_v37 }
 0x5fb   :  { %v5235_v39 = vpop.eup %5234 }
 0x5fc   :  { %v2205_v40 = vmul.f32 %v5235_v39, %v2201_v38 }
 0x5fe   :  { %v2206_v42 = vmul.f32 %v2205_v40, %v2189_v32  ;;  %v2212_v43 = vrot.slane %v2205_v40, %v6124_v3 }
 0x600   :  { %v2207_v44 = vsub.f32 %v2202_v41, %v2206_v42  ;;  %v2214_v45 = vmul.f32 %v2212_v43, %v2175_v15 }
 0x602   :  { %v2219_v46 = vrot.slane %v2207_v44, %v6124_v3 }
 0x604   :  { %v2221_v47 = vadd.f32 %v2219_v46, %v2214_v45 }
 0x606   :  { %2222 = vst.msk [vmem:[#allocation18] sm:$0xff] %vm2181_vm2, %v2221_v47  ;;  %v2227_v48 = vpack.c.bf16 %v2221_v47, %v2221_v47 }
 0x608   :  { %4933 = vmatmul.mubr.msk.bf16.vlgmr.msra.gmra.mxu0 %vm2181_vm2, %v2227_v48 }
 0x609   :  { %4944 = vmatprep.mubr.msk.bf16.mxu0 %vm5650_vm0, %v5649_v51  ;;  %4937 = vmatpush3.bf16.msra.mxu0 %v5219_v52 }
 0x60a   :  { %4938 = vmatprep.subr.bf16.mxu0 %v5649_v51 }
 0x60d   :  { %4939 = vmatpush3.bf16.msra.mxu0 %v5223_v55 }
 0x60e   :  { %4940 = vmatprep.subr.bf16.mxu0 %v5649_v51 }
 0x611   :  { %4941 = vmatpush3.bf16.msra.mxu0 %v5227_v59 }
 0x612   :  { %4942 = vmatprep.subr.bf16.mxu0 %v5649_v51 }
 0x615   :  { %4943 = vmatpush3.bf16.msra.mxu0 %v5231_v62 }
 0x6c8   :  { %v2277_v63 = vpop.f32.mrf.mxu0 }
 0x6c9   :  { %v2283_v0 = vsel %vm1648_vm1, %v2277_v63, 0.0  ;;  %v2291_v1 = vmul.f32 %v2277_v63, %v2277_v63 }
 0x6ca   :  { %v2284_v5 = vrot.slane %v2283_v0, 4  ;;  %v4934_v7 = vpop.f32.mrf.mxu0 }
 0x6cb   :  { %v2292_v8 = vsel %vm1648_vm1, %v2291_v1, 0.0 }
 0x6cc   :  { %v2285_v9 = vadd.f32 %v2284_v5, %v2283_v0  ;;  %v2293_v10 = vrot.slane %v2292_v8, 4  ;;  %v2280_v11 = vpop.f32.mrf.mxu0 }
 0x6ce   :  { %v2286_v13 = vrot.slane %v2285_v9, 2  ;;  %v2294_v14 = vadd.f32 %v2293_v10, %v2292_v8  ;;  %v4935_v15 = vpop.f32.mrf.mxu0 }
 0x6d0   :  { %v2287_v17 = vadd.f32 %v2286_v13, %v2285_v9  ;;  %v2295_v18 = vrot.slane %v2294_v14, 2 }
 0x6d2   :  { %v2288_v19 = vrot.slane %v2287_v17, 1  ;;  %v2296_v20 = vadd.f32 %v2295_v18, %v2294_v14 }
 0x6d4   :  { %v2289_v21 = vadd.f32 %v2288_v19, %v2287_v17  ;;  %v2297_v22 = vrot.slane %v2296_v20, 1 }
 0x6d6   :  { %v2290_v23 = vmul.f32 0.125, %v2289_v21  ;;  %v2298_v24 = vadd.f32 %v2297_v22, %v2296_v20 }
 0x6d8   :  { %v2299_v25 = vmul.f32 0.125, %v2298_v24  ;;  %v2300_v26 = vmul.f32 %v2290_v23, %v2290_v23 }
 0x6da   :  { %v2301_v27 = vsub.f32 %v2299_v25, %v2300_v26 }
 0x6dc   :  { %v2304_v12 = vadd.f32 1e-05, %v2301_v27 }
 0x6de   :  { %5236 = vrsqrt.f32 %v2304_v12 }
 0x6eb   :  { %v5237_v28 = vpop.eup %5236 }
 0x6ec   :  { %v2306_v29 = vmul.f32 %v5237_v28, %v2302_v16 }
 0x6ee   :  { %v2307_v31 = vmul.f32 %v2306_v29, %v2290_v23  ;;  %v2313_v32 = vrot.slane %v2306_v29, %v6124_v3 }
 0x6f0   :  { %v2308_v33 = vsub.f32 %v2303_v30, %v2307_v31  ;;  %v2315_v34 = vmul.f32 %v2313_v32, %v2277_v63 }
 0x6f2   :  { %v2320_v35 = vrot.slane %v2308_v33, %v6124_v3 }
 0x6f4   :  { %v2322_v36 = vadd.f32 %v2320_v35, %v2315_v34 }
 0x6f6   :  { %v2323_v37 = vmax.f32 %v2322_v36, 0.0 }
 0x6f8   :  { %v2340_v38 = vpack.c.bf16 %v2323_v37, %v2323_v37 }
 0x6fa   :  { %4485 = vmatmul.mubr.msk.bf16.vlgmr.msra.gmra.mxu1 %vm1648_vm1, %v2340_v38  ;;  %4945 = vmatmul.mubr.msk.bf16.vlgmr.msra.gmra.mxu0 %vm1648_vm1, %v2340_v38 }
 0x7ba   :  { %v6294_v39 = vpop.f32.mrf.mxu1  ;;  %v6296_v40 = vpop.f32.mrf.mxu0 }
 0x7bb   :  { %v2489_v41 = vrot.slane %v6294_v39, 4  ;;  %v2511_v42 = vmul.f32 %v6294_v39, %v6294_v39  ;;  %v2501_v43 = vsel %vm1648_vm1, %v6296_v40, 0.0  ;;  %v2513_v44 = vmul.f32 %v6296_v40, %v6296_v40 }
 0x7bc   :  { %v2502_v45 = vrot.slane %v2501_v43, 4  ;;  %v6305_v46 = vpop.f32.mrf.mxu1  ;;  %v4946_v47 = vpop.f32.mrf.mxu0 }
 0x7bd   :  { %v2490_v48 = vadd.f32 %v2489_v41, %v6294_v39  ;;  %v2514_v49 = vrot.slane %v2511_v42, 4  ;;  %v2526_v50 = vsel %vm1648_vm1, %v2513_v44, 0.0  ;;  %v2495_v52 = vrot.slane %v6305_v46, 4 }
 0x7be   :  { %v2503_v53 = vadd.f32 %v2502_v45, %v2501_v43  ;;  %v2527_v54 = vrot.slane %v2526_v50, 4  ;;  %v2512_v55 = vmul.f32 %v6305_v46, %v6305_v46  ;;  %v2446_v57 = vpop.f32.mrf.mxu1  ;;  %v2486_v58 = vpop.f32.mrf.mxu0 }
 0x7bf   :  { %v2491_v59 = vrot.slane %v2490_v48, 2  ;;  %v2515_v60 = vadd.f32 %v2514_v49, %v2511_v42  ;;  %v2496_v61 = vadd.f32 %v2495_v52, %v6305_v46 }
 0x7c0   :  { %v2504_v62 = vrot.slane %v2503_v53, 2  ;;  %v2528_v63 = vadd.f32 %v2527_v54, %v2526_v50  ;;  %v2520_v0 = vrot.slane %v2512_v55, 4  ;;  %v2447_v1 = vpop.f32.mrf.mxu1  ;;  %v4947_v5 = vpop.f32.mrf.mxu0 }
 0x7c1   :  { %v2492_v7 = vadd.f32 %v2491_v59, %v2490_v48  ;;  %v2516_v8 = vrot.slane %v2515_v60, 2  ;;  %v2497_v9 = vrot.slane %v2496_v61, 2  ;;  %v5653_v48 = vmov 1966171168  }
 0x7c2   :  { %v2505_v10 = vadd.f32 %v2504_v62, %v2503_v53  ;;  %v2529_v11 = vrot.slane %v2528_v63, 2  ;;  %v2521_v13 = vadd.f32 %v2520_v0, %v2512_v55  ;;  %v2555_v49 = vunpack.c.l.s4 %v5653_v48 }
 0x7c3   :  { %v2493_v14 = vrot.slane %v2492_v7, 1  ;;  %v2517_v15 = vadd.f32 %v2516_v8, %v2515_v60  ;;  %v2498_v17 = vadd.f32 %v2497_v9, %v2496_v61  ;;  %v2542_v61 = vld [vmem:[%s6456_s1 + $0xe] sm:$0x7] }
 0x7c4   :  { %v2506_v18 = vrot.slane %v2505_v10, 1  ;;  %v2530_v19 = vadd.f32 %v2529_v11, %v2528_v63  ;;  %v2522_v20 = vrot.slane %v2521_v13, 2  ;;  %v2556_v50 = vunpack.c.0.s8 %v2555_v49 }
 0x7c5   :  { %v2494_v21 = vadd.f32 %v2493_v14, %v2492_v7  ;;  %v2518_v22 = vrot.slane %v2517_v15, 1  ;;  %v2499_v23 = vrot.slane %v2498_v17, 1 }
 0x7c6   :  { %v2507_v24 = vadd.f32 %v2506_v18, %v2505_v10  ;;  %v2531_v25 = vrot.slane %v2530_v19, 1  ;;  %v2523_v26 = vadd.f32 %v2522_v20, %v2521_v13  ;;  %v6314_v54 = vsub.s32 %v2556_v50, %v6121_v2 }
 0x7c7   :  { %v2508_v27 = vmul.f32 0.125, %v2494_v21  ;;  %v2519_v12 = vadd.f32 %v2518_v22, %v2517_v15  ;;  %v2500_v16 = vadd.f32 %v2499_v23, %v2498_v17  ;;  %v2543_v15 = vld [vmem:[%s6456_s1 + $0x11] sm:$0x7] }
 0x7c8   :  { %v2510_v28 = vmul.f32 0.125, %v2507_v24  ;;  %v2532_v29 = vadd.f32 %v2531_v25, %v2530_v19  ;;  %v2524_v30 = vrot.slane %v2523_v26, 1 }
 0x7c9   :  { %v2533_v31 = vmul.f32 0.125, %v2519_v12  ;;  %v2536_v32 = vmul.f32 %v2508_v27, %v2508_v27  ;;  %v2509_v33 = vmul.f32 0.125, %v2500_v16 }
 0x7ca   :  { %v2535_v34 = vmul.f32 0.125, %v2532_v29  ;;  %v2538_v35 = vmul.f32 %v2510_v28, %v2510_v28  ;;  %v2525_v36 = vadd.f32 %v2524_v30, %v2523_v26 }
 0x7cb   :  { %v2539_v37 = vsub.f32 %v2533_v31, %v2536_v32  ;;  %v2537_v38 = vmul.f32 %v2509_v33, %v2509_v33 }
 0x7cc   :  { %v2541_v41 = vsub.f32 %v2535_v34, %v2538_v35  ;;  %v2534_v42 = vmul.f32 0.125, %v2525_v36 }
 0x7cd   :  { %v2544_v43 = vadd.f32 1e-05, %v2539_v37 }
 0x7ce   :  { %v2546_v44 = vadd.f32 1e-05, %v2541_v41  ;;  %v2540_v45 = vsub.f32 %v2534_v42, %v2537_v38 }
 0x7cf   :  { %5238 = vrsqrt.f32 %v2544_v43 }
 0x7d0   :  { %v2545_v47 = vadd.f32 1e-05, %v2540_v45  ;;  %5240 = vrsqrt.f32 %v2546_v44 }
 0x7d2   :  { %5242 = vrsqrt.f32 %v2545_v47 }
 0x7dc   :  { %v5239_v52 = vpop.eup %5238 }
 0x7dd   :  { %v5241_v53 = vpop.eup %5240 }
 0x7de   :  { %v2567_v59 = vrot.slane %v5241_v53, %v6314_v54 }
 0x7df   :  { %v5243_v55 = vpop.eup %5242 }
 0x7e0   :  { %v2553_v57 = vcombine.low %v5239_v52, %v5243_v55 }
 0x7e2   :  { %v2560_v58 = vrot.slane %v2553_v57, %v6314_v54 }
 0x7e4   :  { %v2568_v60 = vcombine.low %v2560_v58, %v2567_v59 }
 0x7e6   :  { %v2575_v62 = vrot.slane %v2568_v60, %v6314_v54 }
 0x7e8   :  { %v2577_v63 = vmul.f32 %v2575_v62, %v2542_v61 }
 0x7ea   :  { %v2582_v0 = vrot.slane %v2577_v63, %v6124_v3  ;;  %v2586_v1 = vrot.slane %v2577_v63, %v6133_v6  ;;  %v2590_v5 = vrot.slane %v2577_v63, %v6127_v4 }
 0x7ec   :  { %v2594_v7 = vmul.f32 %v2582_v0, %v2508_v27  ;;  %v2595_v8 = vmul.f32 %v2586_v1, %v2509_v33  ;;  %v2596_v9 = vmul.f32 %v2590_v5, %v2510_v28  ;;  %v2625_v19 = vmul.f32 %v2582_v0, %v6294_v39 }
 0x7ed   :  { %v2626_v20 = vmul.f32 %v2586_v1, %v6305_v46  ;;  %v2627_v21 = vmul.f32 %v2590_v5, %v6296_v40 }
 0x7ee   :  { %v2600_v10 = vcombine.low %v2594_v7, %v2595_v8  ;;  %v2614_v13 = vrot.slane %v2596_v9, %v6314_v54 }
 0x7f0   :  { %v2607_v11 = vrot.slane %v2600_v10, %v6314_v54 }
 0x7f2   :  { %v2615_v14 = vcombine.low %v2607_v11, %v2614_v13 }
 0x7f4   :  { %v2622_v17 = vrot.slane %v2615_v14, %v6314_v54 }
 0x7f6   :  { %v2624_v18 = vsub.f32 %v2543_v15, %v2622_v17 }
 0x7f8   :  { %v2632_v22 = vrot.slane %v2624_v18, %v6124_v3  ;;  %v2636_v23 = vrot.slane %v2624_v18, %v6133_v6  ;;  %v2640_v24 = vrot.slane %v2624_v18, %v6127_v4 }
 0x7fa   :  { %v6337_v25 = vadd.f32 %v2632_v22, %v2625_v19  ;;  %v2645_v26 = vadd.f32 %v2636_v23, %v2626_v20  ;;  %v2646_v27 = vadd.f32 %v2640_v24, %v2627_v21 }
 0x7fc   :  { %v2647_v12 = vmax.f32 %v6337_v25, 0.0  ;;  %v2648_v16 = vmax.f32 %v2645_v26, 0.0  ;;  %v2649_v28 = vmax.f32 %v2646_v27, 0.0 }
 0x7fd   :  { %5628 = dma.done.wait [#allocation6 + $0x1], 7680 }
 0x7fe   :  { %5629 = vsyncadd [#allocation6 + $0x1], 4294959616  ;;  %3131 = vmatprep.mubr.bf16.mxu0 %v5651_v56  ;;  %v2733_v39 = vpack.c.bf16 %v2648_v16, %v2648_v16  ;;  %v5244_v40 = vld [vmem:[#allocation3 + $0xac] ss:$12 sps:$4 sm:$0xff]   ;;  %v5248_v29 = vld [vmem:[#allocation3 + $0xa8] ss:$12 sps:$4 sm:$0xff]   ;;  %v6341_v49 = vpack.c.bf16 %v2649_v28, %v2649_v28  ;;  %v2732_v26 = vpack.c.bf16 %v2647_v12, %v2647_v12 }
 0x7ff   :  { %v5246_v46 = vld [vmem:[#allocation3 + $0x1cc] ss:$12 sps:$4 sm:$0xff]   ;;  %3058 = vmatprep.subr.bf16.mxu1 %v5244_v40  ;;  %v5249_v30 = vld [vmem:[#allocation3 + $0x1c8] ss:$12 sps:$4 sm:$0xff]   ;;  %v5254_v33 = vld [vmem:[#allocation3 + $0x90] ss:$12 sps:$4 sm:$0xff]  }
 0x800   :  { %3090 = vmatprep.mubr.bf16.mxu1 %v2733_v39  ;;  %3107 = vmatprep.subr.bf16.mxu0 %v5246_v46  ;;  %v5250_v31 = vld [vmem:[#allocation3 + $0x94] ss:$12 sps:$4 sm:$0xff]   ;;  %v5255_v34 = vld [vmem:[#allocation3 + $0x1b0] ss:$12 sps:$4 sm:$0xff]   ;;  %v5260_v37 = vld [vmem:[#allocation3 + $0x78] ss:$12 sps:$4 sm:$0xff]  }
 0x801   :  { %3059 = vmatpush1.bf16.msra.mxu1 %v5248_v29  ;;  %3108 = vmatpush1.bf16.msra.mxu0 %v5249_v30  ;;  %v5252_v32 = vld [vmem:[#allocation3 + $0x1b4] ss:$12 sps:$4 sm:$0xff]   ;;  %v5256_v35 = vld [vmem:[#allocation3 + $0x7c] ss:$12 sps:$4 sm:$0xff]   ;;  %v5261_v38 = vld [vmem:[#allocation3 + $0x198] ss:$12 sps:$4 sm:$0xff]  }
 0x802   :  { %3060 = vmatprep.subr.bf16.mxu1 %v5250_v31  ;;  %3109 = vmatprep.subr.bf16.mxu0 %v5252_v32  ;;  %v5258_v36 = vld [vmem:[#allocation3 + $0x19c] ss:$12 sps:$4 sm:$0xff]   ;;  %v5262_v41 = vld [vmem:[#allocation3 + $0x64] ss:$12 sps:$4 sm:$0xff]   ;;  %v5266_v43 = vld [vmem:[#allocation3 + $0x60] ss:$12 sps:$4 sm:$0xff]  }
 0x803   :  { %v5264_v42 = vld [vmem:[#allocation3 + $0x184] ss:$12 sps:$4 sm:$0xff]   ;;  %v5267_v44 = vld [vmem:[#allocation3 + $0x180] ss:$12 sps:$4 sm:$0xff]   ;;  %v5271_v48 = vld [vmem:[#allocation3 + $0x48] ss:$12 sps:$4 sm:$0xff]  }
 0x804   :  { %v5268_v45 = vld [vmem:[#allocation3 + $0x4c] ss:$12 sps:$4 sm:$0xff]   ;;  %v5270_v47 = vld [vmem:[#allocation3 + $0x170] ss:$12 sps:$4 sm:$0xff]   ;;  %v5273_v52 = vld [vmem:[#allocation3 + $0x34] ss:$12 sps:$4 sm:$0xff]  }
 0x805   :  { %3061 = vmatpush1.bf16.msra.mxu1 %v5254_v33  ;;  %3110 = vmatpush1.bf16.msra.mxu0 %v5255_v34  ;;  %v5272_v50 = vld [vmem:[#allocation3 + $0xb0] ss:$12 sps:$4 sm:$0xff]   ;;  %v5275_v53 = vld [vmem:[#allocation3 + $0x158] ss:$12 sps:$4 sm:$0xff]   ;;  %v5280_v59 = vld [vmem:[#allocation3 + $0x140] ss:$12 sps:$4 sm:$0xff]  }
 0x806   :  { %3062 = vmatprep.subr.bf16.mxu1 %v5256_v35  ;;  %3111 = vmatprep.subr.bf16.mxu0 %v5258_v36  ;;  %v5276_v55 = vld [vmem:[#allocation3 + $0x30] ss:$12 sps:$4 sm:$0xff]   ;;  %v5277_v57 = vld [vmem:[#allocation3 + $0x98] ss:$12 sps:$4 sm:$0xff]   ;;  %v5282_v61 = vld [vmem:[#allocation3 + $0x80] ss:$12 sps:$4 sm:$0xff]  }
 0x807   :  { %v5278_v58 = vld [vmem:[#allocation3 + $0x1c] ss:$12 sps:$4 sm:$0xff]   ;;  %v5281_v60 = vld [vmem:[#allocation3 + $0x18] ss:$12 sps:$4 sm:$0xff]   ;;  %v5286_v0 = vld [vmem:[#allocation3] ss:$12 sps:$4 sm:$0xff]  }
 0x808   :  { %v5283_v62 = vld [vmem:[#allocation3 + $0x4] ss:$12 sps:$4 sm:$0xff]   ;;  %v5285_v63 = vld [vmem:[#allocation3 + $0x128] ss:$12 sps:$4 sm:$0xff]   ;;  %v5288_v5 = vld [vmem:[#allocation3 + $0x16c] ss:$12 sps:$4 sm:$0xff]  }
 0x809   :  { %3063 = vmatpush1.bf16.msra.mxu1 %v5260_v37  ;;  %3112 = vmatpush1.bf16.msra.mxu0 %v5261_v38  ;;  %v5287_v1 = vld [vmem:[#allocation3 + $0x68] ss:$12 sps:$4 sm:$0xff]   ;;  %v5290_v7 = vld [vmem:[#allocation3 + $0x110] ss:$12 sps:$4 sm:$0xff]   ;;  %v5295_v11 = vld [vmem:[#allocation3 + $0xf8] ss:$12 sps:$4 sm:$0xff]  }
 0x80a   :  { %3064 = vmatprep.subr.bf16.mxu1 %v5262_v41  ;;  %3113 = vmatprep.subr.bf16.mxu0 %v5264_v42  ;;  %v5291_v8 = vld [vmem:[#allocation3 + $0x168] ss:$12 sps:$4 sm:$0xff]   ;;  %v5292_v9 = vld [vmem:[#allocation3 + $0x50] ss:$12 sps:$4 sm:$0xff]   ;;  %v5297_v14 = vld [vmem:[#allocation3 + $0x38] ss:$12 sps:$4 sm:$0xff]  }
 0x80b   :  { %v5293_v10 = vld [vmem:[#allocation3 + $0x154] ss:$12 sps:$4 sm:$0xff]   ;;  %v5296_v13 = vld [vmem:[#allocation3 + $0x150] ss:$12 sps:$4 sm:$0xff]   ;;  %v5301_v18 = vld [vmem:[#allocation3 + $0x138] ss:$12 sps:$4 sm:$0xff]  }
 0x80c   :  { %v5298_v15 = vld [vmem:[#allocation3 + $0x13c] ss:$12 sps:$4 sm:$0xff]   ;;  %v5300_v17 = vld [vmem:[#allocation3 + $0xe0] ss:$12 sps:$4 sm:$0xff]   ;;  %v5303_v20 = vld [vmem:[#allocation3 + $0x124] ss:$12 sps:$4 sm:$0xff]  }
 0x80d   :  { %3065 = vmatpush1.bf16.msra.mxu1 %v5266_v43  ;;  %3114 = vmatpush1.bf16.msra.mxu0 %v5267_v44  ;;  %v5302_v19 = vld [vmem:[#allocation3 + $0x20] ss:$12 sps:$4 sm:$0xff]   ;;  %v5305_v21 = vld [vmem:[#allocation3 + $0xc8] ss:$12 sps:$4 sm:$0xff]   ;;  %v5311_v16 = vld [vmem:[#allocation3 + $0x1d0] ss:$12 sps:$4 sm:$0xff]  }
 0x80e   :  { %3066 = vmatprep.subr.bf16.mxu1 %v5268_v45  ;;  %4760 = vmatprep.subr.bf16.mxu0 %v5270_v47  ;;  %v5306_v22 = vld [vmem:[#allocation3 + $0x120] ss:$12 sps:$4 sm:$0xff]   ;;  %v5307_v23 = vld [vmem:[#allocation3 + $0x8] ss:$12 sps:$4 sm:$0xff]   ;;  %v5315_v40 = vld [vmem:[#allocation3 + $0x1b8] ss:$12 sps:$4 sm:$0xff]  }
 0x80f   :  { %v5308_v24 = vld [vmem:[#allocation3 + $0x10c] ss:$12 sps:$4 sm:$0xff]   ;;  %v5310_v27 = vld [vmem:[#allocation3 + $0x108] ss:$12 sps:$4 sm:$0xff]   ;;  %v5320_v29 = vld [vmem:[#allocation3 + $0xc4] ss:$12 sps:$4 sm:$0xff]  }
 0x810   :  { %4547 = vmatmul.mubr.msk.bf16.vlgmr.msra.gmra.mxu0 %vm1648_vm1, %v6341_v49  ;;  %v5312_v28 = vld [vmem:[#allocation3 + $0xf4] ss:$12 sps:$4 sm:$0xff]   ;;  %v5316_v46 = vld [vmem:[#allocation3 + $0xdc] ss:$12 sps:$4 sm:$0xff]   ;;  %v5318_v25 = vld [vmem:[#allocation3 + $0xd8] ss:$12 sps:$4 sm:$0xff]  }
 0x811   :  { %3067 = vmatpush1.bf16.msra.mxu1 %v5271_v48  ;;  %4761 = vmatpush3.bf16.msra.mxu0 %v5272_v50  ;;  %v5319_v12 = vld [vmem:[#allocation3 + $0x1a0] ss:$12 sps:$4 sm:$0xff]   ;;  %v5323_v31 = vld [vmem:[#allocation3 + $0x188] ss:$12 sps:$4 sm:$0xff]  }
 0x812   :  { %3068 = vmatprep.subr.bf16.mxu1 %v5273_v52  ;;  %4762 = vmatprep.subr.bf16.mxu0 %v5275_v53  ;;  %v5322_v30 = vld [vmem:[#allocation3 + $0xc0] ss:$12 sps:$4 sm:$0xff]  }
 0x813   :  { %3172 = vmatprep.mubr.bf16.mxu0 %v2733_v39  ;;  %v5314_v39 = vld [vmem:[#allocation3 + $0xf0] ss:$12 sps:$4 sm:$0xff]  }
 0x815   :  { %3069 = vmatpush1.bf16.msra.mxu1 %v5276_v55  ;;  %4763 = vmatpush3.bf16.msra.mxu0 %v5277_v57 }
 0x816   :  { %3070 = vmatprep.subr.bf16.mxu1 %v5278_v58  ;;  %4764 = vmatprep.subr.bf16.mxu0 %v5280_v59 }
 0x819   :  { %3071 = vmatpush1.bf16.msra.mxu1 %v5281_v60  ;;  %4765 = vmatpush3.bf16.msra.mxu0 %v5282_v61 }
 0x81a   :  { %3072 = vmatprep.subr.bf16.mxu1 %v5283_v62  ;;  %4766 = vmatprep.subr.bf16.mxu0 %v5285_v63 }
 0x81d   :  { %3073 = vmatpush1.bf16.msra.mxu1 %v5286_v0  ;;  %4767 = vmatpush3.bf16.msra.mxu0 %v5287_v1 }
 0x81e   :  { %3074 = vmatprep.subr.bf16.mxu1 %v5288_v5  ;;  %4768 = vmatprep.subr.bf16.mxu0 %v5290_v7 }
 0x821   :  { %3075 = vmatpush2.bf16.msra.mxu1 %v5291_v8  ;;  %4769 = vmatpush3.bf16.msra.mxu0 %v5292_v9 }
 0x822   :  { %3076 = vmatprep.subr.bf16.mxu1 %v5293_v10  ;;  %4770 = vmatprep.subr.bf16.mxu0 %v5295_v11 }
 0x825   :  { %3077 = vmatpush2.bf16.msra.mxu1 %v5296_v13  ;;  %4771 = vmatpush3.bf16.msra.mxu0 %v5297_v14 }
 0x826   :  { %3078 = vmatprep.subr.bf16.mxu1 %v5298_v15  ;;  %4772 = vmatprep.subr.bf16.mxu0 %v5300_v17 }
 0x829   :  { %3079 = vmatpush2.bf16.msra.mxu1 %v5301_v18  ;;  %4773 = vmatpush3.bf16.msra.mxu0 %v5302_v19 }
 0x82a   :  { %3080 = vmatprep.subr.bf16.mxu1 %v5303_v20  ;;  %4774 = vmatprep.subr.bf16.mxu0 %v5305_v21 }
 0x82d   :  { %3081 = vmatpush2.bf16.msra.mxu1 %v5306_v22  ;;  %4775 = vmatpush3.bf16.msra.mxu0 %v5307_v23 }
 0x82e   :  { %3082 = vmatprep.subr.bf16.mxu1 %v5308_v24  ;;  %4948 = vmatprep.subr.bf16.mxu0 %v5649_v51 }
 0x830   :  { %3173 = vmatmul.mubr.bf16.vlgmr.msra.gmra.mxu0 %v2732_v26 }
 0x831   :  { %3083 = vmatpush2.bf16.msra.mxu1 %v5310_v27  ;;  %4949 = vmatpush3.bf16.msra.mxu0 %v5311_v16 }
 0x832   :  { %3084 = vmatprep.subr.bf16.mxu1 %v5312_v28  ;;  %4950 = vmatprep.subr.bf16.mxu0 %v5649_v51 }
 0x833   :  { %4956 = vmatprep.mubr.msk.bf16.mxu0 %vm5650_vm0, %v5649_v51 }
 0x835   :  { %3085 = vmatpush2.bf16.msra.mxu1 %v5314_v39  ;;  %4951 = vmatpush3.bf16.msra.mxu0 %v5315_v40 }
 0x836   :  { %3086 = vmatprep.subr.bf16.mxu1 %v5316_v46  ;;  %4952 = vmatprep.subr.bf16.mxu0 %v5649_v51 }
 0x839   :  { %3087 = vmatpush2.bf16.msra.mxu1 %v5318_v25  ;;  %4953 = vmatpush3.bf16.msra.mxu0 %v5319_v12 }
 0x83a   :  { %3088 = vmatprep.subr.bf16.mxu1 %v5320_v29  ;;  %4954 = vmatprep.subr.bf16.mxu0 %v5649_v51 }
 0x83d   :  { %3089 = vmatpush2.bf16.msra.mxu1 %v5322_v30  ;;  %4955 = vmatpush3.bf16.msra.mxu0 %v5323_v31 }
 0x840   :  { %3091 = vmatmul.mubr.bf16.vlgmr.msra.gmra.mxu1 %v2732_v26  ;;  %4957 = vmatmul.mubr.msk.bf16.vlgmr.msra.gmra.mxu0 %vm1648_vm1, %v6341_v49 }
 0x8d0   :  { %v3133_v32 = vpop.f32.mrf.mxu0 }
 0x8d2   :  { %v3135_v33 = vpop.f32.mrf.mxu0 }
 0x8d4   :  { %v3137_v34 = vpop.f32.mrf.mxu0 }
 0x8d6   :  { %v3138_v35 = vpop.f32.mrf.mxu0 }
 0x8f0   :  { %v4776_v36 = vpop.f32.mrf.mxu0 }
 0x8f2   :  { %v4777_v37 = vpop.f32.mrf.mxu0 }
 0x8f3   :  { %v4778_v42 = vadd.f32 %v4777_v37, %v4776_v36 }
 0x8f4   :  { %v4779_v38 = vpop.f32.mrf.mxu0 }
 0x8f6   :  { %v4780_v41 = vpop.f32.mrf.mxu0 }
 0x900   :  { %v3092_v43 = vpop.f32.mrf.mxu1  ;;  %v3214_v44 = vpop.f32.mrf.mxu0 }
 0x901   :  { %v6356_v45 = vadd.f32 %v3133_v32, %v3092_v43  ;;  %v6358_v47 = vadd.f32 %v4778_v42, %v3214_v44 }
 0x902   :  { %v3094_v48 = vpop.f32.mrf.mxu1  ;;  %v4958_v50 = vpop.f32.mrf.mxu0 }
 0x903   :  { %v3220_v52 = vrot.slane %v6356_v45, 4  ;;  %v3242_v49 = vmul.f32 %v6356_v45, %v6356_v45  ;;  %v3232_v53 = vsel %vm1648_vm1, %v6358_v47, 0.0  ;;  %v3244_v55 = vmul.f32 %v6358_v47, %v6358_v47 }
 0x904   :  { %v3233_v57 = vrot.slane %v3232_v53, 4  ;;  %v6367_v58 = vadd.f32 %v3135_v33, %v3094_v48  ;;  %v3096_v59 = vpop.f32.mrf.mxu1  ;;  %v3217_v60 = vpop.f32.mrf.mxu0 }
 0x905   :  { %v3221_v61 = vadd.f32 %v3220_v52, %v6356_v45  ;;  %v3245_v62 = vrot.slane %v3242_v49, 4  ;;  %v3257_v63 = vsel %vm1648_vm1, %v3244_v55, 0.0 }
 0x906   :  { %v3234_v0 = vadd.f32 %v3233_v57, %v3232_v53  ;;  %v3258_v1 = vrot.slane %v3257_v63, 4  ;;  %v3226_v5 = vrot.slane %v6367_v58, 4  ;;  %v3243_v7 = vmul.f32 %v6367_v58, %v6367_v58  ;;  %v3097_v8 = vpop.f32.mrf.mxu1  ;;  %v4959_v9 = vpop.f32.mrf.mxu0 }
 0x907   :  { %v3222_v10 = vrot.slane %v3221_v61, 2  ;;  %v3246_v11 = vadd.f32 %v3245_v62, %v3242_v49 }
 0x908   :  { %v3235_v13 = vrot.slane %v3234_v0, 2  ;;  %v3259_v14 = vadd.f32 %v3258_v1, %v3257_v63  ;;  %v3227_v15 = vadd.f32 %v3226_v5, %v6367_v58  ;;  %v3251_v17 = vrot.slane %v3243_v7, 4 }
 0x909   :  { %v3223_v18 = vadd.f32 %v3222_v10, %v3221_v61  ;;  %v3247_v19 = vrot.slane %v3246_v11, 2 }
 0x90a   :  { %v3236_v20 = vadd.f32 %v3235_v13, %v3234_v0  ;;  %v3260_v21 = vrot.slane %v3259_v14, 2  ;;  %v3228_v22 = vrot.slane %v3227_v15, 2  ;;  %v3252_v23 = vadd.f32 %v3251_v17, %v3243_v7  ;;  %v3273_v7 = vld [vmem:[%s6456_s1 + $0x14] sm:$0x7] }
 0x90b   :  { %v3224_v24 = vrot.slane %v3223_v18, 1  ;;  %v3248_v26 = vadd.f32 %v3247_v19, %v3246_v11 }
 0x90c   :  { %v3237_v27 = vrot.slane %v3236_v20, 1  ;;  %v3261_v16 = vadd.f32 %v3260_v21, %v3259_v14  ;;  %v3229_v28 = vadd.f32 %v3228_v22, %v3227_v15  ;;  %v3253_v39 = vrot.slane %v3252_v23, 2  ;;  %v3274_v22 = vld [vmem:[%s6456_s1 + $0x17] sm:$0x7] }
 0x90d   :  { %v3225_v40 = vadd.f32 %v3224_v24, %v3223_v18  ;;  %v3249_v46 = vrot.slane %v3248_v26, 1 }
 0x90e   :  { %v3238_v25 = vadd.f32 %v3237_v27, %v3236_v20  ;;  %v3262_v12 = vrot.slane %v3261_v16, 1  ;;  %v3230_v29 = vrot.slane %v3229_v28, 1  ;;  %v3254_v30 = vadd.f32 %v3253_v39, %v3252_v23 }
 0x90f   :  { %v3239_v31 = vmul.f32 0.125, %v3225_v40  ;;  %v3250_v32 = vadd.f32 %v3249_v46, %v3248_v26 }
 0x910   :  { %v3241_v33 = vmul.f32 0.125, %v3238_v25  ;;  %v3263_v34 = vadd.f32 %v3262_v12, %v3261_v16  ;;  %v3231_v35 = vadd.f32 %v3230_v29, %v3229_v28  ;;  %v3255_v36 = vrot.slane %v3254_v30, 1 }
 0x911   :  { %v3264_v37 = vmul.f32 0.125, %v3250_v32  ;;  %v3267_v38 = vmul.f32 %v3239_v31, %v3239_v31 }
 0x912   :  { %v3266_v41 = vmul.f32 0.125, %v3263_v34  ;;  %v3269_v42 = vmul.f32 %v3241_v33, %v3241_v33  ;;  %v3240_v43 = vmul.f32 0.125, %v3231_v35  ;;  %v3256_v44 = vadd.f32 %v3255_v36, %v3254_v30 }
 0x913   :  { %v3270_v48 = vsub.f32 %v3264_v37, %v3267_v38 }
 0x914   :  { %v3272_v50 = vsub.f32 %v3266_v41, %v3269_v42  ;;  %v3265_v52 = vmul.f32 0.125, %v3256_v44  ;;  %v3268_v49 = vmul.f32 %v3240_v43, %v3240_v43 }
 0x915   :  { %v3275_v53 = vadd.f32 1e-05, %v3270_v48 }
 0x916   :  { %v3277_v55 = vadd.f32 1e-05, %v3272_v50  ;;  %v3271_v57 = vsub.f32 %v3265_v52, %v3268_v49 }
 0x917   :  { %5324 = vrsqrt.f32 %v3275_v53 }
 0x918   :  { %v3276_v59 = vadd.f32 1e-05, %v3271_v57  ;;  %5326 = vrsqrt.f32 %v3277_v55 }
 0x91a   :  { %5328 = vrsqrt.f32 %v3276_v59 }
 0x924   :  { %v5325_v60 = vpop.eup %5324 }
 0x925   :  { %v5327_v61 = vpop.eup %5326 }
 0x926   :  { %v3298_v0 = vrot.slane %v5327_v61, %v6314_v54 }
 0x927   :  { %v5329_v62 = vpop.eup %5328 }
 0x928   :  { %v3284_v63 = vcombine.low %v5325_v60, %v5329_v62 }
 0x92a   :  { %v3291_v1 = vrot.slane %v3284_v63, %v6314_v54 }
 0x92c   :  { %v3299_v5 = vcombine.low %v3291_v1, %v3298_v0 }
 0x92e   :  { %v3306_v8 = vrot.slane %v3299_v5, %v6314_v54 }
 0x930   :  { %v3308_v9 = vmul.f32 %v3306_v8, %v3273_v7 }
 0x932   :  { %v3313_v10 = vrot.slane %v3308_v9, %v6124_v3  ;;  %v3317_v11 = vrot.slane %v3308_v9, %v6133_v6  ;;  %v3321_v13 = vrot.slane %v3308_v9, %v6127_v4 }
 0x934   :  { %v3325_v14 = vmul.f32 %v3313_v10, %v3239_v31  ;;  %v3326_v15 = vmul.f32 %v3317_v11, %v3240_v43  ;;  %v3327_v17 = vmul.f32 %v3321_v13, %v3241_v33  ;;  %v3356_v26 = vmul.f32 %v3313_v10, %v6356_v45 }
 0x935   :  { %v3357_v27 = vmul.f32 %v3317_v11, %v6367_v58  ;;  %v3358_v16 = vmul.f32 %v3321_v13, %v6358_v47 }
 0x936   :  { %v3331_v18 = vcombine.low %v3325_v14, %v3326_v15  ;;  %v3345_v20 = vrot.slane %v3327_v17, %v6314_v54 }
 0x938   :  { %v3338_v19 = vrot.slane %v3331_v18, %v6314_v54 }
 0x93a   :  { %v3346_v21 = vcombine.low %v3338_v19, %v3345_v20 }
 0x93c   :  { %v3353_v23 = vrot.slane %v3346_v21, %v6314_v54 }
 0x93e   :  { %v3355_v24 = vsub.f32 %v3274_v22, %v3353_v23 }
 0x940   :  { %v3363_v28 = vrot.slane %v3355_v24, %v6124_v3  ;;  %v3367_v39 = vrot.slane %v3355_v24, %v6133_v6  ;;  %v3371_v40 = vrot.slane %v3355_v24, %v6127_v4 }
 0x942   :  { %v3375_v46 = vadd.f32 %v3363_v28, %v3356_v26  ;;  %v3376_v25 = vadd.f32 %v3367_v39, %v3357_v27  ;;  %v3377_v12 = vadd.f32 %v3371_v40, %v3358_v16 }
 0x944   :  { %v3378_v29 = vmax.f32 %v3375_v46, 0.0  ;;  %v3379_v30 = vmax.f32 %v3376_v25, 0.0  ;;  %v3380_v31 = vmax.f32 %v3377_v12, 0.0 }
 0x945   :  { %5630 = dma.done.wait [#allocation6 + $0x2], 2560 }
 0x946   :  { %5631 = vsyncadd [#allocation6 + $0x2], 4294964736  ;;  %4960 = vmatprep.subr.bf16.mxu0 %v5649_v51  ;;  %4968 = vmatprep.mubr.msk.bf16.mxu0 %vm5650_vm0, %v5649_v51  ;;  %v3425_v54 = vpack.c.bf16 %v3379_v30, %v3379_v30  ;;  %v5330_v45 = vld [vmem:[#allocation4 + $0x78] sm:$0xff]   ;;  %v5332_v58 = vld [vmem:[#allocation4 + $0x70] sm:$0xff]   ;;  %v3426_v53 = vpack.c.bf16 %v3380_v31, %v3380_v31  ;;  %v3424_v59 = vpack.c.bf16 %v3378_v29, %v3378_v29 }
 0x947   :  { %v5331_v47 = vld [vmem:[#allocation4 + $0x38] sm:$0xff]   ;;  %4787 = vmatprep.subr.bf16.mxu1 %v5330_v45  ;;  %v5333_v32 = vld [vmem:[#allocation4 + $0x30] sm:$0xff]   ;;  %v5334_v33 = vld [vmem:[#allocation4 + $0x68] sm:$0xff]  }
 0x948   :  { %3582 = vmatprep.mubr.bf16.mxu1 %v3425_v54  ;;  %4788 = vmatpush3.bf16.msra.mxu1 %v5331_v47  ;;  %v5335_v34 = vld [vmem:[#allocation4 + $0x28] sm:$0xff]   ;;  %v5336_v35 = vld [vmem:[#allocation4 + $0x60] sm:$0xff]   ;;  %v5338_v36 = vld [vmem:[#allocation4 + $0x98] sm:$0xff]  }
 0x949   :  { %4789 = vmatprep.subr.bf16.mxu1 %v5332_v58  ;;  %v5337_v37 = vld [vmem:[#allocation4 + $0x20] sm:$0xff]   ;;  %4961 = vmatpush3.bf16.msra.mxu0 %v5338_v36  ;;  %v5341_v38 = vld [vmem:[#allocation4 + $0x90] sm:$0xff]   ;;  %v5339_v41 = vld [vmem:[#allocation4 + $0x58] sm:$0xff]  }
 0x94a   :  { %4962 = vmatprep.subr.bf16.mxu0 %v5649_v51  ;;  %v5344_v42 = vld [vmem:[#allocation4 + $0x88] sm:$0xff]   ;;  %v5340_v43 = vld [vmem:[#allocation4 + $0x18] sm:$0xff]   ;;  %v5342_v44 = vld [vmem:[#allocation4 + $0x50] sm:$0xff]  }
 0x94b   :  { %v5343_v48 = vld [vmem:[#allocation4 + $0x10] sm:$0xff]   ;;  %v5347_v50 = vld [vmem:[#allocation4 + $0x80] sm:$0xff]   ;;  %v5345_v52 = vld [vmem:[#allocation4 + $0x48] sm:$0xff]  }
 0x94c   :  { %4790 = vmatpush3.bf16.msra.mxu1 %v5333_v32  ;;  %v5346_v49 = vld [vmem:[#allocation4 + $0x8] sm:$0xff]   ;;  %v5348_v55 = vld [vmem:[#allocation4 + $0x40] sm:$0xff]   ;;  %v5350_v60 = vld [vmem:[#allocation16 + $0x38] sm:$0xff]  }
 0x94d   :  { %4791 = vmatprep.subr.bf16.mxu1 %v5334_v33  ;;  %4963 = vmatpush3.bf16.msra.mxu0 %v5341_v38  ;;  %v5349_v57 = vld [vmem:[#allocation4] sm:$0xff]   ;;  %v5351_v61 = vld [vmem:[#allocation16 + $0x30] sm:$0xff]   ;;  %v5353_v63 = vld [vmem:[#allocation16 + $0x20] sm:$0xff]  }
 0x94e   :  { %4964 = vmatprep.subr.bf16.mxu0 %v5649_v51  ;;  %v5352_v62 = vld [vmem:[#allocation16 + $0x28] sm:$0xff]   ;;  %v5354_v0 = vld [vmem:[#allocation16 + $0x18] sm:$0xff]   ;;  %v5355_v1 = vld [vmem:[#allocation16 + $0x10] sm:$0xff]  }
 0x94f   :  { %v5356_v5 = vld [vmem:[#allocation16 + $0x8] sm:$0xff]   ;;  %v5357_v7 = vld [vmem:[#allocation16] sm:$0xff]  }
 0x950   :  { %4792 = vmatpush3.bf16.msra.mxu1 %v5335_v34  ;;  %v3647_v45 = vld [vmem:[%s6456_s1 + $0x1a] sm:$0x1]  ;;  %v3648_v32 = vld [vmem:[%s6456_s1 + $0x1b] sm:$0x1] }
 0x951   :  { %4793 = vmatprep.subr.bf16.mxu1 %v5336_v35  ;;  %4965 = vmatpush3.bf16.msra.mxu0 %v5344_v42 }
 0x952   :  { %4966 = vmatprep.subr.bf16.mxu0 %v5649_v51 }
 0x954   :  { %4794 = vmatpush3.bf16.msra.mxu1 %v5337_v37 }
 0x955   :  { %4795 = vmatprep.subr.bf16.mxu1 %v5339_v41  ;;  %4967 = vmatpush3.bf16.msra.mxu0 %v5347_v50 }
 0x956   :  { %4972 = vmatprep.subr.bf16.mxu0 %v5649_v51 }
 0x958   :  { %4796 = vmatpush3.bf16.msra.mxu1 %v5340_v43  ;;  %4969 = vmatmul.mubr.msk.bf16.vlgmr.msra.gmra.mxu0 %vm1648_vm1, %v3426_v53 }
 0x959   :  { %4797 = vmatprep.subr.bf16.mxu1 %v5342_v44  ;;  %4988 = vmatprep.mubr.msk.bf16.mxu0 %vm5650_vm0, %v5649_v51 }
 0x95a   :  { %4973 = vmatpush3.bf16.msra.mxu0 %v5350_v60 }
 0x95b   :  { %4974 = vmatprep.subr.bf16.mxu0 %v5649_v51 }
 0x95c   :  { %4798 = vmatpush3.bf16.msra.mxu1 %v5343_v48 }
 0x95d   :  { %4799 = vmatprep.subr.bf16.mxu1 %v5345_v52 }
 0x95e   :  { %4975 = vmatpush3.bf16.msra.mxu0 %v5351_v61 }
 0x95f   :  { %4976 = vmatprep.subr.bf16.mxu0 %v5649_v51 }
 0x960   :  { %4800 = vmatpush3.bf16.msra.mxu1 %v5346_v49 }
 0x961   :  { %4801 = vmatprep.subr.bf16.mxu1 %v5348_v55 }
 0x962   :  { %4977 = vmatpush3.bf16.msra.mxu0 %v5352_v62 }
 0x963   :  { %4978 = vmatprep.subr.bf16.mxu0 %v5649_v51 }
 0x964   :  { %4802 = vmatpush3.bf16.msra.mxu1 %v5349_v57 }
 0x966   :  { %4979 = vmatpush3.bf16.msra.mxu0 %v5353_v63 }
 0x967   :  { %3583 = vmatmul.mubr.bf16.vlgmr.msra.gmra.mxu1 %v3424_v59  ;;  %4980 = vmatprep.subr.bf16.mxu0 %v5649_v51 }
 0x96a   :  { %4981 = vmatpush3.bf16.msra.mxu0 %v5354_v0 }
 0x96b   :  { %4982 = vmatprep.subr.bf16.mxu0 %v5649_v51 }
 0x96e   :  { %4983 = vmatpush3.bf16.msra.mxu0 %v5355_v1 }
 0x96f   :  { %4984 = vmatprep.subr.bf16.mxu0 %v5649_v51 }
 0x972   :  { %4985 = vmatpush3.bf16.msra.mxu0 %v5356_v5 }
 0x973   :  { %4986 = vmatprep.subr.bf16.mxu0 %v5649_v51 }
 0x976   :  { %4987 = vmatpush3.bf16.msra.mxu0 %v5357_v7 }
 0xa18   :  { %v3624_v8 = vpop.f32.mrf.mxu0 }
 0xa1a   :  { %v4970_v9 = vpop.f32.mrf.mxu0 }
 0xa1c   :  { %v3627_v10 = vpop.f32.mrf.mxu0 }
 0xa1e   :  { %v4971_v11 = vpop.f32.mrf.mxu0 }
 0xa27   :  { %v4803_v13 = vpop.f32.mrf.mxu1 }
 0xa29   :  { %v4804_v14 = vpop.f32.mrf.mxu1 }
 0xa2a   :  { %v4805_v15 = vadd.f32 %v4804_v14, %v4803_v13  ;;  %v3791_v13 = vld [vmem:[%s6456_s1 + $0x1c] sm:$0x1] }
 0xa2b   :  { %v4806_v17 = vpop.f32.mrf.mxu1 }
 0xa2c   :  { %v3625_v18 = vadd.f32 %v4805_v15, %v3624_v8  ;;  %v3792_v17 = vld [vmem:[%s6456_s1 + $0x1d] sm:$0x1] }
 0xa2d   :  { %v4807_v19 = vpop.f32.mrf.mxu1 }
 0xa2e   :  { %v3630_v20 = vrot.slane %v3625_v18, 4  ;;  %v3637_v21 = vmul.f32 %v3625_v18, %v3625_v18 }
 0xa30   :  { %v3631_v22 = vadd.f32 %v3630_v20, %v3625_v18  ;;  %v3638_v23 = vrot.slane %v3637_v21, 4 }
 0xa32   :  { %v3632_v24 = vrot.slane %v3631_v22, 2  ;;  %v3639_v26 = vadd.f32 %v3638_v23, %v3637_v21 }
 0xa34   :  { %v3633_v27 = vadd.f32 %v3632_v24, %v3631_v22  ;;  %v3640_v16 = vrot.slane %v3639_v26, 2 }
 0xa36   :  { %v3634_v28 = vrot.slane %v3633_v27, 1  ;;  %v3641_v39 = vadd.f32 %v3640_v16, %v3639_v26 }
 0xa38   :  { %v3635_v40 = vadd.f32 %v3634_v28, %v3633_v27  ;;  %v3642_v46 = vrot.slane %v3641_v39, 1 }
 0xa3a   :  { %v3643_v25 = vadd.f32 %v3642_v46, %v3641_v39  ;;  %v3636_v12 = vmul.f32 0.125, %v3635_v40 }
 0xa3c   :  { %v3644_v29 = vmul.f32 0.125, %v3643_v25  ;;  %v3645_v30 = vmul.f32 %v3636_v12, %v3636_v12 }
 0xa3e   :  { %v3646_v31 = vsub.f32 %v3644_v29, %v3645_v30 }
 0xa40   :  { %v3649_v54 = vadd.f32 1e-05, %v3646_v31 }
 0xa42   :  { %5358 = vrsqrt.f32 %v3649_v54 }
 0xa4f   :  { %v5359_v47 = vpop.eup %5358 }
 0xa50   :  { %v3651_v58 = vmul.f32 %v5359_v47, %v3647_v45 }
 0xa52   :  { %v3652_v33 = vmul.f32 %v3651_v58, %v3636_v12  ;;  %v3658_v34 = vrot.slane %v3651_v58, %v6124_v3 }
 0xa54   :  { %v3653_v35 = vsub.f32 %v3648_v32, %v3652_v33  ;;  %v3660_v36 = vmul.f32 %v3658_v34, %v3625_v18 }
 0xa56   :  { %v3665_v37 = vrot.slane %v3653_v35, %v6124_v3 }
 0xa58   :  { %v3667_v38 = vadd.f32 %v3665_v37, %v3660_v36 }
 0xa5a   :  { %v3668_v41 = vmax.f32 %v3667_v38, 0.0 }
 0xa5c   :  { %v3685_v42 = vpack.c.bf16 %v3668_v41, %v3668_v41 }
 0xa5e   :  { %4989 = vmatmul.mubr.bf16.vlgmr.msra.gmra.mxu0 %v3685_v42 }
 0xb1e   :  { %v3768_v43 = vpop.f32.mrf.mxu0 }
 0xb1f   :  { %v3774_v44 = vrot.slane %v3768_v43, 4  ;;  %v3781_v48 = vmul.f32 %v3768_v43, %v3768_v43 }
 0xb20   :  { %v4990_v50 = vpop.f32.mrf.mxu0 }
 0xb21   :  { %v3775_v52 = vadd.f32 %v3774_v44, %v3768_v43  ;;  %v3782_v49 = vrot.slane %v3781_v48, 4 }
 0xb22   :  { %v3771_v53 = vpop.f32.mrf.mxu0 }
 0xb23   :  { %v3776_v55 = vrot.slane %v3775_v52, 2  ;;  %v3783_v57 = vadd.f32 %v3782_v49, %v3781_v48 }
 0xb24   :  { %v4991_v59 = vpop.f32.mrf.mxu0 }
 0xb25   :  { %v3777_v60 = vadd.f32 %v3776_v55, %v3775_v52  ;;  %v3784_v61 = vrot.slane %v3783_v57, 2 }
 0xb27   :  { %v3778_v62 = vrot.slane %v3777_v60, 1  ;;  %v3785_v63 = vadd.f32 %v3784_v61, %v3783_v57 }
 0xb29   :  { %v3779_v0 = vadd.f32 %v3778_v62, %v3777_v60  ;;  %v3786_v1 = vrot.slane %v3785_v63, 1 }
 0xb2b   :  { %v3780_v5 = vmul.f32 0.125, %v3779_v0  ;;  %v3787_v7 = vadd.f32 %v3786_v1, %v3785_v63 }
 0xb2d   :  { %v3788_v8 = vmul.f32 0.125, %v3787_v7  ;;  %v3789_v9 = vmul.f32 %v3780_v5, %v3780_v5 }
 0xb2f   :  { %v3790_v10 = vsub.f32 %v3788_v8, %v3789_v9 }
 0xb31   :  { %v3793_v11 = vadd.f32 1e-05, %v3790_v10 }
 0xb33   :  { %5360 = vrsqrt.f32 %v3793_v11 }
 0xb40   :  { %v5361_v14 = vpop.eup %5360 }
 0xb41   :  { %v3795_v15 = vmul.f32 %v5361_v14, %v3791_v13 }
 0xb43   :  { %v3796_v18 = vmul.f32 %v3795_v15, %v3780_v5  ;;  %v3802_v19 = vrot.slane %v3795_v15, %v6124_v3 }
 0xb45   :  { %v3797_v20 = vsub.f32 %v3792_v17, %v3796_v18  ;;  %v3804_v21 = vmul.f32 %v3802_v19, %v3768_v43 }
 0xb47   :  { %v3809_v22 = vrot.slane %v3797_v20, %v6124_v3 }
 0xb49   :  { %v3811_v23 = vadd.f32 %v3809_v22, %v3804_v21 }
 0xb4b   :  { %v3812_v24 = vmax.f32 %v3811_v23, 0.0 }
 0xb4c   :  { %5632 = dma.done.wait [#allocation6 + $0x3], 5120 }
 0xb4d   :  { %5633 = vsyncadd [#allocation6 + $0x3], 4294962176  ;;  %4133 = vmatprep.mubr.bf16.mxu1 %v5651_v56  ;;  %4174 = vmatprep.mubr.bf16.mxu0 %v5651_v56  ;;  %v5362_v26 = vld [vmem:[#allocation5 + $0x11c] ss:$20 sps:$4 sm:$0xff]   ;;  %v5364_v27 = vld [vmem:[#allocation5 + $0x118] ss:$20 sps:$4 sm:$0xff]   ;;  %v3865_v50 = vpack.c.bf16 %v3812_v24, %v3812_v24 }
 0xb4e   :  { %4101 = vmatprep.subr.bf16.mxu1 %v5362_v26  ;;  %v5365_v16 = vld [vmem:[#allocation5 + $0xf4] ss:$20 sps:$4 sm:$0xff]   ;;  %v5367_v28 = vld [vmem:[#allocation5 + $0xf0] ss:$20 sps:$4 sm:$0xff]   ;;  %v5368_v39 = vld [vmem:[#allocation5 + $0xcc] ss:$20 sps:$4 sm:$0xff]  }
 0xb4f   :  { %4102 = vmatpush1.bf16.msra.mxu1 %v5364_v27  ;;  %v5370_v40 = vld [vmem:[#allocation5 + $0xc8] ss:$20 sps:$4 sm:$0xff]   ;;  %v5371_v46 = vld [vmem:[#allocation5 + $0xa4] ss:$20 sps:$4 sm:$0xff]   ;;  %v5385_v12 = vld [vmem:[#allocation5 + $0x120] ss:$20 sps:$4 sm:$0xff]  }
 0xb50   :  { %4103 = vmatprep.subr.bf16.mxu1 %v5365_v16  ;;  %v5382_v25 = vld [vmem:[#allocation5 + $0x124] ss:$20 sps:$4 sm:$0xff]   ;;  %v5373_v29 = vld [vmem:[#allocation5 + $0xa0] ss:$20 sps:$4 sm:$0xff]   ;;  %v5374_v30 = vld [vmem:[#allocation5 + $0x7c] ss:$20 sps:$4 sm:$0xff]  }
 0xb51   :  { %4142 = vmatprep.subr.bf16.mxu0 %v5382_v25  ;;  %v5388_v56 = vld [vmem:[#allocation5 + $0xfc] ss:$20 sps:$4 sm:$0xff]   ;;  %v5391_v31 = vld [vmem:[#allocation5 + $0xf8] ss:$20 sps:$4 sm:$0xff]   ;;  %v5392_v54 = vld [vmem:[#allocation5 + $0xd4] ss:$20 sps:$4 sm:$0xff]  }
 0xb52   :  { %4143 = vmatpush1.bf16.msra.mxu0 %v5385_v12  ;;  %v5376_v45 = vld [vmem:[#allocation5 + $0x78] ss:$20 sps:$4 sm:$0xff]   ;;  %v5377_v47 = vld [vmem:[#allocation5 + $0x54] ss:$20 sps:$4 sm:$0xff]   ;;  %v5394_v58 = vld [vmem:[#allocation5 + $0xd0] ss:$20 sps:$4 sm:$0xff]  }
 0xb53   :  { %4104 = vmatpush1.bf16.msra.mxu1 %v5367_v28  ;;  %4144 = vmatprep.subr.bf16.mxu0 %v5388_v56  ;;  %v5396_v32 = vld [vmem:[#allocation5 + $0xac] ss:$20 sps:$4 sm:$0xff]   ;;  %v5379_v33 = vld [vmem:[#allocation5 + $0x50] ss:$20 sps:$4 sm:$0xff]   ;;  %v5398_v35 = vld [vmem:[#allocation5 + $0xa8] ss:$20 sps:$4 sm:$0xff]  }
 0xb54   :  { %4105 = vmatprep.subr.bf16.mxu1 %v5368_v39  ;;  %v5380_v34 = vld [vmem:[#allocation5 + $0x2c] ss:$20 sps:$4 sm:$0xff]   ;;  %v5400_v36 = vld [vmem:[#allocation5 + $0x84] ss:$20 sps:$4 sm:$0xff]   ;;  %v5384_v37 = vld [vmem:[#allocation5 + $0x28] ss:$20 sps:$4 sm:$0xff]  }
 0xb55   :  { %v5386_v38 = vld [vmem:[#allocation5 + $0x4] ss:$20 sps:$4 sm:$0xff]   ;;  %v5402_v41 = vld [vmem:[#allocation5 + $0x80] ss:$20 sps:$4 sm:$0xff]   ;;  %v5404_v42 = vld [vmem:[#allocation5 + $0x5c] ss:$20 sps:$4 sm:$0xff]  }
 0xb56   :  { %4145 = vmatpush1.bf16.msra.mxu0 %v5391_v31  ;;  %v5390_v43 = vld [vmem:[#allocation5] ss:$20 sps:$4 sm:$0xff]   ;;  %v5406_v44 = vld [vmem:[#allocation5 + $0x58] ss:$20 sps:$4 sm:$0xff]   ;;  %v5395_v52 = vld [vmem:[#allocation5 + $0x128] ss:$20 sps:$4 sm:$0xff]  }
 0xb57   :  { %4106 = vmatpush1.bf16.msra.mxu1 %v5370_v40  ;;  %4146 = vmatprep.subr.bf16.mxu0 %v5392_v54  ;;  %v5408_v48 = vld [vmem:[#allocation5 + $0x34] ss:$20 sps:$4 sm:$0xff]   ;;  %v5410_v49 = vld [vmem:[#allocation5 + $0x30] ss:$20 sps:$4 sm:$0xff]   ;;  %v5412_v53 = vld [vmem:[#allocation5 + $0xc] ss:$20 sps:$4 sm:$0xff]  }
 0xb58   :  { %4107 = vmatprep.subr.bf16.mxu1 %v5371_v46  ;;  %v5399_v55 = vld [vmem:[#allocation5 + $0x100] ss:$20 sps:$4 sm:$0xff]   ;;  %v5414_v57 = vld [vmem:[#allocation5 + $0x8] ss:$20 sps:$4 sm:$0xff]   ;;  %v5403_v59 = vld [vmem:[#allocation5 + $0xd8] ss:$20 sps:$4 sm:$0xff]  }
 0xb59   :  { %v5407_v60 = vld [vmem:[#allocation5 + $0xb0] ss:$20 sps:$4 sm:$0xff]   ;;  %v5411_v61 = vld [vmem:[#allocation5 + $0x88] ss:$20 sps:$4 sm:$0xff]   ;;  %v5415_v62 = vld [vmem:[#allocation5 + $0x60] ss:$20 sps:$4 sm:$0xff]  }
 0xb5a   :  { %4147 = vmatpush1.bf16.msra.mxu0 %v5394_v58  ;;  %v5416_v63 = vld [vmem:[#allocation5 + $0x38] ss:$20 sps:$4 sm:$0xff]   ;;  %v5417_v0 = vld [vmem:[#allocation5 + $0x10] ss:$20 sps:$4 sm:$0xff]   ;;  %s5654_s7 = smov [#allocation18]  }
 0xb5b   :  { %4108 = vmatpush1.bf16.msra.mxu1 %v5373_v29  ;;  %4148 = vmatprep.subr.bf16.mxu0 %v5396_v32  ;;  %s4239_s10 = sshll.u32 %s5654_s7, 4  ;;  %s4240_s10 = int_to_ptr.vmem [resolvable:$true] %s4239_s10 }
 0xb5c   :  { %4109 = vmatprep.subr.bf16.mxu1 %v5374_v30  ;;  %s5578_s18 = scalar_lea.vmem %s4240_s10, 128  ;;  %p5583_p13 = scmp.lt.s32.totalorder %s4240_s10, %s4240_s10 }
 0xb5d   :  { %p5579_p12 = scmp.ne.s32.totalorder %s4240_s10, %s5578_s18  ;;  %p5584_p0 = scmp.lt.s32.totalorder %s5578_s18, %s5578_s18 }
 0xb5e   :  { %4149 = vmatpush1.bf16.msra.mxu0 %v5398_v35 }
 0xb5f   :  { %4110 = vmatpush1.bf16.msra.mxu1 %v5376_v45  ;;  %4150 = vmatprep.subr.bf16.mxu0 %v5400_v36  ;;  %p5585_p1 = por %p5584_p0, %p5583_p13 }
 0xb60   :  { %4111 = vmatprep.subr.bf16.mxu1 %v5377_v47 }
 0xb61   :  { %p5586_p2 = pnand %p5585_p1, %p5579_p12 }
 0xb62   :  { %4151 = vmatpush1.bf16.msra.mxu0 %v5402_v41 }
 0xb63   :  { %4112 = vmatpush1.bf16.msra.mxu1 %v5379_v33  ;;  %4152 = vmatprep.subr.bf16.mxu0 %v5404_v42 }
 0xb64   :  { %4113 = vmatprep.subr.bf16.mxu1 %v5380_v34 }
 0xb66   :  { %4153 = vmatpush1.bf16.msra.mxu0 %v5406_v44 }
 0xb67   :  { %4114 = vmatpush1.bf16.msra.mxu1 %v5384_v37  ;;  %4154 = vmatprep.subr.bf16.mxu0 %v5408_v48 }
 0xb68   :  { %4115 = vmatprep.subr.bf16.mxu1 %v5386_v38 }
 0xb6a   :  { %4155 = vmatpush1.bf16.msra.mxu0 %v5410_v49 }
 0xb6b   :  { %4116 = vmatpush1.bf16.msra.mxu1 %v5390_v43  ;;  %4156 = vmatprep.subr.bf16.mxu0 %v5412_v53 }
 0xb6c   :  { %4992 = vmatprep.subr.bf16.mxu1 %v5649_v51 }
 0xb6e   :  { %4134 = vmatmul.mubr.bf16.vlgmr.msra.gmra.mxu1 %v3865_v50  ;;  %4157 = vmatpush1.bf16.msra.mxu0 %v5414_v57 }
 0xb6f   :  { %4993 = vmatpush3.bf16.msra.mxu1 %v5395_v52  ;;  %5008 = vmatprep.mubr.msk.bf16.mxu1 %vm5650_vm0, %v5649_v51 }
 0xb70   :  { %4994 = vmatprep.subr.bf16.mxu1 %v5649_v51 }
 0xb71   :  { %4175 = vmatmul.mubr.bf16.vlgmr.msra.gmra.mxu0 %v3865_v50 }
 0xb73   :  { %4995 = vmatpush3.bf16.msra.mxu1 %v5399_v55 }
 0xb74   :  { %4996 = vmatprep.subr.bf16.mxu1 %v5649_v51 }
 0xb77   :  { %4997 = vmatpush3.bf16.msra.mxu1 %v5403_v59 }
 0xb78   :  { %4998 = vmatprep.subr.bf16.mxu1 %v5649_v51 }
 0xb7b   :  { %4999 = vmatpush3.bf16.msra.mxu1 %v5407_v60 }
 0xb7c   :  { %5000 = vmatprep.subr.bf16.mxu1 %v5649_v51 }
 0xb7f   :  { %5001 = vmatpush3.bf16.msra.mxu1 %v5411_v61 }
 0xb80   :  { %5002 = vmatprep.subr.bf16.mxu1 %v5649_v51 }
 0xb83   :  { %5003 = vmatpush3.bf16.msra.mxu1 %v5415_v62 }
 0xb84   :  { %5004 = vmatprep.subr.bf16.mxu1 %v5649_v51 }
 0xb87   :  { %5005 = vmatpush3.bf16.msra.mxu1 %v5416_v63 }
 0xb88   :  { %5006 = vmatprep.subr.bf16.mxu1 %v5649_v51 }
 0xb8b   :  { %5007 = vmatpush3.bf16.msra.mxu1 %v5417_v0 }
 0xb8e   :  { %5009 = vmatmul.mubr.bf16.vlgmr.msra.gmra.mxu1 %v3865_v50 }
 0xb8f   :  { %5589 = shalt.err (!%p5586_p2)
}
 0xb90   :  { %4242 = dma.vmem_to_hbm [thread:$0]  %s4240_s10, 128, %s6469_s14, [#allocation9]   ;;  %v3866_v51 = vld [vmem:[%s6456_s1 + $0x1e] sm:$0x1f]  ;;  %v3882_v14 = vsub.s32 3, %v6121_v2  ;;  %v3886_v27 = vsub.s32 4, %v6121_v2 }
 0xb91   :  { %v3871_v1 = vrot.slane %v3866_v51, %v6124_v3  ;;  %v3875_v5 = vrot.slane %v3866_v51, %v6133_v6  ;;  %v3879_v18 = vrot.slane %v3866_v51, %v6127_v4  ;;  %s5655_s1 = smov [#allocation19]  }
 0xb92   :  { %v3883_v19 = vrot.slane %v3866_v51, %v3882_v14  ;;  %v3887_v16 = vrot.slane %v3866_v51, %v3886_v27  ;;  %s4249_s14 = sshll.u32 %s5655_s1, 4  ;;  %s4250_s14 = int_to_ptr.vmem [resolvable:$true] %s4249_s14 }
 0xb93   :  { %s5598_s23 = scalar_lea.vmem %s4250_s14, 640  ;;  %p5603_p4 = scmp.lt.s32.totalorder %s4250_s14, %s4250_s14 }
 0xb94   :  { %p5599_p3 = scmp.ne.s32.totalorder %s4250_s14, %s5598_s23  ;;  %p5604_p5 = scmp.lt.s32.totalorder %s5598_s23, %s5598_s23 }
 0xb96   :  { %p5605_p6 = por %p5604_p5, %p5603_p4 }
 0xb98   :  { %p5606_p7 = pnand %p5605_p6, %p5599_p3 }
 0xc2e   :  { %v4135_v7 = vpop.f32.mrf.mxu1 }
 0xc2f   :  { %v4136_v8 = vadd.f32 %v4135_v7, %v3871_v1 }
 0xc30   :  { %v4137_v9 = vpop.f32.mrf.mxu1 }
 0xc31   :  { %v4223_v10 = vmax.f32 %v4136_v8, 0.0  ;;  %v4138_v11 = vadd.f32 %v4137_v9, %v3875_v5  ;;  %v4176_v20 = vpop.f32.mrf.mxu0 }
 0xc32   :  { %v4139_v13 = vpop.f32.mrf.mxu1  ;;  %v4177_v21 = vadd.f32 %v4176_v20, %v3879_v18 }
 0xc33   :  { %4228 = vst [vmem:[#allocation19] sm:$0xff] %v4223_v10  ;;  %v4224_v15 = vmax.f32 %v4138_v11, 0.0  ;;  %v4178_v3 = vpop.f32.mrf.mxu0 }
 0xc34   :  { %v4140_v17 = vpop.f32.mrf.mxu1  ;;  %v4225_v22 = vmax.f32 %v4177_v21, 0.0  ;;  %v4179_v6 = vadd.f32 %v4178_v3, %v3883_v19 }
 0xc35   :  { %4229 = vst [vmem:[#allocation19 + $0x8] sm:$0xff] %v4224_v15  ;;  %v4180_v23 = vpop.f32.mrf.mxu0 }
 0xc36   :  { %4230 = vst [vmem:[#allocation19 + $0x10] sm:$0xff] %v4225_v22  ;;  %v4226_v24 = vmax.f32 %v4179_v6, 0.0 }
 0xc37   :  { %v4181_v26 = vpop.f32.mrf.mxu0 }
 0xc38   :  { %4231 = vst [vmem:[#allocation19 + $0x18] sm:$0xff] %v4226_v24 }
 0xc4e   :  { %v4217_v28 = vpop.f32.mrf.mxu1 }
 0xc4f   :  { %v4218_v39 = vadd.f32 %v4217_v28, %v3887_v16 }
 0xc50   :  { %v5010_v4 = vpop.f32.mrf.mxu1 }
 0xc51   :  { %v4227_v40 = vmax.f32 %v4218_v39, 0.0 }
 0xc52   :  { %v4220_v46 = vpop.f32.mrf.mxu1 }
 0xc53   :  { %4232 = vst [vmem:[#allocation19 + $0x20] sm:$0xff] %v4227_v40 }
 0xc54   :  { %v5011_v25 = vpop.f32.mrf.mxu1 }
 0xc55   :  { %5609 = shalt.err (!%p5606_p7)
}
 0xc56   :  { %4252 = dma.vmem_to_hbm [thread:$0]  %s4250_s14, 640, %s6470_s15, [#allocation20]  }
 0xc57   :  { %5634 = dma.done.wait [#allocation9], 128  }
 0xc58   :  { %5635 = vsyncadd [#allocation9], 4294967168 }
 0xc59   :  { %5636 = dma.done.wait [#allocation20], 640  }
 0xc5a   :  { %5637 = vsyncadd [#allocation20], 4294966656 }
 0xc5b   :  { %4259 = vsyncpa [#allocation8], 1 }
 0xc5c   :  { %4260 = vsyncpa [#allocation11], 1 }
 0xc5d   :  { %4261 = vsyncpa [#allocation14], 1 }
 0xc5e   :  { %4262 = vsyncpa [#allocation17], 1 }
 0xc5f   :  { %4263 = vsyncpa [#allocation9], 1 }
 0xc60   :  { %4264 = vsyncpa [#allocation20], 1 }
 0xc61   :  { %4265 = vsyncmov [#allocation6] }
 0xc64   :  { %s4266_s12 = vpop.sfrf %4265 }
 0xc65   :  { %p4618_p8 = scmp.ne.s32.totalorder %s4266_s12, 0 }
 0xc67   :  { %4270 = shalt.err (%p4618_p8)  }
 0xc68   :  { %4272 = vsyncmov [#allocation6 + $0x1] }
 0xc6b   :  { %s4273_s21 = vpop.sfrf %4272 }
 0xc6c   :  { %p4619_p9 = scmp.ne.s32.totalorder %s4273_s21, 0 }
 0xc6e   :  { %4277 = shalt.err (%p4619_p9)  }
 0xc6f   :  { %4279 = vsyncmov [#allocation6 + $0x2] }
 0xc72   :  { %s4280_s15 = vpop.sfrf %4279 }
 0xc73   :  { %p4620_p10 = scmp.ne.s32.totalorder %s4280_s15, 0 }
 0xc75   :  { %4284 = shalt.err (%p4620_p10)  }
 0xc76   :  { %4286 = vsyncmov [#allocation6 + $0x3] }
 0xc79   :  { %s4287_s22 = vpop.sfrf %4286 }
 0xc7a   :  { %p4621_p11 = scmp.ne.s32.totalorder %s4287_s22, 0 }
 0xc7c   :  { %4291 = shalt.err (%p4621_p11)  }

</bundles_post_ra>
